<compile_context>
chip_gen: v5e
topology: v5e:2x2
jax: 0.10.0
libtpu: 0.0.40
codegen_flags: <defaults>
</compile_context>

<pallas_src>
import jax
import jax.numpy as jnp
from jax.experimental import pallas as pl
from jax.experimental.pallas import tpu as pltpu

K_IN = 28 * 28   # 784
K_PAD = 896      # 7 * 128  (lane-dense contraction)
H = 1000
H_PAD = 1024     # 8 * 128
OUT = 10
OUT_PAD = 128    # lane-dense output -> unmasked stores


def _round_up(x, m):
    return (x + m - 1) // m * m


def _choose_tile(batch, block_b):
    """Pick (tile_rows, padded_batch). Keeps >=2 tiles when possible so v7x's
    two TensorCores both get work; tiny batches fall back to one 8-row tile."""
    b8 = _round_up(batch, 8)
    if b8 <= 8:
        return 8, 8
    if b8 <= 2 * block_b:
        tb = _round_up((b8 + 1) // 2, 8)     # exactly 2 tiles
        return tb, 2 * tb
    return block_b, _round_up(b8, block_b)


def mlp_kernel(x_ref, w1_ref, b1_ref, w2_ref, b2_ref, o_ref):
    # Layer 1: [TB, 896](bf16) @ [896, 1024](bf16) -> f32 acc on the MXU.
    h = jnp.dot(x_ref[...], w1_ref[...], preferred_element_type=jnp.float32)
    # Bias + sigmoid in f32 (EUP exp). Padded hidden cols give sigmoid(0)=0.5 but the
    # corresponding zero rows of the padded W2 cancel them exactly in layer 2.
    h = jax.nn.sigmoid(h + b1_ref[...])
    # Layer 2: bf16 x bf16 MXU matmul with f32 accumulation (single MXU pass).
    out = jnp.dot(h.astype(jnp.bfloat16), w2_ref[...],
                  preferred_element_type=jnp.float32)
    o_ref[...] = (out + b2_ref[...]).astype(o_ref.dtype)


def pack_params(w1, b1, w2, b2):
    """One-time pad + cast of weights into the kernel's lane-dense layout.

    Expects w1: [784, 1000], w2: [1000, 10] (i.e. [in, out]).
    NOTE: a PyTorch nn.Linear checkpoint stores weight as [out, in] and computes
    x @ W.T — transpose when importing trained weights.
    """
    w1_p = jnp.pad(jnp.asarray(w1, jnp.float32),
                   ((0, K_PAD - K_IN), (0, H_PAD - H))).astype(jnp.bfloat16)
    b1_p = jnp.pad(jnp.asarray(b1, jnp.float32).reshape(1, H),
                   ((0, 0), (0, H_PAD - H)))
    w2_p = jnp.pad(jnp.asarray(w2, jnp.float32),
                   ((0, H_PAD - H), (0, OUT_PAD - OUT))).astype(jnp.bfloat16)
    b2_p = jnp.pad(jnp.asarray(b2, jnp.float32).reshape(1, OUT),
                   ((0, 0), (0, OUT_PAD - OUT)))
    return w1_p, b1_p, w2_p, b2_p


def ann_forward(x_nchw, packed_params, *, block_b=512):
    """x_nchw: [B, 1, 28, 28] float32, packed_params from pack_params()
    -> logits [B, 10] float32."""
    w1_p, b1_p, w2_p, b2_p = packed_params
    B = x_nchw.shape[0]
    # nn.Flatten (row-major, same as torch), then pad K and cast to bf16 for the MXU.
    x = x_nchw.reshape(B, K_IN).astype(jnp.float32)
    x_p = jnp.pad(x, ((0, 0), (0, K_PAD - K_IN))).astype(jnp.bfloat16)

    tb, b_pad = _choose_tile(B, block_b)
    if b_pad != B:
        x_p = jnp.pad(x_p, ((0, b_pad - B), (0, 0)))
    grid = (b_pad // tb,)

    out = pl.pallas_call(
        mlp_kernel,
        out_shape=jax.ShapeDtypeStruct((b_pad, OUT_PAD), jnp.float32),
        grid=grid,
        in_specs=[
            pl.BlockSpec((tb, K_PAD),      lambda i: (i, 0)),  # x tile: streamed per step
            pl.BlockSpec((K_PAD, H_PAD),   lambda i: (0, 0)),  # W1 (bf16): resident
            pl.BlockSpec((1, H_PAD),       lambda i: (0, 0)),  # b1 (f32): resident
            pl.BlockSpec((H_PAD, OUT_PAD), lambda i: (0, 0)),  # W2 (bf16): resident
            pl.BlockSpec((1, OUT_PAD),     lambda i: (0, 0)),  # b2 (f32): resident
        ],
        out_specs=pl.BlockSpec((tb, OUT_PAD), lambda i: (i, 0)),
        compiler_params=pltpu.CompilerParams(
            dimension_semantics=("parallel",),   # batch tiles independent -> 2 TCs on v7x
            vmem_limit_bytes=32 << 20,           # footprint < 8 MiB even at tb=1024
        ),
    )(x_p, w1_p, b1_p, w2_p, b2_p)

    return out[:B, :OUT]


def init_params(key):
    """Deterministic init mimicking PyTorch nn.Linear default (uniform +/- 1/sqrt(fan_in)).
    Weights are produced in [in, out] layout (already transposed vs torch's [out, in])."""
    k1, k2, k3, k4 = jax.random.split(key, 4)
    bound1 = 1.0 / (28 * 28) ** 0.5
    bound2 = 1.0 / 1000.0 ** 0.5
    w1 = jax.random.uniform(k1, (28 * 28, 1000), jnp.float32, -bound1, bound1)
    b1 = jax.random.uniform(k2, (1000,),         jnp.float32, -bound1, bound1)
    w2 = jax.random.uniform(k3, (1000, 10),      jnp.float32, -bound2, bound2)
    b2 = jax.random.uniform(k4, (10,),           jnp.float32, -bound2, bound2)
    return w1, b1, w2, b2


if __name__ == "__main__":
    key = jax.random.PRNGKey(0)
    k_x, k_p = jax.random.split(key)

    B = 2
    x = jax.random.normal(k_x, (B, 1, 28, 28), jnp.float32)   # MNIST-like NCHW input
    w1, b1, w2, b2 = init_params(k_p)

    packed = pack_params(w1, b1, w2, b2)     # one-time pre-pack (hoisted out of forward)
    out = ann_forward(x, packed)
    out = jax.block_until_ready(out)

    # Pure-JAX f32 reference; tolerance covers the deliberate bf16 MXU inputs on both layers.
    xf = x.reshape(B, 28 * 28)
    ref = jax.nn.sigmoid(xf @ w1 + b1) @ w2 + b2
    assert out.shape == (B, 10)
    assert jnp.allclose(out, ref, atol=1e-2, rtol=1e-2), "mismatch vs reference"

    print("KERNEL_OK")
</pallas_src>

<mosaic_0001>
module attributes {stable_mosaic.version = 11 : i64} {
  func.func @mlp_kernel(%arg0: i32, %arg1: memref<8x896xbf16, #tpu.memory_space<vmem>>, %arg2: memref<896x1024xbf16, #tpu.memory_space<vmem>>, %arg3: memref<1x1024xf32, #tpu.memory_space<vmem>>, %arg4: memref<1024x128xbf16, #tpu.memory_space<vmem>>, %arg5: memref<1x128xf32, #tpu.memory_space<vmem>>, %arg6: memref<8x128xf32, #tpu.memory_space<vmem>>) attributes {dimension_semantics = [#tpu.dimension_semantics<parallel>], iteration_bounds = array<i64: 1>, scalar_prefetch = 0 : i64, scratch_operands = 0 : i64, tpu.core_type = #tpu.core_type<tc>, window_params = [{transform_indices = @transform_0, window_bounds = array<i64: 8, 896>}, {pipeline_mode = #tpu.pipeline_mode<synchronous>, transform_indices = @transform_1, window_bounds = array<i64: 896, 1024>}, {pipeline_mode = #tpu.pipeline_mode<synchronous>, transform_indices = @transform_2, window_bounds = array<i64: 1, 1024>}, {pipeline_mode = #tpu.pipeline_mode<synchronous>, transform_indices = @transform_3, window_bounds = array<i64: 1024, 128>}, {pipeline_mode = #tpu.pipeline_mode<synchronous>, transform_indices = @transform_4, window_bounds = array<i64: 1, 128>}, {transform_indices = @transform_5, window_bounds = array<i64: 8, 128>}]} {
    %c0 = arith.constant 0 : index
    %c0_0 = arith.constant 0 : index
    %0 = vector.load %arg1[%c0, %c0_0] : memref<8x896xbf16, #tpu.memory_space<vmem>>, vector<8x896xbf16>
    %c0_1 = arith.constant 0 : index
    %c0_2 = arith.constant 0 : index
    %1 = vector.load %arg2[%c0_1, %c0_2] : memref<896x1024xbf16, #tpu.memory_space<vmem>>, vector<896x1024xbf16>
    %cst = arith.constant dense<0.000000e+00> : vector<8x1024xf32>
    %2 = tpu.matmul %0, %1, %cst {dimension_numbers = #tpu.dot_dimension_numbers<[1], [0], [0], [1], [0, 0, 1, 1], [], []>} : vector<8x896xbf16>, vector<896x1024xbf16>, vector<8x1024xf32> -> vector<8x1024xf32>
    %c0_3 = arith.constant 0 : index
    %c0_4 = arith.constant 0 : index
    %3 = vector.load %arg3[%c0_3, %c0_4] : memref<1x1024xf32, #tpu.memory_space<vmem>>, vector<1x1024xf32>
    %4 = vector.broadcast %3 : vector<1x1024xf32> to vector<8x1024xf32>
    %5 = arith.addf %2, %4 : vector<8x1024xf32>
    %6 = arith.negf %5 : vector<8x1024xf32>
    %7 = math.exp %6 : vector<8x1024xf32>
    %cst_5 = arith.constant 1.000000e+00 : f32
    %8 = vector.broadcast %cst_5 : f32 to vector<8x1024xf32>
    %9 = arith.addf %8, %7 : vector<8x1024xf32>
    %10 = arith.divf %8, %9 : vector<8x1024xf32>
    %11 = arith.truncf %10 : vector<8x1024xf32> to vector<8x1024xbf16>
    %c0_6 = arith.constant 0 : index
    %c0_7 = arith.constant 0 : index
    %12 = vector.load %arg4[%c0_6, %c0_7] : memref<1024x128xbf16, #tpu.memory_space<vmem>>, vector<1024x128xbf16>
    %cst_8 = arith.constant dense<0.000000e+00> : vector<8x128xf32>
    %13 = tpu.matmul %11, %12, %cst_8 {dimension_numbers = #tpu.dot_dimension_numbers<[1], [0], [0], [1], [0, 0, 1, 1], [], []>} : vector<8x1024xbf16>, vector<1024x128xbf16>, vector<8x128xf32> -> vector<8x128xf32>
    %c0_9 = arith.constant 0 : index
    %c0_10 = arith.constant 0 : index
    %14 = vector.load %arg5[%c0_9, %c0_10] : memref<1x128xf32, #tpu.memory_space<vmem>>, vector<1x128xf32>
    %15 = vector.broadcast %14 : vector<1x128xf32> to vector<8x128xf32>
    %16 = arith.addf %13, %15 : vector<8x128xf32>
    %c0_11 = arith.constant 0 : index
    %c0_12 = arith.constant 0 : index
    %17 = vector.load %arg6[%c0_11, %c0_12] : memref<8x128xf32, #tpu.memory_space<vmem>>, vector<8x128xf32>
    tpu.vector_store %arg6[%c0_11, %c0_12], %16 {strides = array<i32>} : memref<8x128xf32, #tpu.memory_space<vmem>>, vector<8x128xf32>,
    return
  }
  func.func @transform_0(%arg0: i32) -> (i32, i32) {
    %c0_i32 = arith.constant 0 : i32
    %c0_i32_0 = arith.constant 0 : i32
    return %arg0, %c0_i32 : i32, i32
  }
  func.func @transform_1(%arg0: i32) -> (i32, i32) {
    %c0_i32 = arith.constant 0 : i32
    %c0_i32_0 = arith.constant 0 : i32
    %c0_i32_1 = arith.constant 0 : i32
    return %c0_i32, %c0_i32_0 : i32, i32
  }
  func.func @transform_2(%arg0: i32) -> (i32, i32) {
    %c0_i32 = arith.constant 0 : i32
    %c0_i32_0 = arith.constant 0 : i32
    %c0_i32_1 = arith.constant 0 : i32
    return %c0_i32, %c0_i32_0 : i32, i32
  }
  func.func @transform_3(%arg0: i32) -> (i32, i32) {
    %c0_i32 = arith.constant 0 : i32
    %c0_i32_0 = arith.constant 0 : i32
    %c0_i32_1 = arith.constant 0 : i32
    return %c0_i32, %c0_i32_0 : i32, i32
  }
  func.func @transform_4(%arg0: i32) -> (i32, i32) {
    %c0_i32 = arith.constant 0 : i32
    %c0_i32_0 = arith.constant 0 : i32
    %c0_i32_1 = arith.constant 0 : i32
    return %c0_i32, %c0_i32_0 : i32, i32
  }
  func.func @transform_5(%arg0: i32) -> (i32, i32) {
    %c0_i32 = arith.constant 0 : i32
    %c0_i32_0 = arith.constant 0 : i32
    return %arg0, %c0_i32 : i32, i32
  }
}

</mosaic_0001>

<bundles_post_ra>
// kernel: tpu_custom_call.1
= control target key start
LH: loop header
LB: loop body
LE: loop exit
PB: predicated region body
PF: predicated region fallthrough
CT: control target
= control target key end

     0   :  { %10 = vsyncpa [#allocation3], 0  ;;  %s7424_s0 = inlined_call_operand.hbm [shape: bf16[8,896], index: 0, kind: input, shape index: {}]   ;;  %s7425_s1 = inlined_call_operand.hbm [shape: bf16[896,1024], index: 1, kind: input, shape index: {}]   ;;  %s7426_s2 = inlined_call_operand.hbm [shape: f32[1,1024], index: 2, kind: input, shape index: {}]   ;;  %s7427_s3 = inlined_call_operand.hbm [shape: bf16[1024,128], index: 3, kind: input, shape index: {}]   ;;  %s7428_s4 = inlined_call_operand.hbm [shape: f32[1,128], index: 4, kind: input, shape index: {}]   ;;  %s7429_s5 = inlined_call_operand.hbm [shape: f32[8,128], index: 5, kind: output, shape index: {}]  }
   0x1   :  { %11 = vsyncpa [#allocation6], 0 }
   0x2   :  { %12 = vsyncpa [#allocation9], 0  ;;  %s29_s20 = sshll.u32 %s7425_s1, 4  ;;  %s30_s20 = int_to_ptr.hbm [resolvable:$true] %s29_s20 }
   0x3   :  { %13 = vsyncpa [#allocation4], 0  ;;  %s7121_s21 = smov [#allocation5]   ;;  %s53_s25 = sshll.u32 %s7427_s3, 4  ;;  %s54_s25 = int_to_ptr.hbm [resolvable:$true] %s53_s25 }
   0x4   :  { %s31_s22 = sshll.u32 %s7121_s21, 4  ;;  %s7122_s26 = smov 512   ;;  %s32_s22 = int_to_ptr.vmem [resolvable:$true] %s31_s22 }
   0x5   :  { %s7123_s27 = smov 32   ;;  %s7124_s28 = smov [#allocation8]  }
   0x6   :  { %37 = dma.hbm_to_vmem [thread:$0]  %s30_s20, 57344, %s32_s22, [#allocation6], %s7122_s26, %s7122_s26, %s7123_s27  }
   0x7   :  { %s55_s29 = sshll.u32 %s7124_s28, 4  ;;  %s7125_s30 = smov 64   ;;  %s56_s29 = int_to_ptr.vmem [resolvable:$true] %s55_s29 }
   0x8   :  { %s7126_s6 = smov 4   ;;  %s19_s8 = sshll.u32 %s7424_s0, 4  ;;  %s20_s8 = int_to_ptr.hbm [resolvable:$true] %s19_s8 }
   0x9   :  { %61 = dma.hbm_to_vmem [thread:$0]  %s54_s25, 8192, %s56_s29, [#allocation9], %s7125_s30, %s7125_s30, %s7126_s6  }
   0xa   :  { %s7127_s9 = smov [#allocation2]   ;;  %s43_s12 = sshll.u32 %s7426_s2, 4  ;;  %s44_s12 = int_to_ptr.hbm [resolvable:$true] %s43_s12 }
   0xb   :  { %s21_s10 = sshll.u32 %s7127_s9, 4  ;;  %s7128_s13 = smov [#allocation7]   ;;  %s22_s10 = int_to_ptr.vmem [resolvable:$true] %s21_s10 }
   0xc   :  { %24 = dma.hbm_to_vmem [thread:$0]  %s20_s8, 448, %s22_s10, [#allocation3]  }
   0xd   :  { %s45_s14 = sshll.u32 %s7128_s13, 4  ;;  %s67_s17 = sshll.u32 %s7428_s4, 4  ;;  %s46_s14 = int_to_ptr.vmem [resolvable:$true] %s45_s14  ;;  %s68_s17 = int_to_ptr.hbm [resolvable:$true] %s67_s17 }
   0xe   :  { %48 = dma.hbm_to_vmem [thread:$0]  %s44_s12, 128, %s46_s14, [#allocation6]  }
   0xf   :  { %s7129_s0 = smov [#allocation10]  }
  0x10   :  { %s69_s18 = sshll.u32 %s7129_s0, 4  ;;  %s70_s18 = int_to_ptr.vmem [resolvable:$true] %s69_s18 }
  0x11   :  { %72 = dma.hbm_to_vmem [thread:$0]  %s68_s17, 16, %s70_s18, [#allocation9]  }
  0x12   :  { %7113 = dma.done.wait [#allocation3], 448  }
  0x13   :  { %7114 = vsyncadd [#allocation3], 4294966848 }
  0x14   :  { %7115 = dma.done.wait [#allocation6], 57472  }
  0x15   :  { %7116 = vsyncadd [#allocation6], 4294909824 }
  0x16   :  { %7117 = dma.done.wait [#allocation9], 8208  }
  0x17   :  { %7118 = vsyncadd [#allocation9], 4294959088  ;;  %v4582_v0 = vld [vmem:[#allocation5 + $0x1c0] sm:$0xf]  ;;  %s7130_s2 = smov [#allocation11]   ;;  %s4344_s21 = sshll.u32 %s7429_s5, 4  ;;  %s4345_s21 = int_to_ptr.hbm [resolvable:$true] %s4344_s21 }
  0x18   :  { %v6472_v1 = vld [vmem:[#allocation5 + $0x1dc] sm:$0xf0]  ;;  %s4342_s4 = sshll.u32 %s7130_s2, 4  ;;  %s4343_s4 = int_to_ptr.vmem [resolvable:$true] %s4342_s4 }
  0x19   :  { %v4838_v2 = vld [vmem:[#allocation5 + $0x3c0] sm:$0xf]  ;;  %v4583_v3 = vor.u32 %v6472_v1, %v4582_v0 }
  0x1a   :  { %v6536_v4 = vld [vmem:[#allocation5 + $0x3dc] sm:$0xf0] }
  0x1b   :  { %v5094_v5 = vld [vmem:[#allocation5 + $0x5c0] sm:$0xf]  ;;  %v4839_v7 = vor.u32 %v6536_v4, %v4838_v2  ;;  %2828 = vmatpush.bf16.msra.mxu0 %v4583_v3 }
  0x1c   :  { %v6600_v6 = vld [vmem:[#allocation5 + $0x5dc] sm:$0xf0] }
  0x1d   :  { %v5095_v8 = vor.u32 %v6600_v6, %v5094_v5  ;;  %v5350_v9 = vld [vmem:[#allocation5 + $0x7c0] sm:$0xf]  ;;  %2841 = vmatpush.bf16.msra.mxu1 %v4839_v7 }
  0x1e   :  { %v6664_v10 = vld [vmem:[#allocation5 + $0x7dc] sm:$0xf0] }
  0x1f   :  { %v4550_v11 = vld [vmem:[#allocation5 + $0x180] sm:$0xf]  ;;  %v5351_v12 = vor.u32 %v6664_v10, %v5350_v9  ;;  %2854 = vmatpush.bf16.msra.mxu2 %v5095_v8 }
  0x20   :  { %v6464_v13 = vld [vmem:[#allocation5 + $0x19c] sm:$0xf0] }
  0x21   :  { %v4806_v14 = vld [vmem:[#allocation5 + $0x380] sm:$0xf]  ;;  %v4551_v16 = vor.u32 %v6464_v13, %v4550_v11  ;;  %2867 = vmatpush.bf16.msra.mxu3 %v5351_v12 }
  0x22   :  { %v6528_v15 = vld [vmem:[#allocation5 + $0x39c] sm:$0xf0] }
  0x23   :  { %v4807_v17 = vor.u32 %v6528_v15, %v4806_v14  ;;  %v5062_v18 = vld [vmem:[#allocation5 + $0x580] sm:$0xf]  ;;  %2829 = vmatpush.bf16.msra.mxu0 %v4551_v16 }
  0x24   :  { %v6592_v19 = vld [vmem:[#allocation5 + $0x59c] sm:$0xf0] }
  0x25   :  { %v5318_v20 = vld [vmem:[#allocation5 + $0x780] sm:$0xf]  ;;  %v5063_v21 = vor.u32 %v6592_v19, %v5062_v18  ;;  %2842 = vmatpush.bf16.msra.mxu1 %v4807_v17 }
  0x26   :  { %v6656_v22 = vld [vmem:[#allocation5 + $0x79c] sm:$0xf0] }
  0x27   :  { %v4518_v23 = vld [vmem:[#allocation5 + $0x140] sm:$0xf]  ;;  %v5319_v25 = vor.u32 %v6656_v22, %v5318_v20  ;;  %2855 = vmatpush.bf16.msra.mxu2 %v5063_v21 }
  0x28   :  { %v6456_v24 = vld [vmem:[#allocation5 + $0x15c] sm:$0xf0] }
  0x29   :  { %v4774_v26 = vld [vmem:[#allocation5 + $0x340] sm:$0xf]  ;;  %v4519_v29 = vor.u32 %v6456_v24, %v4518_v23  ;;  %2868 = vmatpush.bf16.msra.mxu3 %v5319_v25 }
  0x2a   :  { %v6520_v27 = vld [vmem:[#allocation5 + $0x35c] sm:$0xf0] }
  0x2b   :  { %v5030_v28 = vld [vmem:[#allocation5 + $0x540] sm:$0xf]  ;;  %v4775_v33 = vor.u32 %v6520_v27, %v4774_v26  ;;  %2830 = vmatpush.bf16.msra.mxu0 %v4519_v29 }
  0x2c   :  { %v6584_v30 = vld [vmem:[#allocation5 + $0x55c] sm:$0xf0] }
  0x2d   :  { %v5286_v31 = vld [vmem:[#allocation5 + $0x740] sm:$0xf]  ;;  %v5031_v34 = vor.u32 %v6584_v30, %v5030_v28  ;;  %2843 = vmatpush.bf16.msra.mxu1 %v4775_v33 }
  0x2e   :  { %v6648_v32 = vld [vmem:[#allocation5 + $0x75c] sm:$0xf0] }
  0x2f   :  { %v4486_v35 = vld [vmem:[#allocation5 + $0x100] sm:$0xf]  ;;  %v5287_v38 = vor.u32 %v6648_v32, %v5286_v31  ;;  %2856 = vmatpush.bf16.msra.mxu2 %v5031_v34 }
  0x30   :  { %v6448_v36 = vld [vmem:[#allocation5 + $0x11c] sm:$0xf0] }
  0x31   :  { %v4742_v37 = vld [vmem:[#allocation5 + $0x300] sm:$0xf]  ;;  %v4487_v44 = vor.u32 %v6448_v36, %v4486_v35  ;;  %2869 = vmatpush.bf16.msra.mxu3 %v5287_v38  ;;  %v4584_v38 = vld [vmem:[#allocation5 + $0x1e0] sm:$0xf0] }
  0x32   :  { %v6512_v39 = vld [vmem:[#allocation5 + $0x31c] sm:$0xf0] }
  0x33   :  { %v4998_v40 = vld [vmem:[#allocation5 + $0x500] sm:$0xf]  ;;  %v4743_v45 = vor.u32 %v6512_v39, %v4742_v37  ;;  %2831 = vmatpush.bf16.msra.mxu0 %v4487_v44  ;;  %v6468_v37 = vld [vmem:[#allocation5 + $0x1c4] sm:$0xf] }
  0x34   :  { %v6576_v41 = vld [vmem:[#allocation5 + $0x51c] sm:$0xf0] }
  0x35   :  { %v5254_v42 = vld [vmem:[#allocation5 + $0x700] sm:$0xf]  ;;  %v4999_v46 = vor.u32 %v6576_v41, %v4998_v40  ;;  %2844 = vmatpush.bf16.msra.mxu1 %v4743_v45 }
  0x36   :  { %v6640_v43 = vld [vmem:[#allocation5 + $0x71c] sm:$0xf0] }
  0x37   :  { %v4454_v47 = vld [vmem:[#allocation5 + $0xc0] sm:$0xf]  ;;  %v5255_v50 = vor.u32 %v6640_v43, %v5254_v42  ;;  %2857 = vmatpush.bf16.msra.mxu2 %v4999_v46  ;;  %v4587_v46 = vor.u32 %v6468_v37, %v4584_v38 }
  0x38   :  { %v6440_v48 = vld [vmem:[#allocation5 + $0xdc] sm:$0xf0] }
  0x39   :  { %v4710_v49 = vld [vmem:[#allocation5 + $0x2c0] sm:$0xf]  ;;  %v4455_v56 = vor.u32 %v6440_v48, %v4454_v47  ;;  %2870 = vmatpush.bf16.msra.mxu3 %v5255_v50  ;;  %v6460_v50 = vld [vmem:[#allocation5 + $0x184] sm:$0xf] }
  0x3a   :  { %v6504_v51 = vld [vmem:[#allocation5 + $0x2dc] sm:$0xf0] }
  0x3b   :  { %v4966_v52 = vld [vmem:[#allocation5 + $0x4c0] sm:$0xf]  ;;  %v4711_v57 = vor.u32 %v6504_v51, %v4710_v49  ;;  %2832 = vmatpush.bf16.msra.mxu0 %v4455_v56  ;;  %v4552_v51 = vld [vmem:[#allocation5 + $0x1a0] sm:$0xf0] }
  0x3c   :  { %v6568_v53 = vld [vmem:[#allocation5 + $0x4dc] sm:$0xf0] }
  0x3d   :  { %v5222_v54 = vld [vmem:[#allocation5 + $0x6c0] sm:$0xf]  ;;  %v4967_v58 = vor.u32 %v6568_v53, %v4966_v52  ;;  %2845 = vmatpush.bf16.msra.mxu1 %v4711_v57  ;;  %v94_v52 = vld [vmem:[#allocation2 + $0x8] sm:$0xff] }
  0x3e   :  { %v6632_v55 = vld [vmem:[#allocation5 + $0x6dc] sm:$0xf0]  ;;  %v570_v56 = vunpack.c.h.b16 %v94_v52 }
  0x3f   :  { %v4422_v59 = vld [vmem:[#allocation5 + $0x80] sm:$0xf]  ;;  %v5223_v62 = vor.u32 %v6632_v55, %v5222_v54  ;;  %2858 = vmatpush.bf16.msra.mxu2 %v4967_v58  ;;  %v569_v55 = vunpack.c.l.b16 %v94_v52 }
  0x40   :  { %v6432_v60 = vld [vmem:[#allocation5 + $0x9c] sm:$0xf0] }
  0x41   :  { %v4678_v61 = vld [vmem:[#allocation5 + $0x280] sm:$0xf]  ;;  %v4423_v4 = vor.u32 %v6432_v60, %v4422_v59  ;;  %2871 = vmatpush.bf16.msra.mxu3 %v5223_v62  ;;  %v4555_v62 = vor.u32 %v6460_v50, %v4552_v51 }
  0x42   :  { %v6496_v63 = vld [vmem:[#allocation5 + $0x29c] sm:$0xf0] }
  0x43   :  { %v4934_v0 = vld [vmem:[#allocation5 + $0x480] sm:$0xf]  ;;  %v4679_v5 = vor.u32 %v6496_v63, %v4678_v61  ;;  %2833 = vmatpush.bf16.msra.mxu0 %v4423_v4  ;;  %v4520_v4 = vld [vmem:[#allocation5 + $0x160] sm:$0xf0] }
  0x44   :  { %v6560_v1 = vld [vmem:[#allocation5 + $0x49c] sm:$0xf0] }
  0x45   :  { %v5190_v2 = vld [vmem:[#allocation5 + $0x680] sm:$0xf]  ;;  %v4935_v6 = vor.u32 %v6560_v1, %v4934_v0  ;;  %2846 = vmatpush.bf16.msra.mxu1 %v4679_v5  ;;  %v7176_v1 = vpack.c.b16 %v569_v55, %v569_v55 }
  0x46   :  { %v6624_v3 = vld [vmem:[#allocation5 + $0x69c] sm:$0xf0] }
  0x47   :  { %v4390_v7 = vld [vmem:[#allocation5 + $0x40] sm:$0xf]  ;;  %v5191_v10 = vor.u32 %v6624_v3, %v5190_v2  ;;  %2859 = vmatpush.bf16.msra.mxu2 %v4935_v6  ;;  %v93_v2 = vld [vmem:[#allocation2] sm:$0xff] }
  0x48   :  { %v6424_v8 = vld [vmem:[#allocation5 + $0x5c] sm:$0xf0]  ;;  %v6452_v3 = vld [vmem:[#allocation5 + $0x144] sm:$0xf]  ;;  %v567_v5 = vunpack.c.l.b16 %v93_v2  ;;  %v568_v6 = vunpack.c.h.b16 %v93_v2 }
  0x49   :  { %v4646_v9 = vld [vmem:[#allocation5 + $0x240] sm:$0xf]  ;;  %v4391_v16 = vor.u32 %v6424_v8, %v4390_v7  ;;  %2872 = vmatpush.bf16.msra.mxu3 %v5191_v10 }
  0x4a   :  { %v6488_v11 = vld [vmem:[#allocation5 + $0x25c] sm:$0xf0] }
  0x4b   :  { %v4902_v12 = vld [vmem:[#allocation5 + $0x440] sm:$0xf]  ;;  %v4647_v19 = vor.u32 %v6488_v11, %v4646_v9  ;;  %2834 = vmatpush.bf16.msra.mxu0 %v4391_v16  ;;  %v7179_v9 = vpack.c.b16 %v570_v56, %v570_v56  ;;  %v4523_v16 = vor.u32 %v6452_v3, %v4520_v4  ;;  %v6420_v56 = vld [vmem:[#allocation5 + $0x44] sm:$0xf]  ;;  %v96_v4 = vld [vmem:[#allocation2 + $0x18] sm:$0xf] }
  0x4c   :  { %v6552_v13 = vld [vmem:[#allocation5 + $0x45c] sm:$0xf0] }
  0x4d   :  { %v5158_v14 = vld [vmem:[#allocation5 + $0x640] sm:$0xf]  ;;  %v4903_v20 = vor.u32 %v6552_v13, %v4902_v12  ;;  %2847 = vmatpush.bf16.msra.mxu1 %v4647_v19 }
  0x4e   :  { %v6616_v15 = vld [vmem:[#allocation5 + $0x65c] sm:$0xf0] }
  0x4f   :  { %v4358_v17 = vld [vmem:[#allocation5] sm:$0xf]  ;;  %v5159_v24 = vor.u32 %v6616_v15, %v5158_v14  ;;  %2860 = vmatpush.bf16.msra.mxu2 %v4903_v20  ;;  %v7181_v14 = vpack.c.b16 %v567_v5, %v567_v5  ;;  %v7183_v15 = vpack.c.b16 %v568_v6, %v568_v6  ;;  %v6444_v20 = vld [vmem:[#allocation5 + $0x104] sm:$0xf] }
  0x50   :  { %v6416_v18 = vld [vmem:[#allocation5 + $0x1c] sm:$0xf0]  ;;  %v6412_v6 = vld [vmem:[#allocation5 + $0x4] sm:$0xf] }
  0x51   :  { %v4614_v21 = vld [vmem:[#allocation5 + $0x200] sm:$0xf]  ;;  %v4359_v31 = vor.u32 %v6416_v18, %v4358_v17  ;;  %2873 = vmatpush.bf16.msra.mxu3 %v5159_v24 }
  0x52   :  { %v6480_v22 = vld [vmem:[#allocation5 + $0x21c] sm:$0xf0] }
  0x53   :  { %v4870_v23 = vld [vmem:[#allocation5 + $0x400] sm:$0xf]  ;;  %v4615_v35 = vor.u32 %v6480_v22, %v4614_v21  ;;  %2835 = vmatpush.bf16.msra.mxu0 %v4359_v31  ;;  %v4488_v21 = vld [vmem:[#allocation5 + $0x120] sm:$0xf0] }
  0x54   :  { %v6544_v25 = vld [vmem:[#allocation5 + $0x41c] sm:$0xf0] }
  0x55   :  { %v5126_v26 = vld [vmem:[#allocation5 + $0x600] sm:$0xf]  ;;  %v4871_v36 = vor.u32 %v6544_v25, %v4870_v23  ;;  %2848 = vmatpush.bf16.msra.mxu1 %v4615_v35 }
  0x56   :  { %v6608_v27 = vld [vmem:[#allocation5 + $0x61c] sm:$0xf0]  ;;  %2836 = vmatmul.bf16.vlgmr.msra.gmra.mxu0 %v7181_v14 }
  0x57   :  { %v5606_v28 = vld [vmem:[#allocation5 + $0x9c0] sm:$0xf]  ;;  %v5127_v39 = vor.u32 %v6608_v27, %v5126_v26  ;;  %2861 = vmatpush.bf16.msra.mxu2 %v4871_v36 }
  0x58   :  { %v6728_v29 = vld [vmem:[#allocation5 + $0x9dc] sm:$0xf0]  ;;  %2849 = vmatmul.bf16.vlgmr.msra.gmra.mxu1 %v7183_v15 }
  0x59   :  { %v5862_v30 = vld [vmem:[#allocation5 + $0xbc0] sm:$0xf]  ;;  %v5607_v40 = vor.u32 %v6728_v29, %v5606_v28  ;;  %2874 = vmatpush.bf16.msra.mxu3 %v5127_v39  ;;  %v4491_v28 = vor.u32 %v6444_v20, %v4488_v21 }
  0x5a   :  { %v6792_v32 = vld [vmem:[#allocation5 + $0xbdc] sm:$0xf0]  ;;  %2862 = vmatmul.bf16.vlgmr.msra.gmra.mxu2 %v7176_v1 }
  0x5b   :  { %v6118_v33 = vld [vmem:[#allocation5 + $0xdc0] sm:$0xf]  ;;  %v5863_v41 = vor.u32 %v6792_v32, %v5862_v30  ;;  %2880 = vmatpush.bf16.msrb.mxu0 %v5607_v40  ;;  %v6436_v32 = vld [vmem:[#allocation5 + $0xc4] sm:$0xf] }
  0x5c   :  { %v6856_v34 = vld [vmem:[#allocation5 + $0xddc] sm:$0xf0]  ;;  %2875 = vmatmul.bf16.vlgmr.msra.gmra.mxu3 %v7179_v9 }
  0x5d   :  { %v6119_v42 = vor.u32 %v6856_v34, %v6118_v33  ;;  %v5574_v43 = vld [vmem:[#allocation5 + $0x980] sm:$0xf]  ;;  %2893 = vmatpush.bf16.msrb.mxu1 %v5863_v41  ;;  %2919 = vmatpush.bf16.msrb.mxu3 %v4587_v46  ;;  %v4456_v33 = vld [vmem:[#allocation5 + $0xe0] sm:$0xf0] }
  0x5e   :  { %v6720_v44 = vld [vmem:[#allocation5 + $0x99c] sm:$0xf0]  ;;  %v4459_v40 = vor.u32 %v6436_v32, %v4456_v33  ;;  %v6588_v32 = vld [vmem:[#allocation5 + $0x584] sm:$0xf] }
  0x5f   :  { %v5830_v45 = vld [vmem:[#allocation5 + $0xb80] sm:$0xf]  ;;  %v5575_v53 = vor.u32 %v6720_v44, %v5574_v43  ;;  %2906 = vmatpush.bf16.msrb.mxu2 %v6119_v42  ;;  %v6428_v44 = vld [vmem:[#allocation5 + $0x84] sm:$0xf] }
  0x60   :  { %v6784_v47 = vld [vmem:[#allocation5 + $0xb9c] sm:$0xf0] }
  0x61   :  { %v6086_v48 = vld [vmem:[#allocation5 + $0xd80] sm:$0xf]  ;;  %v5831_v57 = vor.u32 %v6784_v47, %v5830_v45  ;;  %2881 = vmatpush.bf16.msrb.mxu0 %v5575_v53  ;;  %2920 = vmatpush.bf16.msrb.mxu3 %v4555_v62  ;;  %v4424_v45 = vld [vmem:[#allocation5 + $0xa0] sm:$0xf0] }
  0x62   :  { %v6848_v49 = vld [vmem:[#allocation5 + $0xd9c] sm:$0xf0]  ;;  %v4427_v52 = vor.u32 %v6428_v44, %v4424_v45  ;;  %v6516_v45 = vld [vmem:[#allocation5 + $0x344] sm:$0xf] }
  0x63   :  { %v5542_v54 = vld [vmem:[#allocation5 + $0x940] sm:$0xf]  ;;  %v6087_v58 = vor.u32 %v6848_v49, %v6086_v48  ;;  %2894 = vmatpush.bf16.msrb.mxu1 %v5831_v57  ;;  %v4392_v57 = vld [vmem:[#allocation5 + $0x60] sm:$0xf0] }
  0x64   :  { %v6712_v59 = vld [vmem:[#allocation5 + $0x95c] sm:$0xf0]  ;;  %v4395_v5 = vor.u32 %v6420_v56, %v4392_v57  ;;  %v6508_v57 = vld [vmem:[#allocation5 + $0x304] sm:$0xf] }
  0x65   :  { %v5798_v60 = vld [vmem:[#allocation5 + $0xb40] sm:$0xf]  ;;  %v5543_v7 = vor.u32 %v6712_v59, %v5542_v54  ;;  %2907 = vmatpush.bf16.msrb.mxu2 %v6087_v58  ;;  %2921 = vmatpush.bf16.msrb.mxu3 %v4523_v16  ;;  %v5096_v16 = vld [vmem:[#allocation5 + $0x5e0] sm:$0xf0] }
  0x66   :  { %v6776_v61 = vld [vmem:[#allocation5 + $0xb5c] sm:$0xf0] }
  0x67   :  { %v6054_v63 = vld [vmem:[#allocation5 + $0xd40] sm:$0xf]  ;;  %v5799_v8 = vor.u32 %v6776_v61, %v5798_v60  ;;  %2882 = vmatpush.bf16.msrb.mxu0 %v5543_v7  ;;  %v4360_v7 = vld [vmem:[#allocation5 + $0x20] sm:$0xf0] }
  0x68   :  { %v6840_v0 = vld [vmem:[#allocation5 + $0xd5c] sm:$0xf0] }
  0x69   :  { %v6055_v10 = vor.u32 %v6840_v0, %v6054_v63  ;;  %v5510_v11 = vld [vmem:[#allocation5 + $0x900] sm:$0xf]  ;;  %2895 = vmatpush.bf16.msrb.mxu1 %v5799_v8  ;;  %2922 = vmatpush.bf16.msrb.mxu3 %v4491_v28  ;;  %v95_v8 = vld [vmem:[#allocation2 + $0x10] sm:$0xff] }
  0x6a   :  { %v6704_v12 = vld [vmem:[#allocation5 + $0x91c] sm:$0xf0] }
  0x6b   :  { %v5766_v13 = vld [vmem:[#allocation5 + $0xb00] sm:$0xf]  ;;  %v5511_v22 = vor.u32 %v6704_v12, %v5510_v11  ;;  %2908 = vmatpush.bf16.msrb.mxu2 %v6055_v10  ;;  %v6532_v10 = vld [vmem:[#allocation5 + $0x3c4] sm:$0xf] }
  0x6c   :  { %v6768_v17 = vld [vmem:[#allocation5 + $0xb1c] sm:$0xf0]  ;;  %v4840_v11 = vld [vmem:[#allocation5 + $0x3e0] sm:$0xf0] }
  0x6d   :  { %v6022_v18 = vld [vmem:[#allocation5 + $0xd00] sm:$0xf]  ;;  %v5767_v23 = vor.u32 %v6768_v17, %v5766_v13  ;;  %2883 = vmatpush.bf16.msrb.mxu0 %v5511_v22  ;;  %2923 = vmatpush.bf16.msrb.mxu3 %v4459_v40  ;;  %v6596_v12 = vld [vmem:[#allocation5 + $0x5c4] sm:$0xf] }
  0x6e   :  { %v6832_v19 = vld [vmem:[#allocation5 + $0xd1c] sm:$0xf0]  ;;  %v6660_v17 = vld [vmem:[#allocation5 + $0x7c4] sm:$0xf]  ;;  %v5099_v28 = vor.u32 %v6596_v12, %v5096_v16 }
  0x6f   :  { %v6023_v24 = vor.u32 %v6832_v19, %v6022_v18  ;;  %v5478_v25 = vld [vmem:[#allocation5 + $0x8c0] sm:$0xf]  ;;  %2896 = vmatpush.bf16.msrb.mxu1 %v5767_v23  ;;  %v5352_v18 = vld [vmem:[#allocation5 + $0x7e0] sm:$0xf0]  ;;  %v573_v19 = vunpack.c.l.b16 %v96_v4 }
  0x70   :  { %v6696_v26 = vld [vmem:[#allocation5 + $0x8dc] sm:$0xf0]  ;;  %v6724_v22 = vld [vmem:[#allocation5 + $0x9c4] sm:$0xf] }
  0x71   :  { %v5734_v27 = vld [vmem:[#allocation5 + $0xac0] sm:$0xf]  ;;  %v5479_v34 = vor.u32 %v6696_v26, %v5478_v25  ;;  %2909 = vmatpush.bf16.msrb.mxu2 %v6023_v24  ;;  %2924 = vmatpush.bf16.msrb.mxu3 %v4427_v52  ;;  %v5608_v23 = vld [vmem:[#allocation5 + $0x9e0] sm:$0xf0]  ;;  %v571_v24 = vunpack.c.l.b16 %v95_v8  ;;  %v572_v25 = vunpack.c.h.b16 %v95_v8  ;;  %v4363_v26 = vor.u32 %v6412_v6, %v4360_v7 }
  0x72   :  { %v6760_v29 = vld [vmem:[#allocation5 + $0xadc] sm:$0xf0]  ;;  %v5611_v33 = vor.u32 %v6724_v22, %v5608_v23  ;;  %v5576_v40 = vld [vmem:[#allocation5 + $0x9a0] sm:$0xf0] }
  0x73   :  { %v5990_v30 = vld [vmem:[#allocation5 + $0xcc0] sm:$0xf]  ;;  %v5735_v35 = vor.u32 %v6760_v29, %v5734_v27  ;;  %2884 = vmatpush.bf16.msrb.mxu0 %v5479_v34  ;;  %v4843_v27 = vor.u32 %v6532_v10, %v4840_v11  ;;  %v5355_v29 = vor.u32 %v6660_v17, %v5352_v18  ;;  %v7188_v34 = vpack.c.b16 %v573_v19, %v573_v19  ;;  %v6708_v52 = vld [vmem:[#allocation5 + $0x944] sm:$0xf] }
  0x74   :  { %v6824_v31 = vld [vmem:[#allocation5 + $0xcdc] sm:$0xf0]  ;;  %v6500_v6 = vld [vmem:[#allocation5 + $0x2c4] sm:$0xf] }
  0x75   :  { %v5991_v36 = vor.u32 %v6824_v31, %v5990_v30  ;;  %v5446_v37 = vld [vmem:[#allocation5 + $0x880] sm:$0xf]  ;;  %2897 = vmatpush.bf16.msrb.mxu1 %v5735_v35  ;;  %2925 = vmatpush.bf16.msrb.mxu3 %v4395_v5  ;;  %v6524_v30 = vld [vmem:[#allocation5 + $0x384] sm:$0xf] }
  0x76   :  { %v6688_v38 = vld [vmem:[#allocation5 + $0x89c] sm:$0xf0]  ;;  %v4808_v31 = vld [vmem:[#allocation5 + $0x3a0] sm:$0xf0] }
  0x77   :  { %v5702_v39 = vld [vmem:[#allocation5 + $0xa80] sm:$0xf]  ;;  %v5447_v46 = vor.u32 %v6688_v38, %v5446_v37  ;;  %2910 = vmatpush.bf16.msrb.mxu2 %v5991_v36  ;;  %v5064_v35 = vld [vmem:[#allocation5 + $0x5a0] sm:$0xf0]  ;;  %v7190_v38 = vpack.c.b16 %v571_v24, %v571_v24 }
  0x78   :  { %v6752_v41 = vld [vmem:[#allocation5 + $0xa9c] sm:$0xf0]  ;;  %v6652_v36 = vld [vmem:[#allocation5 + $0x784] sm:$0xf] }
  0x79   :  { %v5958_v42 = vld [vmem:[#allocation5 + $0xc80] sm:$0xf]  ;;  %v5703_v47 = vor.u32 %v6752_v41, %v5702_v39  ;;  %2885 = vmatpush.bf16.msrb.mxu0 %v5447_v46  ;;  %v5320_v37 = vld [vmem:[#allocation5 + $0x7a0] sm:$0xf0]  ;;  %v7192_v41 = vpack.c.b16 %v572_v25, %v572_v25  ;;  %2926 = vmatpush.bf16.msrb.mxu3 %v4363_v26 }
  0x7a   :  { %v6816_v43 = vld [vmem:[#allocation5 + $0xc9c] sm:$0xf0]  ;;  %v6716_v39 = vld [vmem:[#allocation5 + $0x984] sm:$0xf]  ;;  %v5323_v44 = vor.u32 %v6652_v36, %v5320_v37 }
  0x7b   :  { %v5959_v48 = vor.u32 %v6816_v43, %v5958_v42  ;;  %v5414_v49 = vld [vmem:[#allocation5 + $0x840] sm:$0xf]  ;;  %2898 = vmatpush.bf16.msrb.mxu1 %v5703_v47  ;;  %v4811_v42 = vor.u32 %v6524_v30, %v4808_v31  ;;  %v5067_v43 = vor.u32 %v6588_v32, %v5064_v35  ;;  %v4776_v46 = vld [vmem:[#allocation5 + $0x360] sm:$0xf0] }
  0x7c   :  { %v6680_v50 = vld [vmem:[#allocation5 + $0x85c] sm:$0xf0]  ;;  %v6580_v47 = vld [vmem:[#allocation5 + $0x544] sm:$0xf]  ;;  %2927 = vmatmul.bf16.vlgmr.msrb.gmra.mxu3 %v7181_v14 }
  0x7d   :  { %v5670_v51 = vld [vmem:[#allocation5 + $0xa40] sm:$0xf]  ;;  %v5415_v59 = vor.u32 %v6680_v50, %v5414_v49  ;;  %2911 = vmatpush.bf16.msrb.mxu2 %v5959_v48  ;;  %2971 = vmatpush.bf16.msra.mxu3 %v5611_v33  ;;  %v5579_v48 = vor.u32 %v6716_v39, %v5576_v40  ;;  %v5032_v49 = vld [vmem:[#allocation5 + $0x560] sm:$0xf0] }
  0x7e   :  { %v6744_v53 = vld [vmem:[#allocation5 + $0xa5c] sm:$0xf0]  ;;  %v6644_v50 = vld [vmem:[#allocation5 + $0x744] sm:$0xf] }
  0x7f   :  { %v5926_v54 = vld [vmem:[#allocation5 + $0xc40] sm:$0xf]  ;;  %v5671_v63 = vor.u32 %v6744_v53, %v5670_v51  ;;  %2886 = vmatpush.bf16.msrb.mxu0 %v5415_v59  ;;  %v5288_v51 = vld [vmem:[#allocation5 + $0x760] sm:$0xf0] }
  0x80   :  { %v6808_v55 = vld [vmem:[#allocation5 + $0xc5c] sm:$0xf0]  ;;  %v5544_v53 = vld [vmem:[#allocation5 + $0x960] sm:$0xf0]  ;;  %v5291_v56 = vor.u32 %v6644_v50, %v5288_v51 }
  0x81   :  { %v5382_v58 = vld [vmem:[#allocation5 + $0x800] sm:$0xf]  ;;  %v5927_v0 = vor.u32 %v6808_v55, %v5926_v54  ;;  %2899 = vmatpush.bf16.msrb.mxu1 %v5671_v63  ;;  %v4779_v54 = vor.u32 %v6516_v45, %v4776_v46  ;;  %v5035_v55 = vor.u32 %v6580_v47, %v5032_v49  ;;  %v6572_v59 = vld [vmem:[#allocation5 + $0x504] sm:$0xf]  ;;  %2972 = vmatpush.bf16.msra.mxu3 %v5579_v48 }
  0x82   :  { %v6672_v60 = vld [vmem:[#allocation5 + $0x81c] sm:$0xf0]  ;;  %v5256_v63 = vld [vmem:[#allocation5 + $0x720] sm:$0xf0] }
  0x83   :  { %v5638_v61 = vld [vmem:[#allocation5 + $0xa00] sm:$0xf]  ;;  %v5383_v13 = vor.u32 %v6672_v60, %v5382_v58  ;;  %2912 = vmatpush.bf16.msrb.mxu2 %v5927_v0  ;;  %v4744_v58 = vld [vmem:[#allocation5 + $0x320] sm:$0xf0]  ;;  %v5547_v60 = vor.u32 %v6708_v52, %v5544_v53 }
  0x84   :  { %v6736_v62 = vld [vmem:[#allocation5 + $0xa1c] sm:$0xf0]  ;;  %v6700_v0 = vld [vmem:[#allocation5 + $0x904] sm:$0xf] }
  0x85   :  { %v5894_v2 = vld [vmem:[#allocation5 + $0xc00] sm:$0xf]  ;;  %v5639_v20 = vor.u32 %v6736_v62, %v5638_v61  ;;  %2887 = vmatpush.bf16.msrb.mxu0 %v5383_v13  ;;  %v5000_v61 = vld [vmem:[#allocation5 + $0x520] sm:$0xf0]  ;;  %2973 = vmatpush.bf16.msra.mxu3 %v5547_v60 }
  0x86   :  { %v6800_v3 = vld [vmem:[#allocation5 + $0xc1c] sm:$0xf0]  ;;  %v6636_v62 = vld [vmem:[#allocation5 + $0x704] sm:$0xf]  ;;  %v5003_v4 = vor.u32 %v6572_v59, %v5000_v61 }
  0x87   :  { %v5895_v21 = vor.u32 %v6800_v3, %v5894_v2  ;;  %2900 = vmatpush.bf16.msrb.mxu1 %v5639_v20  ;;  %v5512_v2 = vld [vmem:[#allocation5 + $0x920] sm:$0xf0]  ;;  %v4747_v3 = vor.u32 %v6508_v57, %v4744_v58  ;;  %v5259_v5 = vor.u32 %v6636_v62, %v5256_v63  ;;  %v4590_v62 = vld [vmem:[#allocation5 + $0x1c8] sm:$0xf] }
  0x88   :  { %2888 = vmatmul.bf16.vlgmr.msrb.gmra.mxu0 %v7190_v38  ;;  %v4712_v7 = vld [vmem:[#allocation5 + $0x2e0] sm:$0xf0]  ;;  %v5515_v10 = vor.u32 %v6700_v0, %v5512_v2  ;;  %v6473_v63 = vld [vmem:[#allocation5 + $0x1e4] sm:$0xf0] }
  0x89   :  { %2913 = vmatpush.bf16.msrb.mxu2 %v5895_v21  ;;  %2932 = vmatpush.bf16.msra.mxu0 %v4843_v27  ;;  %v6564_v8 = vld [vmem:[#allocation5 + $0x4c4] sm:$0xf]  ;;  %v4715_v18 = vor.u32 %v6500_v6, %v4712_v7 }
  0x8a   :  { %2901 = vmatmul.bf16.vlgmr.msrb.gmra.mxu1 %v7192_v41  ;;  %v4968_v11 = vld [vmem:[#allocation5 + $0x4e0] sm:$0xf0]  ;;  %2974 = vmatpush.bf16.msra.mxu3 %v5515_v10 }
  0x8b   :  { %2945 = vmatpush.bf16.msra.mxu1 %v5099_v28  ;;  %v6628_v12 = vld [vmem:[#allocation5 + $0x6c4] sm:$0xf]  ;;  %v4971_v19 = vor.u32 %v6564_v8, %v4968_v11  ;;  %v4591_v8 = vor.u32 %v6473_v63, %v4590_v62 }
  0x8c   :  { %2914 = vmatmul.bf16.vlgmr.msrb.gmra.mxu2 %v7188_v34  ;;  %v5224_v13 = vld [vmem:[#allocation5 + $0x6e0] sm:$0xf0] }
  0x8d   :  { %2958 = vmatpush.bf16.msra.mxu2 %v5355_v29  ;;  %2933 = vmatpush.bf16.msra.mxu0 %v4811_v42  ;;  %v6692_v16 = vld [vmem:[#allocation5 + $0x8c4] sm:$0xf]  ;;  %v5227_v20 = vor.u32 %v6628_v12, %v5224_v13 }
  0x8e   :  { %v5480_v17 = vld [vmem:[#allocation5 + $0x8e0] sm:$0xf0] }
  0x8f   :  { %2946 = vmatpush.bf16.msra.mxu1 %v5067_v43  ;;  %v6492_v21 = vld [vmem:[#allocation5 + $0x284] sm:$0xf]  ;;  %v5483_v24 = vor.u32 %v6692_v16, %v5480_v17  ;;  %v4558_v17 = vld [vmem:[#allocation5 + $0x188] sm:$0xf] }
  0x90   :  { %v4680_v22 = vld [vmem:[#allocation5 + $0x2a0] sm:$0xf0] }
  0x91   :  { %2959 = vmatpush.bf16.msra.mxu2 %v5323_v44  ;;  %2934 = vmatpush.bf16.msra.mxu0 %v4779_v54  ;;  %v6556_v23 = vld [vmem:[#allocation5 + $0x484] sm:$0xf]  ;;  %v4683_v30 = vor.u32 %v6492_v21, %v4680_v22 }
  0x92   :  { %v4936_v25 = vld [vmem:[#allocation5 + $0x4a0] sm:$0xf0]  ;;  %2975 = vmatpush.bf16.msra.mxu3 %v5483_v24 }
  0x93   :  { %2947 = vmatpush.bf16.msra.mxu1 %v5035_v55  ;;  %v6620_v26 = vld [vmem:[#allocation5 + $0x684] sm:$0xf]  ;;  %v4939_v31 = vor.u32 %v6556_v23, %v4936_v25 }
  0x94   :  { %v5192_v27 = vld [vmem:[#allocation5 + $0x6a0] sm:$0xf0] }
  0x95   :  { %2960 = vmatpush.bf16.msra.mxu2 %v5291_v56  ;;  %2935 = vmatpush.bf16.msra.mxu0 %v4747_v3  ;;  %v6684_v28 = vld [vmem:[#allocation5 + $0x884] sm:$0xf]  ;;  %v5195_v32 = vor.u32 %v6620_v26, %v5192_v27  ;;  %v4846_v3 = vld [vmem:[#allocation5 + $0x3c8] sm:$0xf] }
  0x96   :  { %v5448_v29 = vld [vmem:[#allocation5 + $0x8a0] sm:$0xf0] }
  0x97   :  { %2948 = vmatpush.bf16.msra.mxu1 %v5003_v4  ;;  %v6484_v33 = vld [vmem:[#allocation5 + $0x244] sm:$0xf]  ;;  %v5451_v37 = vor.u32 %v6684_v28, %v5448_v29  ;;  %v6537_v4 = vld [vmem:[#allocation5 + $0x3e4] sm:$0xf0] }
  0x98   :  { %v4648_v35 = vld [vmem:[#allocation5 + $0x260] sm:$0xf0]  ;;  %v4847_v13 = vor.u32 %v6537_v4, %v4846_v3  ;;  %v4526_v29 = vld [vmem:[#allocation5 + $0x148] sm:$0xf] }
  0x99   :  { %2961 = vmatpush.bf16.msra.mxu2 %v5259_v5  ;;  %2936 = vmatpush.bf16.msra.mxu0 %v4715_v18  ;;  %v6548_v36 = vld [vmem:[#allocation5 + $0x444] sm:$0xf]  ;;  %v4651_v45 = vor.u32 %v6484_v33, %v4648_v35  ;;  %v6465_v18 = vld [vmem:[#allocation5 + $0x1a4] sm:$0xf0] }
  0x9a   :  { %v4904_v39 = vld [vmem:[#allocation5 + $0x460] sm:$0xf0]  ;;  %2976 = vmatpush.bf16.msra.mxu3 %v5451_v37  ;;  %v4559_v23 = vor.u32 %v6465_v18, %v4558_v17 }
  0x9b   :  { %2949 = vmatpush.bf16.msra.mxu1 %v4971_v19  ;;  %v6612_v40 = vld [vmem:[#allocation5 + $0x644] sm:$0xf]  ;;  %v4907_v48 = vor.u32 %v6548_v36, %v4904_v39  ;;  %v4814_v19 = vld [vmem:[#allocation5 + $0x388] sm:$0xf] }
  0x9c   :  { %v5160_v42 = vld [vmem:[#allocation5 + $0x660] sm:$0xf0] }
  0x9d   :  { %2962 = vmatpush.bf16.msra.mxu2 %v5227_v20  ;;  %v6676_v43 = vld [vmem:[#allocation5 + $0x844] sm:$0xf]  ;;  %2937 = vmatpush.bf16.msra.mxu0 %v4683_v30  ;;  %v5163_v49 = vor.u32 %v6612_v40, %v5160_v42  ;;  %v6529_v20 = vld [vmem:[#allocation5 + $0x3a4] sm:$0xf0] }
  0x9e   :  { %v5416_v44 = vld [vmem:[#allocation5 + $0x860] sm:$0xf0]  ;;  %v4815_v27 = vor.u32 %v6529_v20, %v4814_v19  ;;  %v6457_v30 = vld [vmem:[#allocation5 + $0x164] sm:$0xf0] }
  0x9f   :  { %v6476_v46 = vld [vmem:[#allocation5 + $0x204] sm:$0xf]  ;;  %2950 = vmatpush.bf16.msra.mxu1 %v4939_v31  ;;  %v5419_v53 = vor.u32 %v6676_v43, %v5416_v44  ;;  %v4782_v31 = vld [vmem:[#allocation5 + $0x348] sm:$0xf]  ;;  %v4527_v36 = vor.u32 %v6457_v30, %v4526_v29 }
  0xa0   :  { %v4616_v47 = vld [vmem:[#allocation5 + $0x220] sm:$0xf0]  ;;  %v4494_v44 = vld [vmem:[#allocation5 + $0x108] sm:$0xf] }
  0xa1   :  { %2963 = vmatpush.bf16.msra.mxu2 %v5195_v32  ;;  %v6540_v50 = vld [vmem:[#allocation5 + $0x404] sm:$0xf]  ;;  %2938 = vmatpush.bf16.msra.mxu0 %v4651_v45  ;;  %v4619_v60 = vor.u32 %v6476_v46, %v4616_v47  ;;  %v6521_v32 = vld [vmem:[#allocation5 + $0x364] sm:$0xf0] }
  0xa2   :  { %v4872_v51 = vld [vmem:[#allocation5 + $0x420] sm:$0xf0]  ;;  %2977 = vmatpush.bf16.msra.mxu3 %v5419_v53  ;;  %v4783_v42 = vor.u32 %v6521_v32, %v4782_v31  ;;  %v6449_v45 = vld [vmem:[#allocation5 + $0x124] sm:$0xf0] }
  0xa3   :  { %v6604_v52 = vld [vmem:[#allocation5 + $0x604] sm:$0xf]  ;;  %2951 = vmatpush.bf16.msra.mxu1 %v4907_v48  ;;  %v4875_v0 = vor.u32 %v6540_v50, %v4872_v51  ;;  %v4750_v46 = vld [vmem:[#allocation5 + $0x308] sm:$0xf]  ;;  %v4495_v50 = vor.u32 %v6449_v45, %v4494_v44 }
  0xa4   :  { %v5128_v54 = vld [vmem:[#allocation5 + $0x620] sm:$0xf0]  ;;  %v6513_v47 = vld [vmem:[#allocation5 + $0x324] sm:$0xf0] }
  0xa5   :  { %v6668_v55 = vld [vmem:[#allocation5 + $0x804] sm:$0xf]  ;;  %2964 = vmatpush.bf16.msra.mxu2 %v5163_v49  ;;  %v5131_v2 = vor.u32 %v6604_v52, %v5128_v54  ;;  %2939 = vmatpush.bf16.msra.mxu0 %v4619_v60  ;;  %v4751_v54 = vor.u32 %v6513_v47, %v4750_v46  ;;  %v4398_v20 = vld [vmem:[#allocation5 + $0x48] sm:$0xf] }
  0xa6   :  { %v5384_v56 = vld [vmem:[#allocation5 + $0x820] sm:$0xf0]  ;;  %v4366_v31 = vld [vmem:[#allocation5 + $0x8] sm:$0xf] }
  0xa7   :  { %v6788_v57 = vld [vmem:[#allocation5 + $0xbc4] sm:$0xf]  ;;  %v5387_v5 = vor.u32 %v6668_v55, %v5384_v56  ;;  %2952 = vmatpush.bf16.msra.mxu1 %v4875_v0  ;;  %v4462_v56 = vld [vmem:[#allocation5 + $0xc8] sm:$0xf] }
  0xa8   :  { %v5864_v58 = vld [vmem:[#allocation5 + $0xbe0] sm:$0xf0]  ;;  %2940 = vmatmul.bf16.vlgmr.msra.gmra.mxu0 %v7183_v15  ;;  %v5614_v44 = vld [vmem:[#allocation5 + $0x9c8] sm:$0xf] }
  0xa9   :  { %v6852_v59 = vld [vmem:[#allocation5 + $0xdc4] sm:$0xf]  ;;  %v5867_v6 = vor.u32 %v6788_v57, %v5864_v58  ;;  %2965 = vmatpush.bf16.msra.mxu2 %v5131_v2  ;;  %2978 = vmatpush.bf16.msra.mxu3 %v5387_v5  ;;  %v6441_v57 = vld [vmem:[#allocation5 + $0xe4] sm:$0xf0] }
  0xaa   :  { %v6120_v61 = vld [vmem:[#allocation5 + $0xde0] sm:$0xf0]  ;;  %2953 = vmatmul.bf16.vlgmr.msra.gmra.mxu1 %v7176_v1  ;;  %v4718_v58 = vld [vmem:[#allocation5 + $0x2c8] sm:$0xf]  ;;  %v4463_v62 = vor.u32 %v6441_v57, %v4462_v56 }
  0xab   :  { %v6123_v7 = vor.u32 %v6852_v59, %v6120_v61  ;;  %v6780_v10 = vld [vmem:[#allocation5 + $0xb84] sm:$0xf]  ;;  %2984 = vmatpush.bf16.msrb.mxu0 %v5867_v6  ;;  %v6505_v59 = vld [vmem:[#allocation5 + $0x2e4] sm:$0xf0] }
  0xac   :  { %v5832_v11 = vld [vmem:[#allocation5 + $0xba0] sm:$0xf0]  ;;  %2966 = vmatmul.bf16.vlgmr.msra.gmra.mxu2 %v7179_v9  ;;  %2979 = vmatmul.bf16.vlgmr.msra.gmra.mxu3 %v7190_v38  ;;  %v4719_v3 = vor.u32 %v6505_v59, %v4718_v58  ;;  %v4430_v5 = vld [vmem:[#allocation5 + $0x88] sm:$0xf] }
  0xad   :  { %v6844_v12 = vld [vmem:[#allocation5 + $0xd84] sm:$0xf]  ;;  %v5835_v21 = vor.u32 %v6780_v10, %v5832_v11  ;;  %2997 = vmatpush.bf16.msrb.mxu1 %v6123_v7  ;;  %3010 = vmatpush.bf16.msrb.mxu2 %v4591_v8  ;;  %v6433_v6 = vld [vmem:[#allocation5 + $0xa4] sm:$0xf0] }
  0xae   :  { %v6088_v16 = vld [vmem:[#allocation5 + $0xda0] sm:$0xf0]  ;;  %3023 = vmatpush.bf16.msrb.mxu3 %v4847_v13  ;;  %v4686_v7 = vld [vmem:[#allocation5 + $0x288] sm:$0xf] }
  0xaf   :  { %v6091_v22 = vor.u32 %v6844_v12, %v6088_v16  ;;  %v6772_v24 = vld [vmem:[#allocation5 + $0xb44] sm:$0xf]  ;;  %2985 = vmatpush.bf16.msrb.mxu0 %v5835_v21  ;;  %v6497_v8 = vld [vmem:[#allocation5 + $0x2a4] sm:$0xf0]  ;;  %v4431_v12 = vor.u32 %v6433_v6, %v4430_v5 }
  0xb0   :  { %v5800_v25 = vld [vmem:[#allocation5 + $0xb60] sm:$0xf0]  ;;  %v4687_v18 = vor.u32 %v6497_v8, %v4686_v7  ;;  %v6425_v21 = vld [vmem:[#allocation5 + $0x64] sm:$0xf0] }
  0xb1   :  { %v6836_v26 = vld [vmem:[#allocation5 + $0xd44] sm:$0xf]  ;;  %v5803_v33 = vor.u32 %v6772_v24, %v5800_v25  ;;  %2998 = vmatpush.bf16.msrb.mxu1 %v6091_v22  ;;  %3011 = vmatpush.bf16.msrb.mxu2 %v4559_v23  ;;  %v4654_v22 = vld [vmem:[#allocation5 + $0x248] sm:$0xf] }
  0xb2   :  { %v6056_v28 = vld [vmem:[#allocation5 + $0xd60] sm:$0xf0]  ;;  %3024 = vmatpush.bf16.msrb.mxu3 %v4815_v27  ;;  %v6489_v23 = vld [vmem:[#allocation5 + $0x264] sm:$0xf0] }
  0xb3   :  { %v6059_v35 = vor.u32 %v6836_v26, %v6056_v28  ;;  %v6764_v37 = vld [vmem:[#allocation5 + $0xb04] sm:$0xf]  ;;  %2986 = vmatpush.bf16.msrb.mxu0 %v5803_v33  ;;  %v4399_v28 = vor.u32 %v6425_v21, %v4398_v20  ;;  %v4655_v32 = vor.u32 %v6489_v23, %v4654_v22  ;;  %v6417_v33 = vld [vmem:[#allocation5 + $0x24] sm:$0xf0] }
  0xb4   :  { %v5768_v39 = vld [vmem:[#allocation5 + $0xb20] sm:$0xf0]  ;;  %v6729_v45 = vld [vmem:[#allocation5 + $0x9e4] sm:$0xf0]  ;;  %v4367_v47 = vor.u32 %v6417_v33, %v4366_v31 }
  0xb5   :  { %v6828_v40 = vld [vmem:[#allocation5 + $0xd04] sm:$0xf]  ;;  %v5771_v48 = vor.u32 %v6764_v37, %v5768_v39  ;;  %2999 = vmatpush.bf16.msrb.mxu1 %v6059_v35  ;;  %3012 = vmatpush.bf16.msrb.mxu2 %v4527_v36  ;;  %v4622_v35 = vld [vmem:[#allocation5 + $0x208] sm:$0xf] }
  0xb6   :  { %v6024_v43 = vld [vmem:[#allocation5 + $0xd20] sm:$0xf0]  ;;  %3025 = vmatpush.bf16.msrb.mxu3 %v4783_v42  ;;  %v6481_v36 = vld [vmem:[#allocation5 + $0x224] sm:$0xf0] }
  0xb7   :  { %v6027_v49 = vor.u32 %v6828_v40, %v6024_v43  ;;  %v6756_v51 = vld [vmem:[#allocation5 + $0xac4] sm:$0xf]  ;;  %2987 = vmatpush.bf16.msrb.mxu0 %v5771_v48  ;;  %v5102_v37 = vld [vmem:[#allocation5 + $0x5c8] sm:$0xf] }
  0xb8   :  { %v5736_v52 = vld [vmem:[#allocation5 + $0xae0] sm:$0xf0]  ;;  %v6601_v39 = vld [vmem:[#allocation5 + $0x5e4] sm:$0xf0] }
  0xb9   :  { %v6820_v53 = vld [vmem:[#allocation5 + $0xcc4] sm:$0xf]  ;;  %v5739_v60 = vor.u32 %v6756_v51, %v5736_v52  ;;  %3000 = vmatpush.bf16.msrb.mxu1 %v6027_v49  ;;  %3013 = vmatpush.bf16.msrb.mxu2 %v4495_v50  ;;  %v5358_v40 = vld [vmem:[#allocation5 + $0x7c8] sm:$0xf]  ;;  %v4623_v50 = vor.u32 %v6481_v36, %v4622_v35  ;;  %v5103_v51 = vor.u32 %v6601_v39, %v5102_v37 }
  0xba   :  { %v5992_v55 = vld [vmem:[#allocation5 + $0xce0] sm:$0xf0]  ;;  %3026 = vmatpush.bf16.msrb.mxu3 %v4751_v54  ;;  %v6665_v43 = vld [vmem:[#allocation5 + $0x7e4] sm:$0xf0] }
  0xbb   :  { %v5995_v61 = vor.u32 %v6820_v53, %v5992_v55  ;;  %v6748_v63 = vld [vmem:[#allocation5 + $0xa84] sm:$0xf]  ;;  %2988 = vmatpush.bf16.msrb.mxu0 %v5739_v60  ;;  %v5870_v48 = vld [vmem:[#allocation5 + $0xbc8] sm:$0xf]  ;;  %v5359_v52 = vor.u32 %v6665_v43, %v5358_v40  ;;  %v5615_v53 = vor.u32 %v6729_v45, %v5614_v44 }
  0xbc   :  { %v5704_v0 = vld [vmem:[#allocation5 + $0xaa0] sm:$0xf0]  ;;  %v6793_v49 = vld [vmem:[#allocation5 + $0xbe4] sm:$0xf0] }
  0xbd   :  { %v6812_v2 = vld [vmem:[#allocation5 + $0xc84] sm:$0xf]  ;;  %v5707_v10 = vor.u32 %v6748_v63, %v5704_v0  ;;  %3001 = vmatpush.bf16.msrb.mxu1 %v5995_v61  ;;  %3014 = vmatpush.bf16.msrb.mxu2 %v4463_v62  ;;  %v5070_v54 = vld [vmem:[#allocation5 + $0x588] sm:$0xf]  ;;  %v5871_v57 = vor.u32 %v6793_v49, %v5870_v48 }
  0xbe   :  { %v5960_v4 = vld [vmem:[#allocation5 + $0xca0] sm:$0xf0]  ;;  %3027 = vmatpush.bf16.msrb.mxu3 %v4719_v3  ;;  %v6593_v55 = vld [vmem:[#allocation5 + $0x5a4] sm:$0xf0] }
  0xbf   :  { %v5963_v11 = vor.u32 %v6812_v2, %v5960_v4  ;;  %v6740_v13 = vld [vmem:[#allocation5 + $0xa44] sm:$0xf]  ;;  %2989 = vmatpush.bf16.msrb.mxu0 %v5707_v10  ;;  %v5326_v56 = vld [vmem:[#allocation5 + $0x788] sm:$0xf]  ;;  %v5071_v63 = vor.u32 %v6593_v55, %v5070_v54 }
  0xc0   :  { %v5672_v16 = vld [vmem:[#allocation5 + $0xa60] sm:$0xf0]  ;;  %v6657_v58 = vld [vmem:[#allocation5 + $0x7a4] sm:$0xf0] }
  0xc1   :  { %v6804_v17 = vld [vmem:[#allocation5 + $0xc44] sm:$0xf]  ;;  %v5675_v24 = vor.u32 %v6740_v13, %v5672_v16  ;;  %3002 = vmatpush.bf16.msrb.mxu1 %v5963_v11  ;;  %3015 = vmatpush.bf16.msrb.mxu2 %v4431_v12  ;;  %v5582_v59 = vld [vmem:[#allocation5 + $0x988] sm:$0xf]  ;;  %v5327_v0 = vor.u32 %v6657_v58, %v5326_v56 }
  0xc2   :  { %v5928_v19 = vld [vmem:[#allocation5 + $0xc60] sm:$0xf0]  ;;  %3028 = vmatpush.bf16.msrb.mxu3 %v4687_v18  ;;  %v6721_v60 = vld [vmem:[#allocation5 + $0x9a4] sm:$0xf0] }
  0xc3   :  { %v6732_v25 = vld [vmem:[#allocation5 + $0xa04] sm:$0xf]  ;;  %v5931_v27 = vor.u32 %v6804_v17, %v5928_v19  ;;  %2990 = vmatpush.bf16.msrb.mxu0 %v5675_v24  ;;  %v5838_v61 = vld [vmem:[#allocation5 + $0xb88] sm:$0xf]  ;;  %v5583_v2 = vor.u32 %v6721_v60, %v5582_v59 }
  0xc4   :  { %v5640_v26 = vld [vmem:[#allocation5 + $0xa20] sm:$0xf0]  ;;  %v6785_v62 = vld [vmem:[#allocation5 + $0xba4] sm:$0xf0] }
  0xc5   :  { %v6796_v29 = vld [vmem:[#allocation5 + $0xc04] sm:$0xf]  ;;  %v5643_v42 = vor.u32 %v6732_v25, %v5640_v26  ;;  %3003 = vmatpush.bf16.msrb.mxu1 %v5931_v27  ;;  %3016 = vmatpush.bf16.msrb.mxu2 %v4399_v28  ;;  %v5038_v3 = vld [vmem:[#allocation5 + $0x548] sm:$0xf]  ;;  %v5839_v6 = vor.u32 %v6785_v62, %v5838_v61 }
  0xc6   :  { %v5896_v30 = vld [vmem:[#allocation5 + $0xc20] sm:$0xf0]  ;;  %3029 = vmatpush.bf16.msrb.mxu3 %v4655_v32  ;;  %v6585_v4 = vld [vmem:[#allocation5 + $0x564] sm:$0xf0] }
  0xc7   :  { %v5899_v46 = vor.u32 %v6796_v29, %v5896_v30  ;;  %2991 = vmatpush.bf16.msrb.mxu0 %v5643_v42  ;;  %v5294_v5 = vld [vmem:[#allocation5 + $0x748] sm:$0xf]  ;;  %v5039_v13 = vor.u32 %v6585_v4, %v5038_v3 }
  0xc8   :  { %v6649_v7 = vld [vmem:[#allocation5 + $0x764] sm:$0xf0] }
  0xc9   :  { %3004 = vmatpush.bf16.msrb.mxu1 %v5899_v46  ;;  %3017 = vmatpush.bf16.msrb.mxu2 %v4367_v47  ;;  %v5550_v8 = vld [vmem:[#allocation5 + $0x948] sm:$0xf]  ;;  %v5295_v16 = vor.u32 %v6649_v7, %v5294_v5 }
  0xca   :  { %3030 = vmatpush.bf16.msrb.mxu3 %v4623_v50  ;;  %2992 = vmatmul.bf16.vlgmr.msrb.gmra.mxu0 %v7192_v41  ;;  %v6713_v10 = vld [vmem:[#allocation5 + $0x964] sm:$0xf0] }
  0xcb   :  { %3036 = vmatpush.bf16.msra.mxu0 %v5103_v51  ;;  %v5806_v11 = vld [vmem:[#allocation5 + $0xb48] sm:$0xf]  ;;  %v5551_v17 = vor.u32 %v6713_v10, %v5550_v8 }
  0xcc   :  { %3005 = vmatmul.bf16.vlgmr.msrb.gmra.mxu1 %v7188_v34  ;;  %v6777_v12 = vld [vmem:[#allocation5 + $0xb64] sm:$0xf0]  ;;  %3018 = vmatmul.bf16.vlgmr.msrb.gmra.mxu2 %v7181_v14 }
  0xcd   :  { %3049 = vmatpush.bf16.msra.mxu1 %v5359_v52  ;;  %3062 = vmatpush.bf16.msra.mxu2 %v5615_v53  ;;  %v5006_v18 = vld [vmem:[#allocation5 + $0x508] sm:$0xf]  ;;  %v5807_v21 = vor.u32 %v6777_v12, %v5806_v11 }
  0xce   :  { %3075 = vmatpush.bf16.msra.mxu3 %v5871_v57  ;;  %v6577_v19 = vld [vmem:[#allocation5 + $0x524] sm:$0xf0] }
  0xcf   :  { %3037 = vmatpush.bf16.msra.mxu0 %v5071_v63  ;;  %3031 = vmatmul.bf16.vlgmr.msrb.gmra.mxu3 %v7183_v15  ;;  %v5262_v20 = vld [vmem:[#allocation5 + $0x708] sm:$0xf]  ;;  %v5007_v27 = vor.u32 %v6577_v19, %v5006_v18 }
  0xd0   :  { %v6641_v22 = vld [vmem:[#allocation5 + $0x724] sm:$0xf0] }
  0xd1   :  { %3050 = vmatpush.bf16.msra.mxu1 %v5327_v0  ;;  %3063 = vmatpush.bf16.msra.mxu2 %v5583_v2  ;;  %v5518_v23 = vld [vmem:[#allocation5 + $0x908] sm:$0xf]  ;;  %v5263_v28 = vor.u32 %v6641_v22, %v5262_v20  ;;  %v6469_v20 = vld [vmem:[#allocation5 + $0x1cc] sm:$0xf] }
  0xd2   :  { %3076 = vmatpush.bf16.msra.mxu3 %v5839_v6  ;;  %v6705_v24 = vld [vmem:[#allocation5 + $0x924] sm:$0xf0]  ;;  %v4592_v22 = vld [vmem:[#allocation5 + $0x1e8] sm:$0xf0] }
  0xd3   :  { %v5774_v25 = vld [vmem:[#allocation5 + $0xb08] sm:$0xf]  ;;  %3038 = vmatpush.bf16.msra.mxu0 %v5039_v13  ;;  %v5519_v29 = vor.u32 %v6705_v24, %v5518_v23  ;;  %v6533_v23 = vld [vmem:[#allocation5 + $0x3cc] sm:$0xf] }
  0xd4   :  { %v6769_v26 = vld [vmem:[#allocation5 + $0xb24] sm:$0xf0]  ;;  %v4848_v24 = vld [vmem:[#allocation5 + $0x3e8] sm:$0xf0] }
  0xd5   :  { %3051 = vmatpush.bf16.msra.mxu1 %v5295_v16  ;;  %3064 = vmatpush.bf16.msra.mxu2 %v5551_v17  ;;  %v4974_v30 = vld [vmem:[#allocation5 + $0x4c8] sm:$0xf]  ;;  %v5775_v33 = vor.u32 %v6769_v26, %v5774_v25 }
  0xd6   :  { %v6569_v31 = vld [vmem:[#allocation5 + $0x4e4] sm:$0xf0]  ;;  %3077 = vmatpush.bf16.msra.mxu3 %v5807_v21 }
  0xd7   :  { %v5230_v32 = vld [vmem:[#allocation5 + $0x6c8] sm:$0xf]  ;;  %3039 = vmatpush.bf16.msra.mxu0 %v5007_v27  ;;  %v4975_v42 = vor.u32 %v6569_v31, %v4974_v30  ;;  %v6597_v27 = vld [vmem:[#allocation5 + $0x5cc] sm:$0xf]  ;;  %v4595_v31 = vor.u32 %v6469_v20, %v4592_v22 }
  0xd8   :  { %v6633_v35 = vld [vmem:[#allocation5 + $0x6e4] sm:$0xf0]  ;;  %v4720_v20 = vld [vmem:[#allocation5 + $0x2e8] sm:$0xf0] }
  0xd9   :  { %v5486_v36 = vld [vmem:[#allocation5 + $0x8c8] sm:$0xf]  ;;  %3052 = vmatpush.bf16.msra.mxu1 %v5263_v28  ;;  %3065 = vmatpush.bf16.msra.mxu2 %v5519_v29  ;;  %v5231_v43 = vor.u32 %v6633_v35, %v5230_v32  ;;  %v5104_v28 = vld [vmem:[#allocation5 + $0x5e8] sm:$0xf0]  ;;  %v4851_v32 = vor.u32 %v6533_v23, %v4848_v24  ;;  %v2837_v24 = vpop.f32.mrf.mxu0 }
  0xda   :  { %v6697_v37 = vld [vmem:[#allocation5 + $0x8e4] sm:$0xf0]  ;;  %3078 = vmatpush.bf16.msra.mxu3 %v5775_v33  ;;  %v4976_v22 = vld [vmem:[#allocation5 + $0x4e8] sm:$0xf0] }
  0xdb   :  { %v5742_v39 = vld [vmem:[#allocation5 + $0xac8] sm:$0xf]  ;;  %v5487_v44 = vor.u32 %v6697_v37, %v5486_v36  ;;  %3040 = vmatpush.bf16.msra.mxu0 %v4975_v42  ;;  %v6461_v36 = vld [vmem:[#allocation5 + $0x18c] sm:$0xf]  ;;  %v5107_v37 = vor.u32 %v6597_v27, %v5104_v28 }
  0xdc   :  { %v6761_v40 = vld [vmem:[#allocation5 + $0xae4] sm:$0xf0]  ;;  %v4816_v42 = vld [vmem:[#allocation5 + $0x3a8] sm:$0xf0] }
  0xdd   :  { %v4942_v45 = vld [vmem:[#allocation5 + $0x488] sm:$0xf]  ;;  %v5743_v48 = vor.u32 %v6761_v40, %v5742_v39  ;;  %3053 = vmatpush.bf16.msra.mxu1 %v5231_v43  ;;  %3066 = vmatpush.bf16.msra.mxu2 %v5487_v44  ;;  %v4560_v39 = vld [vmem:[#allocation5 + $0x1a8] sm:$0xf0] }
  0xde   :  { %v6561_v46 = vld [vmem:[#allocation5 + $0x4a4] sm:$0xf0]  ;;  %v6525_v40 = vld [vmem:[#allocation5 + $0x38c] sm:$0xf] }
  0xdf   :  { %v5198_v47 = vld [vmem:[#allocation5 + $0x688] sm:$0xf]  ;;  %v4943_v54 = vor.u32 %v6561_v46, %v4942_v45  ;;  %3079 = vmatpush.bf16.msra.mxu3 %v5743_v48  ;;  %v6589_v43 = vld [vmem:[#allocation5 + $0x58c] sm:$0xf]  ;;  %v4563_v46 = vor.u32 %v6461_v36, %v4560_v39 }
  0xe0   :  { %v6625_v49 = vld [vmem:[#allocation5 + $0x6a4] sm:$0xf0]  ;;  %v5072_v44 = vld [vmem:[#allocation5 + $0x5a8] sm:$0xf0] }
  0xe1   :  { %v5454_v50 = vld [vmem:[#allocation5 + $0x888] sm:$0xf]  ;;  %v5199_v55 = vor.u32 %v6625_v49, %v5198_v47  ;;  %3041 = vmatpush.bf16.msra.mxu0 %v4943_v54  ;;  %v4819_v47 = vor.u32 %v6525_v40, %v4816_v42  ;;  %v4784_v54 = vld [vmem:[#allocation5 + $0x368] sm:$0xf0]  ;;  %v2863_v42 = vpop.f32.mrf.mxu2 }
  0xe2   :  { %v6689_v51 = vld [vmem:[#allocation5 + $0x8a4] sm:$0xf0]  ;;  %v4688_v36 = vld [vmem:[#allocation5 + $0x2a8] sm:$0xf0] }
  0xe3   :  { %v5710_v52 = vld [vmem:[#allocation5 + $0xa88] sm:$0xf]  ;;  %v5455_v56 = vor.u32 %v6689_v51, %v5454_v50  ;;  %3054 = vmatpush.bf16.msra.mxu1 %v5199_v55  ;;  %v6453_v50 = vld [vmem:[#allocation5 + $0x14c] sm:$0xf]  ;;  %v5075_v51 = vor.u32 %v6589_v43, %v5072_v44 }
  0xe4   :  { %v6753_v53 = vld [vmem:[#allocation5 + $0xaa4] sm:$0xf0]  ;;  %v6581_v55 = vld [vmem:[#allocation5 + $0x54c] sm:$0xf] }
  0xe5   :  { %v4910_v57 = vld [vmem:[#allocation5 + $0x448] sm:$0xf]  ;;  %v5711_v60 = vor.u32 %v6753_v53, %v5710_v52  ;;  %3067 = vmatpush.bf16.msra.mxu2 %v5455_v56  ;;  %v4528_v52 = vld [vmem:[#allocation5 + $0x168] sm:$0xf0] }
  0xe6   :  { %v6553_v58 = vld [vmem:[#allocation5 + $0x464] sm:$0xf0]  ;;  %v6517_v53 = vld [vmem:[#allocation5 + $0x34c] sm:$0xf] }
  0xe7   :  { %v5166_v59 = vld [vmem:[#allocation5 + $0x648] sm:$0xf]  ;;  %v4911_v3 = vor.u32 %v6553_v58, %v4910_v57  ;;  %3080 = vmatpush.bf16.msra.mxu3 %v5711_v60  ;;  %v5040_v56 = vld [vmem:[#allocation5 + $0x568] sm:$0xf0]  ;;  %v4787_v60 = vor.u32 %v6517_v53, %v4784_v54 }
  0xe8   :  { %v6617_v61 = vld [vmem:[#allocation5 + $0x664] sm:$0xf0]  ;;  %v4944_v39 = vld [vmem:[#allocation5 + $0x4a8] sm:$0xf0] }
  0xe9   :  { %v5422_v62 = vld [vmem:[#allocation5 + $0x848] sm:$0xf]  ;;  %v5167_v6 = vor.u32 %v6617_v61, %v5166_v59  ;;  %3042 = vmatpush.bf16.msra.mxu0 %v4911_v3  ;;  %v4531_v59 = vor.u32 %v6453_v50, %v4528_v52  ;;  %v4752_v3 = vld [vmem:[#allocation5 + $0x328] sm:$0xf0] }
  0xea   :  { %v6681_v63 = vld [vmem:[#allocation5 + $0x864] sm:$0xf0]  ;;  %v6485_v52 = vld [vmem:[#allocation5 + $0x24c] sm:$0xf] }
  0xeb   :  { %v5678_v0 = vld [vmem:[#allocation5 + $0xa48] sm:$0xf]  ;;  %v5423_v7 = vor.u32 %v6681_v63, %v5422_v62  ;;  %3055 = vmatpush.bf16.msra.mxu1 %v5167_v6  ;;  %v6445_v62 = vld [vmem:[#allocation5 + $0x10c] sm:$0xf] }
  0xec   :  { %v6745_v2 = vld [vmem:[#allocation5 + $0xa64] sm:$0xf0]  ;;  %v4496_v63 = vld [vmem:[#allocation5 + $0x128] sm:$0xf0] }
  0xed   :  { %v4878_v4 = vld [vmem:[#allocation5 + $0x408] sm:$0xf]  ;;  %v5679_v12 = vor.u32 %v6745_v2, %v5678_v0  ;;  %3068 = vmatpush.bf16.msra.mxu2 %v5423_v7  ;;  %v5043_v0 = vor.u32 %v6581_v55, %v5040_v56  ;;  %v6509_v2 = vld [vmem:[#allocation5 + $0x30c] sm:$0xf]  ;;  %v2876_v56 = vpop.f32.mrf.mxu3 }
  0xee   :  { %v6545_v5 = vld [vmem:[#allocation5 + $0x424] sm:$0xf0]  ;;  %v5008_v6 = vld [vmem:[#allocation5 + $0x528] sm:$0xf0] }
  0xef   :  { %v5134_v8 = vld [vmem:[#allocation5 + $0x608] sm:$0xf]  ;;  %v4879_v21 = vor.u32 %v6545_v5, %v4878_v4  ;;  %3081 = vmatpush.bf16.msra.mxu3 %v5679_v12  ;;  %v7210_v4 = vld [vmem:[#allocation7] sm:$0xff]  ;;  %v6573_v5 = vld [vmem:[#allocation5 + $0x50c] sm:$0xf] }
  0xf0   :  { %v6609_v10 = vld [vmem:[#allocation5 + $0x624] sm:$0xf0]  ;;  %v4656_v53 = vld [vmem:[#allocation5 + $0x268] sm:$0xf0] }
  0xf1   :  { %v5390_v11 = vld [vmem:[#allocation5 + $0x808] sm:$0xf]  ;;  %v5135_v25 = vor.u32 %v6609_v10, %v5134_v8  ;;  %3043 = vmatpush.bf16.msra.mxu0 %v4879_v21  ;;  %v4499_v10 = vor.u32 %v6445_v62, %v4496_v63  ;;  %v6565_v21 = vld [vmem:[#allocation5 + $0x4cc] sm:$0xf] }
  0xf2   :  { %v6673_v13 = vld [vmem:[#allocation5 + $0x824] sm:$0xf0]  ;;  %v6549_v54 = vld [vmem:[#allocation5 + $0x44c] sm:$0xf] }
  0xf3   :  { %v5646_v16 = vld [vmem:[#allocation5 + $0xa08] sm:$0xf]  ;;  %v5391_v26 = vor.u32 %v6673_v13, %v5390_v11  ;;  %3056 = vmatpush.bf16.msra.mxu1 %v5135_v25  ;;  %v4755_v11 = vor.u32 %v6509_v2, %v4752_v3  ;;  %v6437_v13 = vld [vmem:[#allocation5 + $0xcc] sm:$0xf]  ;;  %v2850_v25 = vpop.f32.mrf.mxu1 }
  0xf4   :  { %v6737_v17 = vld [vmem:[#allocation5 + $0xa24] sm:$0xf0]  ;;  %3044 = vmatmul.bf16.vlgmr.msra.gmra.mxu0 %v7176_v1  ;;  %v4912_v55 = vld [vmem:[#allocation5 + $0x468] sm:$0xf0] }
  0xf5   :  { %v6126_v18 = vld [vmem:[#allocation5 + $0xdc8] sm:$0xf]  ;;  %v5647_v29 = vor.u32 %v6737_v17, %v5646_v16  ;;  %3069 = vmatpush.bf16.msra.mxu2 %v5391_v26  ;;  %v547_v16 = vperm.slane %v7210_v4, 0  ;;  %v5011_v17 = vor.u32 %v6573_v5, %v5008_v6  ;;  %v6413_v2 = vld [vmem:[#allocation5 + $0xc] sm:$0xf]  ;;  %v4915_v6 = vor.u32 %v6549_v54, %v4912_v55 }
  0xf6   :  { %v6857_v19 = vld [vmem:[#allocation5 + $0xde4] sm:$0xf0]  ;;  %3057 = vmatmul.bf16.vlgmr.msra.gmra.mxu1 %v7179_v9  ;;  %v4368_v3 = vld [vmem:[#allocation5 + $0x28] sm:$0xf0] }
  0xf7   :  { %v6127_v30 = vor.u32 %v6857_v19, %v6126_v18  ;;  %v6094_v33 = vld [vmem:[#allocation5 + $0xd88] sm:$0xf]  ;;  %3082 = vmatpush.bf16.msra.mxu3 %v5647_v29  ;;  %3101 = vmatpush.bf16.msrb.mxu1 %v4595_v31  ;;  %v4464_v18 = vld [vmem:[#allocation5 + $0xe8] sm:$0xf0]  ;;  %v2838_v31 = vadd.f32 %v2837_v24, %v547_v16  ;;  %v2865_v16 = vpop.f32.mrf.mxu2 }
  0xf8   :  { %v6849_v35 = vld [vmem:[#allocation5 + $0xda4] sm:$0xf0]  ;;  %3070 = vmatmul.bf16.vlgmr.msra.gmra.mxu2 %v7190_v38  ;;  %v6501_v19 = vld [vmem:[#allocation5 + $0x2cc] sm:$0xf]  ;;  %v4467_v26 = vor.u32 %v6437_v13, %v4464_v18 }
  0xf9   :  { %3088 = vmatpush.bf16.msrb.mxu0 %v6127_v30  ;;  %v6095_v45 = vor.u32 %v6849_v35, %v6094_v33  ;;  %3114 = vmatpush.bf16.msrb.mxu2 %v4851_v32  ;;  %v6062_v48 = vld [vmem:[#allocation5 + $0xd48] sm:$0xf]  ;;  %v4723_v27 = vor.u32 %v6501_v19, %v4720_v20  ;;  %v6429_v30 = vld [vmem:[#allocation5 + $0x8c] sm:$0xf]  ;;  %v4979_v32 = vor.u32 %v6565_v21, %v4976_v22 }
  0xfa   :  { %v6841_v49 = vld [vmem:[#allocation5 + $0xd64] sm:$0xf0]  ;;  %3083 = vmatmul.bf16.vlgmr.msra.gmra.mxu3 %v7192_v41  ;;  %v4432_v33 = vld [vmem:[#allocation5 + $0xa8] sm:$0xf0]  ;;  %v2851_v40 = vadd.f32 %v2850_v25, %v2838_v31  ;;  %v4371_v21 = vor.u32 %v6413_v2, %v4368_v3 }
  0xfb   :  { %3127 = vmatpush.bf16.msrb.mxu3 %v5107_v37  ;;  %v6063_v57 = vor.u32 %v6841_v49, %v6062_v48  ;;  %v6030_v58 = vld [vmem:[#allocation5 + $0xd08] sm:$0xf]  ;;  %3102 = vmatpush.bf16.msrb.mxu1 %v4563_v46  ;;  %v6493_v35 = vld [vmem:[#allocation5 + $0x28c] sm:$0xf]  ;;  %v4435_v44 = vor.u32 %v6429_v30, %v4432_v33 }
  0xfc   :  { %v6833_v61 = vld [vmem:[#allocation5 + $0xd24] sm:$0xf0]  ;;  %v6557_v37 = vld [vmem:[#allocation5 + $0x48c] sm:$0xf]  ;;  %v2864_v49 = vadd.f32 %v2863_v42, %v2851_v40 }
  0xfd   :  { %3089 = vmatpush.bf16.msrb.mxu0 %v6095_v45  ;;  %3115 = vmatpush.bf16.msrb.mxu2 %v4819_v47  ;;  %v6031_v7 = vor.u32 %v6833_v61, %v6030_v58  ;;  %v5998_v8 = vld [vmem:[#allocation5 + $0xcc8] sm:$0xf]  ;;  %v4691_v45 = vor.u32 %v6493_v35, %v4688_v36  ;;  %v6421_v48 = vld [vmem:[#allocation5 + $0x4c] sm:$0xf]  ;;  %v4947_v50 = vor.u32 %v6557_v37, %v4944_v39  ;;  %v2852_v61 = vpop.f32.mrf.mxu1 }
  0xfe   :  { %v6825_v12 = vld [vmem:[#allocation5 + $0xce4] sm:$0xf0]  ;;  %v7213_v62 = vadd.f32 %v2876_v56, %v2864_v49  ;;  %v6477_v5 = vld [vmem:[#allocation5 + $0x20c] sm:$0xf] }
  0xff   :  { %3128 = vmatpush.bf16.msrb.mxu3 %v5075_v51  ;;  %3103 = vmatpush.bf16.msrb.mxu1 %v4531_v59  ;;  %v5999_v23 = vor.u32 %v6825_v12, %v5998_v8  ;;  %v5966_v28 = vld [vmem:[#allocation5 + $0xc88] sm:$0xf]  ;;  %v4400_v51 = vld [vmem:[#allocation5 + $0x68] sm:$0xf0] }
 0x100   :  { %v6817_v29 = vld [vmem:[#allocation5 + $0xca4] sm:$0xf0]  ;;  %v4403_v63 = vor.u32 %v6421_v48, %v4400_v51  ;;  %v6541_v8 = vld [vmem:[#allocation5 + $0x40c] sm:$0xf] }
 0x101   :  { %3090 = vmatpush.bf16.msrb.mxu0 %v6063_v57  ;;  %3116 = vmatpush.bf16.msrb.mxu2 %v4787_v60  ;;  %v5967_v43 = vor.u32 %v6817_v29, %v5966_v28  ;;  %v5934_v46 = vld [vmem:[#allocation5 + $0xc48] sm:$0xf]  ;;  %v2839_v60 = vpop.f32.mrf.mxu0  ;;  %v5360_v12 = vld [vmem:[#allocation5 + $0x7e8] sm:$0xf0] }
 0x102   :  { %v6809_v47 = vld [vmem:[#allocation5 + $0xc64] sm:$0xf0]  ;;  %v6725_v13 = vld [vmem:[#allocation5 + $0x9cc] sm:$0xf] }
 0x103   :  { %3129 = vmatpush.bf16.msrb.mxu3 %v5043_v0  ;;  %3104 = vmatpush.bf16.msrb.mxu1 %v4499_v10  ;;  %v5935_v57 = vor.u32 %v6809_v47, %v5934_v46  ;;  %v5902_v58 = vld [vmem:[#allocation5 + $0xc08] sm:$0xf]  ;;  %v4659_v0 = vor.u32 %v6485_v52, %v4656_v53  ;;  %v4880_v10 = vld [vmem:[#allocation5 + $0x428] sm:$0xf0] }
 0x104   :  { %v6801_v59 = vld [vmem:[#allocation5 + $0xc24] sm:$0xf0]  ;;  %v5616_v18 = vld [vmem:[#allocation5 + $0x9e8] sm:$0xf0]  ;;  %v4883_v25 = vor.u32 %v6541_v8, %v4880_v10 }
 0x105   :  { %3091 = vmatpush.bf16.msrb.mxu0 %v6031_v7  ;;  %3117 = vmatpush.bf16.msrb.mxu2 %v4755_v11  ;;  %v4624_v7 = vld [vmem:[#allocation5 + $0x228] sm:$0xf0] }
 0x106   :  { %v6661_v11 = vld [vmem:[#allocation5 + $0x7cc] sm:$0xf]  ;;  %v4627_v22 = vor.u32 %v6477_v5, %v4624_v7 }
 0x107   :  { %3130 = vmatpush.bf16.msrb.mxu3 %v5011_v17  ;;  %3105 = vmatpush.bf16.msrb.mxu1 %v4467_v26  ;;  %v5903_v17 = vor.u32 %v6801_v59, %v5902_v58  ;;  %v6789_v19 = vld [vmem:[#allocation5 + $0xbcc] sm:$0xf]  ;;  %v5363_v26 = vor.u32 %v6661_v11, %v5360_v12  ;;  %v2902_v7 = vpop.f32.mrf.mxu1 }
 0x108   :  { %v5872_v20 = vld [vmem:[#allocation5 + $0xbe8] sm:$0xf0] }
 0x109   :  { %3092 = vmatpush.bf16.msrb.mxu0 %v5999_v23  ;;  %3118 = vmatpush.bf16.msrb.mxu2 %v4723_v27  ;;  %v6853_v23 = vld [vmem:[#allocation5 + $0xdcc] sm:$0xf]  ;;  %v5619_v27 = vor.u32 %v6725_v13, %v5616_v18  ;;  %v5875_v28 = vor.u32 %v6789_v19, %v5872_v20 }
 0x10a   :  { %v6128_v24 = vld [vmem:[#allocation5 + $0xde8] sm:$0xf0] }
 0x10b   :  { %3131 = vmatpush.bf16.msrb.mxu3 %v4979_v32  ;;  %3106 = vmatpush.bf16.msrb.mxu1 %v4435_v44  ;;  %v6653_v29 = vld [vmem:[#allocation5 + $0x78c] sm:$0xf]  ;;  %v2878_v32 = vpop.f32.mrf.mxu3  ;;  %v6131_v33 = vor.u32 %v6853_v23, %v6128_v24 }
 0x10c   :  { %v5328_v30 = vld [vmem:[#allocation5 + $0x7a8] sm:$0xf0] }
 0x10d   :  { %3093 = vmatpush.bf16.msrb.mxu0 %v5967_v43  ;;  %3119 = vmatpush.bf16.msrb.mxu2 %v4691_v45  ;;  %v6717_v31 = vld [vmem:[#allocation5 + $0x98c] sm:$0xf]  ;;  %v5331_v42 = vor.u32 %v6653_v29, %v5328_v30 }
 0x10e   :  { %v5584_v35 = vld [vmem:[#allocation5 + $0x9a8] sm:$0xf0] }
 0x10f   :  { %3132 = vmatpush.bf16.msrb.mxu3 %v4947_v50  ;;  %3107 = vmatpush.bf16.msrb.mxu1 %v4403_v63  ;;  %v6781_v36 = vld [vmem:[#allocation5 + $0xb8c] sm:$0xf]  ;;  %v5587_v43 = vor.u32 %v6717_v31, %v5584_v35 }
 0x110   :  { %v5840_v37 = vld [vmem:[#allocation5 + $0xba8] sm:$0xf0] }
 0x111   :  { %3094 = vmatpush.bf16.msrb.mxu0 %v5935_v57  ;;  %3120 = vmatpush.bf16.msrb.mxu2 %v4659_v0  ;;  %v6845_v39 = vld [vmem:[#allocation5 + $0xd8c] sm:$0xf]  ;;  %v5843_v44 = vor.u32 %v6781_v36, %v5840_v37 }
 0x112   :  { %v6096_v40 = vld [vmem:[#allocation5 + $0xda8] sm:$0xf0] }
 0x113   :  { %3133 = vmatpush.bf16.msrb.mxu3 %v4915_v6  ;;  %3108 = vmatpush.bf16.msrb.mxu1 %v4371_v21  ;;  %v6645_v45 = vld [vmem:[#allocation5 + $0x74c] sm:$0xf]  ;;  %v6099_v48 = vor.u32 %v6845_v39, %v6096_v40  ;;  %v2889_v6 = vpop.f32.mrf.mxu0  ;;  %v7222_v39 = vpop.f32.mrf.mxu3 }
 0x114   :  { %v5296_v46 = vld [vmem:[#allocation5 + $0x768] sm:$0xf0]  ;;  %v2890_v11 = vadd.f32 %v2889_v6, %v7213_v62 }
 0x115   :  { %3095 = vmatpush.bf16.msrb.mxu0 %v5903_v17  ;;  %3121 = vmatpush.bf16.msrb.mxu2 %v4627_v22  ;;  %v6709_v47 = vld [vmem:[#allocation5 + $0x94c] sm:$0xf]  ;;  %v5299_v54 = vor.u32 %v6645_v45, %v5296_v46 }
 0x116   :  { %v5552_v49 = vld [vmem:[#allocation5 + $0x968] sm:$0xf0]  ;;  %3109 = vmatmul.bf16.vlgmr.msrb.gmra.mxu1 %v7181_v14  ;;  %v2903_v21 = vadd.f32 %v2902_v7, %v2890_v11  ;;  %v4598_v7 = vld [vmem:[#allocation5 + $0x1d0] sm:$0xf] }
 0x117   :  { %3134 = vmatpush.bf16.msrb.mxu3 %v4883_v25  ;;  %3153 = vmatpush.bf16.msra.mxu1 %v5619_v27  ;;  %v6773_v50 = vld [vmem:[#allocation5 + $0xb4c] sm:$0xf]  ;;  %v5555_v55 = vor.u32 %v6709_v47, %v5552_v49  ;;  %v2915_v27 = vpop.f32.mrf.mxu2 }
 0x118   :  { %3096 = vmatmul.bf16.vlgmr.msrb.gmra.mxu0 %v7188_v34  ;;  %v5808_v51 = vld [vmem:[#allocation5 + $0xb68] sm:$0xf0]  ;;  %3122 = vmatmul.bf16.vlgmr.msrb.gmra.mxu2 %v7183_v15  ;;  %v7220_v31 = vadd.f32 %v2915_v27, %v2903_v21  ;;  %v6666_v21 = vld [vmem:[#allocation5 + $0x7ec] sm:$0xf0] }
 0x119   :  { %3140 = vmatpush.bf16.msra.mxu0 %v5363_v26  ;;  %3166 = vmatpush.bf16.msra.mxu2 %v5875_v28  ;;  %v6837_v52 = vld [vmem:[#allocation5 + $0xd4c] sm:$0xf]  ;;  %v5811_v56 = vor.u32 %v6773_v50, %v5808_v51  ;;  %v6466_v27 = vld [vmem:[#allocation5 + $0x1ac] sm:$0xf0] }
 0x11a   :  { %v6064_v53 = vld [vmem:[#allocation5 + $0xd68] sm:$0xf0]  ;;  %3135 = vmatmul.bf16.vlgmr.msrb.gmra.mxu3 %v7176_v1 }
 0x11b   :  { %3179 = vmatpush.bf16.msra.mxu3 %v6131_v33  ;;  %3154 = vmatpush.bf16.msra.mxu1 %v5587_v43  ;;  %v6637_v57 = vld [vmem:[#allocation5 + $0x70c] sm:$0xf]  ;;  %v6067_v60 = vor.u32 %v6837_v52, %v6064_v53  ;;  %v2904_v43 = vpop.f32.mrf.mxu1  ;;  %v2930_v11 = vpop.f32.mrf.mxu3 }
 0x11c   :  { %v5264_v58 = vld [vmem:[#allocation5 + $0x728] sm:$0xf0]  ;;  %v6458_v43 = vld [vmem:[#allocation5 + $0x16c] sm:$0xf0] }
 0x11d   :  { %3141 = vmatpush.bf16.msra.mxu0 %v5331_v42  ;;  %3167 = vmatpush.bf16.msra.mxu2 %v5843_v44  ;;  %v6701_v59 = vld [vmem:[#allocation5 + $0x90c] sm:$0xf]  ;;  %v5267_v5 = vor.u32 %v6637_v57, %v5264_v58  ;;  %v2891_v42 = vpop.f32.mrf.mxu0 }
 0x11e   :  { %v5520_v61 = vld [vmem:[#allocation5 + $0x928] sm:$0xf0] }
 0x11f   :  { %3180 = vmatpush.bf16.msra.mxu3 %v6099_v48  ;;  %v6765_v63 = vld [vmem:[#allocation5 + $0xb0c] sm:$0xf]  ;;  %3155 = vmatpush.bf16.msra.mxu1 %v5555_v55  ;;  %v5523_v8 = vor.u32 %v6701_v59, %v5520_v61 }
 0x120   :  { %v5776_v0 = vld [vmem:[#allocation5 + $0xb28] sm:$0xf0] }
 0x121   :  { %v6829_v2 = vld [vmem:[#allocation5 + $0xd0c] sm:$0xf]  ;;  %3142 = vmatpush.bf16.msra.mxu0 %v5299_v54  ;;  %3168 = vmatpush.bf16.msra.mxu2 %v5811_v56  ;;  %v5779_v10 = vor.u32 %v6765_v63, %v5776_v0  ;;  %v2917_v0 = vpop.f32.mrf.mxu2 }
 0x122   :  { %v6032_v3 = vld [vmem:[#allocation5 + $0xd28] sm:$0xf0]  ;;  %v5270_v0 = vld [vmem:[#allocation5 + $0x710] sm:$0xf] }
 0x123   :  { %v6629_v12 = vld [vmem:[#allocation5 + $0x6cc] sm:$0xf]  ;;  %3181 = vmatpush.bf16.msra.mxu3 %v6067_v60  ;;  %v6035_v17 = vor.u32 %v6829_v2, %v6032_v3  ;;  %3156 = vmatpush.bf16.msra.mxu1 %v5523_v8  ;;  %v6474_v8 = vld [vmem:[#allocation5 + $0x1ec] sm:$0xf0] }
 0x124   :  { %v5232_v13 = vld [vmem:[#allocation5 + $0x6e8] sm:$0xf0] }
 0x125   :  { %v6693_v16 = vld [vmem:[#allocation5 + $0x8cc] sm:$0xf]  ;;  %3143 = vmatpush.bf16.msra.mxu0 %v5267_v5  ;;  %v5235_v24 = vor.u32 %v6629_v12, %v5232_v13  ;;  %3169 = vmatpush.bf16.msra.mxu2 %v5779_v10  ;;  %v4854_v10 = vld [vmem:[#allocation5 + $0x3d0] sm:$0xf] }
 0x126   :  { %v5488_v18 = vld [vmem:[#allocation5 + $0x8e8] sm:$0xf0]  ;;  %v6538_v13 = vld [vmem:[#allocation5 + $0x3ec] sm:$0xf0] }
 0x127   :  { %v6757_v19 = vld [vmem:[#allocation5 + $0xacc] sm:$0xf]  ;;  %v5491_v25 = vor.u32 %v6693_v16, %v5488_v18  ;;  %3182 = vmatpush.bf16.msra.mxu3 %v6035_v17  ;;  %v5110_v16 = vld [vmem:[#allocation5 + $0x5d0] sm:$0xf] }
 0x128   :  { %v5744_v20 = vld [vmem:[#allocation5 + $0xae8] sm:$0xf0]  ;;  %v6602_v17 = vld [vmem:[#allocation5 + $0x5ec] sm:$0xf0] }
 0x129   :  { %v6821_v22 = vld [vmem:[#allocation5 + $0xccc] sm:$0xf]  ;;  %v5747_v26 = vor.u32 %v6757_v19, %v5744_v20  ;;  %3144 = vmatpush.bf16.msra.mxu0 %v5235_v24  ;;  %3157 = vmatpush.bf16.msra.mxu1 %v5491_v25  ;;  %v5366_v20 = vld [vmem:[#allocation5 + $0x7d0] sm:$0xf]  ;;  %v4855_v24 = vor.u32 %v6538_v13, %v4854_v10  ;;  %v5111_v25 = vor.u32 %v6602_v17, %v5110_v16 }
 0x12a   :  { %v6000_v23 = vld [vmem:[#allocation5 + $0xce8] sm:$0xf0]  ;;  %v6442_v10 = vld [vmem:[#allocation5 + $0xec] sm:$0xf0] }
 0x12b   :  { %v6621_v28 = vld [vmem:[#allocation5 + $0x68c] sm:$0xf]  ;;  %v6003_v30 = vor.u32 %v6821_v22, %v6000_v23  ;;  %3170 = vmatpush.bf16.msra.mxu2 %v5747_v26  ;;  %v4599_v23 = vor.u32 %v6474_v8, %v4598_v7  ;;  %v4566_v26 = vld [vmem:[#allocation5 + $0x190] sm:$0xf] }
 0x12c   :  { %v5200_v62 = vld [vmem:[#allocation5 + $0x6a8] sm:$0xf0]  ;;  %v4470_v8 = vld [vmem:[#allocation5 + $0xd0] sm:$0xf] }
 0x12d   :  { %v6685_v29 = vld [vmem:[#allocation5 + $0x88c] sm:$0xf]  ;;  %v5203_v40 = vor.u32 %v6621_v28, %v5200_v62  ;;  %3183 = vmatpush.bf16.msra.mxu3 %v6003_v30  ;;  %v4822_v28 = vld [vmem:[#allocation5 + $0x390] sm:$0xf]  ;;  %v5367_v62 = vor.u32 %v6666_v21, %v5366_v20 }
 0x12e   :  { %v5456_v32 = vld [vmem:[#allocation5 + $0x8a8] sm:$0xf0]  ;;  %v5078_v30 = vld [vmem:[#allocation5 + $0x590] sm:$0xf] }
 0x12f   :  { %v6749_v33 = vld [vmem:[#allocation5 + $0xa8c] sm:$0xf]  ;;  %v5459_v44 = vor.u32 %v6685_v29, %v5456_v32  ;;  %3145 = vmatpush.bf16.msra.mxu0 %v5203_v40  ;;  %v6530_v29 = vld [vmem:[#allocation5 + $0x3ac] sm:$0xf0] }
 0x130   :  { %v5712_v35 = vld [vmem:[#allocation5 + $0xaa8] sm:$0xf0]  ;;  %v6594_v32 = vld [vmem:[#allocation5 + $0x5ac] sm:$0xf0]  ;;  %v4823_v40 = vor.u32 %v6530_v29, %v4822_v28  ;;  %v2967_v28 = vpop.f32.mrf.mxu2 }
 0x131   :  { %v6813_v36 = vld [vmem:[#allocation5 + $0xc8c] sm:$0xf]  ;;  %v5715_v45 = vor.u32 %v6749_v33, %v5712_v35  ;;  %3158 = vmatpush.bf16.msra.mxu1 %v5459_v44  ;;  %v5334_v33 = vld [vmem:[#allocation5 + $0x790] sm:$0xf]  ;;  %v5079_v42 = vor.u32 %v6594_v32, %v5078_v30 }
 0x132   :  { %v5968_v37 = vld [vmem:[#allocation5 + $0xca8] sm:$0xf0]  ;;  %v6658_v35 = vld [vmem:[#allocation5 + $0x7ac] sm:$0xf0] }
 0x133   :  { %v6613_v46 = vld [vmem:[#allocation5 + $0x64c] sm:$0xf]  ;;  %v5971_v49 = vor.u32 %v6813_v36, %v5968_v37  ;;  %3171 = vmatpush.bf16.msra.mxu2 %v5715_v45  ;;  %v4567_v36 = vor.u32 %v6466_v27, %v4566_v26  ;;  %v4534_v37 = vld [vmem:[#allocation5 + $0x150] sm:$0xf]  ;;  %v548_v45 = vperm.slane %v7210_v4, 1 }
 0x134   :  { %v5168_v47 = vld [vmem:[#allocation5 + $0x668] sm:$0xf0]  ;;  %v4790_v44 = vld [vmem:[#allocation5 + $0x350] sm:$0xf] }
 0x135   :  { %v6677_v48 = vld [vmem:[#allocation5 + $0x84c] sm:$0xf]  ;;  %v5171_v55 = vor.u32 %v6613_v46, %v5168_v47  ;;  %3184 = vmatpush.bf16.msra.mxu3 %v5971_v49  ;;  %v5335_v46 = vor.u32 %v6658_v35, %v5334_v33  ;;  %v6522_v47 = vld [vmem:[#allocation5 + $0x36c] sm:$0xf0]  ;;  %v2980_v35 = vpop.f32.mrf.mxu3 }
 0x136   :  { %v5424_v50 = vld [vmem:[#allocation5 + $0x868] sm:$0xf0]  ;;  %v6586_v49 = vld [vmem:[#allocation5 + $0x56c] sm:$0xf0] }
 0x137   :  { %v6741_v51 = vld [vmem:[#allocation5 + $0xa4c] sm:$0xf]  ;;  %v5427_v58 = vor.u32 %v6677_v48, %v5424_v50  ;;  %3146 = vmatpush.bf16.msra.mxu0 %v5171_v55  ;;  %v5046_v48 = vld [vmem:[#allocation5 + $0x550] sm:$0xf]  ;;  %v2929_v55 = vadd.f32 %v7222_v39, %v548_v45 }
 0x138   :  { %v5680_v52 = vld [vmem:[#allocation5 + $0xa68] sm:$0xf0]  ;;  %v5302_v50 = vld [vmem:[#allocation5 + $0x750] sm:$0xf] }
 0x139   :  { %v6805_v53 = vld [vmem:[#allocation5 + $0xc4c] sm:$0xf]  ;;  %v5683_v59 = vor.u32 %v6741_v51, %v5680_v52  ;;  %3159 = vmatpush.bf16.msra.mxu1 %v5427_v58  ;;  %v6650_v51 = vld [vmem:[#allocation5 + $0x76c] sm:$0xf0]  ;;  %v4535_v52 = vor.u32 %v6458_v43, %v4534_v37 }
 0x13a   :  { %v5936_v54 = vld [vmem:[#allocation5 + $0xc68] sm:$0xf0]  ;;  %v4758_v58 = vld [vmem:[#allocation5 + $0x310] sm:$0xf] }
 0x13b   :  { %v6605_v56 = vld [vmem:[#allocation5 + $0x60c] sm:$0xf]  ;;  %v5939_v2 = vor.u32 %v6805_v53, %v5936_v54  ;;  %3172 = vmatpush.bf16.msra.mxu2 %v5683_v59  ;;  %v4791_v53 = vor.u32 %v6522_v47, %v4790_v44  ;;  %v5047_v54 = vor.u32 %v6586_v49, %v5046_v48  ;;  %v5303_v59 = vor.u32 %v6650_v51, %v5302_v50  ;;  %v4726_v39 = vld [vmem:[#allocation5 + $0x2d0] sm:$0xf] }
 0x13c   :  { %v5136_v57 = vld [vmem:[#allocation5 + $0x628] sm:$0xf0]  ;;  %v6506_v16 = vld [vmem:[#allocation5 + $0x2ec] sm:$0xf0] }
 0x13d   :  { %v6669_v60 = vld [vmem:[#allocation5 + $0x80c] sm:$0xf]  ;;  %v5139_v12 = vor.u32 %v6605_v56, %v5136_v57  ;;  %3185 = vmatpush.bf16.msra.mxu3 %v5939_v2  ;;  %v4502_v56 = vld [vmem:[#allocation5 + $0x110] sm:$0xf] }
 0x13e   :  { %v5392_v61 = vld [vmem:[#allocation5 + $0x828] sm:$0xf0]  ;;  %v6450_v57 = vld [vmem:[#allocation5 + $0x12c] sm:$0xf0] }
 0x13f   :  { %v6733_v63 = vld [vmem:[#allocation5 + $0xa0c] sm:$0xf]  ;;  %v5395_v18 = vor.u32 %v6669_v60, %v5392_v61  ;;  %3147 = vmatpush.bf16.msra.mxu0 %v5139_v12  ;;  %v6514_v60 = vld [vmem:[#allocation5 + $0x32c] sm:$0xf0]  ;;  %v2954_v12 = vpop.f32.mrf.mxu1 }
 0x140   :  { %v5648_v3 = vld [vmem:[#allocation5 + $0xa28] sm:$0xf0]  ;;  %v5014_v61 = vld [vmem:[#allocation5 + $0x510] sm:$0xf] }
 0x141   :  { %v6797_v5 = vld [vmem:[#allocation5 + $0xc0c] sm:$0xf]  ;;  %v5651_v19 = vor.u32 %v6733_v63, %v5648_v3  ;;  %3160 = vmatpush.bf16.msra.mxu1 %v5395_v18  ;;  %v6578_v63 = vld [vmem:[#allocation5 + $0x52c] sm:$0xf0]  ;;  %v4503_v3 = vor.u32 %v6450_v57, %v4502_v56 }
 0x142   :  { %v5904_v6 = vld [vmem:[#allocation5 + $0xc28] sm:$0xf0]  ;;  %3148 = vmatmul.bf16.vlgmr.msra.gmra.mxu0 %v7179_v9  ;;  %v6642_v2 = vld [vmem:[#allocation5 + $0x72c] sm:$0xf0]  ;;  %v5015_v7 = vor.u32 %v6578_v63, %v5014_v61 }
 0x143   :  { %v5907_v22 = vor.u32 %v6797_v5, %v5904_v6  ;;  %3173 = vmatpush.bf16.msra.mxu2 %v5651_v19  ;;  %3192 = vmatpush.bf16.msrb.mxu0 %v4599_v23  ;;  %v2941_v5 = vpop.f32.mrf.mxu0  ;;  %v4759_v6 = vor.u32 %v6514_v60, %v4758_v58  ;;  %v5271_v13 = vor.u32 %v6642_v2, %v5270_v0  ;;  %v4982_v17 = vld [vmem:[#allocation5 + $0x4d0] sm:$0xf]  ;;  %v2969_v2 = vpop.f32.mrf.mxu2 }
 0x144   :  { %3161 = vmatmul.bf16.vlgmr.msra.gmra.mxu1 %v7190_v38  ;;  %v2942_v11 = vadd.f32 %v2941_v5, %v2929_v55  ;;  %v6570_v18 = vld [vmem:[#allocation5 + $0x4ec] sm:$0xf0]  ;;  %v4727_v23 = vor.u32 %v6506_v16, %v4726_v39  ;;  %v4504_v2 = vld [vmem:[#allocation5 + $0x130] sm:$0xf0] }
 0x145   :  { %3186 = vmatpush.bf16.msra.mxu3 %v5907_v22  ;;  %3205 = vmatpush.bf16.msrb.mxu1 %v4855_v24  ;;  %v5238_v19 = vld [vmem:[#allocation5 + $0x6d0] sm:$0xf]  ;;  %v4471_v22 = vor.u32 %v6442_v10, %v4470_v8  ;;  %v4983_v24 = vor.u32 %v6570_v18, %v4982_v17  ;;  %v2982_v8 = vpop.f32.mrf.mxu3 }
 0x146   :  { %3174 = vmatmul.bf16.vlgmr.msra.gmra.mxu2 %v7192_v41  ;;  %v6634_v20 = vld [vmem:[#allocation5 + $0x6ec] sm:$0xf0]  ;;  %v2955_v21 = vadd.f32 %v2954_v12, %v2942_v11 }
 0x147   :  { %3218 = vmatpush.bf16.msrb.mxu2 %v5111_v25  ;;  %3193 = vmatpush.bf16.msrb.mxu0 %v4567_v36  ;;  %v4438_v25 = vld [vmem:[#allocation5 + $0x90] sm:$0xf]  ;;  %v2956_v49 = vpop.f32.mrf.mxu1 }
 0x148   :  { %3187 = vmatmul.bf16.vlgmr.msra.gmra.mxu3 %v7188_v34  ;;  %v6434_v26 = vld [vmem:[#allocation5 + $0xac] sm:$0xf0]  ;;  %v2968_v33 = vadd.f32 %v2967_v28, %v2955_v21  ;;  %v4600_v21 = vld [vmem:[#allocation5 + $0x1f0] sm:$0xf0] }
 0x149   :  { %3231 = vmatpush.bf16.msrb.mxu3 %v5367_v62  ;;  %3206 = vmatpush.bf16.msrb.mxu1 %v4823_v40  ;;  %v4694_v27 = vld [vmem:[#allocation5 + $0x290] sm:$0xf]  ;;  %v5239_v62 = vor.u32 %v6634_v20, %v5238_v19  ;;  %v4439_v40 = vor.u32 %v6434_v26, %v4438_v25  ;;  %v6470_v20 = vld [vmem:[#allocation5 + $0x1d4] sm:$0xf] }
 0x14a   :  { %v6498_v29 = vld [vmem:[#allocation5 + $0x2ac] sm:$0xf0] }
 0x14b   :  { %3219 = vmatpush.bf16.msrb.mxu2 %v5079_v42  ;;  %3194 = vmatpush.bf16.msrb.mxu0 %v4535_v52  ;;  %v4950_v30 = vld [vmem:[#allocation5 + $0x490] sm:$0xf]  ;;  %v7230_v42 = vadd.f32 %v2980_v35, %v2968_v33  ;;  %v2943_v43 = vpop.f32.mrf.mxu0  ;;  %v4695_v44 = vor.u32 %v6498_v29, %v4694_v27  ;;  %v6462_v33 = vld [vmem:[#allocation5 + $0x194] sm:$0xf] }
 0x14c   :  { %v6562_v32 = vld [vmem:[#allocation5 + $0x4ac] sm:$0xf0]  ;;  %v4568_v35 = vld [vmem:[#allocation5 + $0x1b0] sm:$0xf0] }
 0x14d   :  { %3232 = vmatpush.bf16.msrb.mxu3 %v5335_v46  ;;  %3207 = vmatpush.bf16.msrb.mxu1 %v4791_v53  ;;  %v5206_v36 = vld [vmem:[#allocation5 + $0x690] sm:$0xf]  ;;  %v4951_v45 = vor.u32 %v6562_v32, %v4950_v30 }
 0x14e   :  { %v6626_v37 = vld [vmem:[#allocation5 + $0x6ac] sm:$0xf0] }
 0x14f   :  { %3220 = vmatpush.bf16.msrb.mxu2 %v5047_v54  ;;  %3195 = vmatpush.bf16.msrb.mxu0 %v4503_v3  ;;  %v4406_v46 = vld [vmem:[#allocation5 + $0x50] sm:$0xf]  ;;  %v5207_v50 = vor.u32 %v6626_v37, %v5206_v36 }
 0x150   :  { %v6426_v47 = vld [vmem:[#allocation5 + $0x6c] sm:$0xf0] }
 0x151   :  { %3233 = vmatpush.bf16.msrb.mxu3 %v5303_v59  ;;  %3208 = vmatpush.bf16.msrb.mxu1 %v4759_v6  ;;  %v4662_v48 = vld [vmem:[#allocation5 + $0x250] sm:$0xf]  ;;  %v4407_v56 = vor.u32 %v6426_v47, %v4406_v46  ;;  %v4571_v46 = vor.u32 %v6462_v33, %v4568_v35  ;;  %v4440_v33 = vld [vmem:[#allocation5 + $0xb0] sm:$0xf0] }
 0x152   :  { %v6490_v51 = vld [vmem:[#allocation5 + $0x26c] sm:$0xf0] }
 0x153   :  { %3221 = vmatpush.bf16.msrb.mxu2 %v5015_v7  ;;  %3196 = vmatpush.bf16.msrb.mxu0 %v4471_v22  ;;  %v4918_v52 = vld [vmem:[#allocation5 + $0x450] sm:$0xf]  ;;  %v4663_v59 = vor.u32 %v6490_v51, %v4662_v48  ;;  %v4536_v51 = vld [vmem:[#allocation5 + $0x170] sm:$0xf0] }
 0x154   :  { %v6554_v53 = vld [vmem:[#allocation5 + $0x46c] sm:$0xf0] }
 0x155   :  { %3234 = vmatpush.bf16.msrb.mxu3 %v5271_v13  ;;  %3209 = vmatpush.bf16.msrb.mxu1 %v4727_v23  ;;  %v5174_v54 = vld [vmem:[#allocation5 + $0x650] sm:$0xf]  ;;  %v4919_v60 = vor.u32 %v6554_v53, %v4918_v52 }
 0x156   :  { %v6618_v55 = vld [vmem:[#allocation5 + $0x66c] sm:$0xf0] }
 0x157   :  { %3222 = vmatpush.bf16.msrb.mxu2 %v4983_v24  ;;  %3197 = vmatpush.bf16.msrb.mxu0 %v4439_v40  ;;  %v4374_v57 = vld [vmem:[#allocation5 + $0x10] sm:$0xf]  ;;  %v5175_v3 = vor.u32 %v6618_v55, %v5174_v54 }
 0x158   :  { %v6418_v58 = vld [vmem:[#allocation5 + $0x2c] sm:$0xf0] }
 0x159   :  { %3235 = vmatpush.bf16.msrb.mxu3 %v5239_v62  ;;  %3210 = vmatpush.bf16.msrb.mxu1 %v4695_v44  ;;  %v4630_v61 = vld [vmem:[#allocation5 + $0x210] sm:$0xf]  ;;  %v4375_v12 = vor.u32 %v6418_v58, %v4374_v57  ;;  %v4603_v62 = vor.u32 %v6470_v20, %v4600_v21  ;;  %v4472_v20 = vld [vmem:[#allocation5 + $0xf0] sm:$0xf0] }
 0x15a   :  { %v6482_v63 = vld [vmem:[#allocation5 + $0x22c] sm:$0xf0] }
 0x15b   :  { %3223 = vmatpush.bf16.msrb.mxu2 %v4951_v45  ;;  %v4886_v0 = vld [vmem:[#allocation5 + $0x410] sm:$0xf]  ;;  %3198 = vmatpush.bf16.msrb.mxu0 %v4407_v56  ;;  %v4631_v18 = vor.u32 %v6482_v63, %v4630_v61  ;;  %v2993_v63 = vpop.f32.mrf.mxu0 }
 0x15c   :  { %v6546_v5 = vld [vmem:[#allocation5 + $0x42c] sm:$0xf0] }
 0x15d   :  { %3236 = vmatpush.bf16.msrb.mxu3 %v5207_v50  ;;  %v5142_v6 = vld [vmem:[#allocation5 + $0x610] sm:$0xf]  ;;  %3211 = vmatpush.bf16.msrb.mxu1 %v4663_v59  ;;  %v4887_v19 = vor.u32 %v6546_v5, %v4886_v0  ;;  %v6454_v50 = vld [vmem:[#allocation5 + $0x154] sm:$0xf] }
 0x15e   :  { %v6610_v7 = vld [vmem:[#allocation5 + $0x62c] sm:$0xf0]  ;;  %v4539_v58 = vor.u32 %v6454_v50, %v4536_v51  ;;  %v6446_v0 = vld [vmem:[#allocation5 + $0x114] sm:$0xf] }
 0x15f   :  { %v5622_v10 = vld [vmem:[#allocation5 + $0x9d0] sm:$0xf]  ;;  %3224 = vmatpush.bf16.msrb.mxu2 %v4919_v60  ;;  %v5143_v22 = vor.u32 %v6610_v7, %v5142_v6  ;;  %3199 = vmatpush.bf16.msrb.mxu0 %v4375_v12  ;;  %v3006_v6 = vpop.f32.mrf.mxu1  ;;  %v4507_v12 = vor.u32 %v6446_v0, %v4504_v2 }
 0x160   :  { %v6730_v39 = vld [vmem:[#allocation5 + $0x9ec] sm:$0xf0] }
 0x161   :  { %v5878_v11 = vld [vmem:[#allocation5 + $0xbd0] sm:$0xf]  ;;  %3237 = vmatpush.bf16.msrb.mxu3 %v5175_v3  ;;  %v5623_v23 = vor.u32 %v6730_v39, %v5622_v10  ;;  %3212 = vmatpush.bf16.msrb.mxu1 %v4631_v18  ;;  %v2994_v3 = vadd.f32 %v2993_v63, %v7230_v42  ;;  %v549_v42 = vperm.slane %v7210_v4, 2 }
 0x162   :  { %v6794_v13 = vld [vmem:[#allocation5 + $0xbec] sm:$0xf0]  ;;  %3200 = vmatmul.bf16.vlgmr.msrb.gmra.mxu0 %v7181_v14 }
 0x163   :  { %v6134_v16 = vld [vmem:[#allocation5 + $0xdd0] sm:$0xf]  ;;  %v5879_v24 = vor.u32 %v6794_v13, %v5878_v11  ;;  %3225 = vmatpush.bf16.msrb.mxu2 %v4887_v19  ;;  %3244 = vmatpush.bf16.msra.mxu0 %v5623_v23  ;;  %v7237_v13 = vadd.f32 %v3006_v6, %v2994_v3  ;;  %v6438_v19 = vld [vmem:[#allocation5 + $0xd4] sm:$0xf]  ;;  %v2995_v4 = vpop.f32.mrf.mxu0 }
 0x164   :  { %v6858_v17 = vld [vmem:[#allocation5 + $0xdec] sm:$0xf0]  ;;  %3213 = vmatmul.bf16.vlgmr.msrb.gmra.mxu1 %v7183_v15  ;;  %v6414_v3 = vld [vmem:[#allocation5 + $0x14] sm:$0xf] }
 0x165   :  { %v6135_v25 = vor.u32 %v6858_v17, %v6134_v16  ;;  %v5590_v26 = vld [vmem:[#allocation5 + $0x990] sm:$0xf]  ;;  %3238 = vmatpush.bf16.msrb.mxu3 %v5143_v22  ;;  %3257 = vmatpush.bf16.msra.mxu1 %v5879_v24 }
 0x166   :  { %v6722_v27 = vld [vmem:[#allocation5 + $0x9ac] sm:$0xf0]  ;;  %3226 = vmatmul.bf16.vlgmr.msrb.gmra.mxu2 %v7176_v1 }
 0x167   :  { %v5846_v28 = vld [vmem:[#allocation5 + $0xb90] sm:$0xf]  ;;  %v5591_v36 = vor.u32 %v6722_v27, %v5590_v26  ;;  %3270 = vmatpush.bf16.msra.mxu2 %v6135_v25  ;;  %v4475_v27 = vor.u32 %v6438_v19, %v4472_v20  ;;  %v6726_v20 = vld [vmem:[#allocation5 + $0x9d4] sm:$0xf] }
 0x168   :  { %v6786_v29 = vld [vmem:[#allocation5 + $0xbac] sm:$0xf0]  ;;  %3239 = vmatmul.bf16.vlgmr.msrb.gmra.mxu3 %v7179_v9 }
 0x169   :  { %v6102_v30 = vld [vmem:[#allocation5 + $0xd90] sm:$0xf]  ;;  %v5847_v37 = vor.u32 %v6786_v29, %v5846_v28  ;;  %3283 = vmatpush.bf16.msra.mxu3 %v4603_v62  ;;  %3245 = vmatpush.bf16.msra.mxu0 %v5591_v36  ;;  %v3032_v36 = vpop.f32.mrf.mxu3 }
 0x16a   :  { %v6850_v32 = vld [vmem:[#allocation5 + $0xdac] sm:$0xf0] }
 0x16b   :  { %v6103_v40 = vor.u32 %v6850_v32, %v6102_v30  ;;  %v5558_v43 = vld [vmem:[#allocation5 + $0x950] sm:$0xf]  ;;  %3258 = vmatpush.bf16.msra.mxu1 %v5847_v37  ;;  %v3019_v30 = vpop.f32.mrf.mxu2  ;;  %v6430_v32 = vld [vmem:[#allocation5 + $0x94] sm:$0xf] }
 0x16c   :  { %v6714_v44 = vld [vmem:[#allocation5 + $0x96c] sm:$0xf0]  ;;  %v3020_v35 = vadd.f32 %v3019_v30, %v549_v42  ;;  %v5624_v42 = vld [vmem:[#allocation5 + $0x9f0] sm:$0xf0] }
 0x16d   :  { %v5814_v45 = vld [vmem:[#allocation5 + $0xb50] sm:$0xf]  ;;  %v5559_v52 = vor.u32 %v6714_v44, %v5558_v43  ;;  %3271 = vmatpush.bf16.msra.mxu2 %v6103_v40  ;;  %3284 = vmatpush.bf16.msra.mxu3 %v4571_v46  ;;  %v3008_v40 = vpop.f32.mrf.mxu1  ;;  %v5336_v30 = vld [vmem:[#allocation5 + $0x7b0] sm:$0xf0] }
 0x16e   :  { %v6778_v47 = vld [vmem:[#allocation5 + $0xb6c] sm:$0xf0]  ;;  %v4792_v40 = vld [vmem:[#allocation5 + $0x370] sm:$0xf0] }
 0x16f   :  { %v6070_v48 = vld [vmem:[#allocation5 + $0xd50] sm:$0xf]  ;;  %v5815_v53 = vor.u32 %v6778_v47, %v5814_v45  ;;  %3246 = vmatpush.bf16.msra.mxu0 %v5559_v52 }
 0x170   :  { %v6842_v49 = vld [vmem:[#allocation5 + $0xd6c] sm:$0xf0] }
 0x171   :  { %v6071_v54 = vor.u32 %v6842_v49, %v6070_v48  ;;  %v5526_v55 = vld [vmem:[#allocation5 + $0x910] sm:$0xf]  ;;  %3259 = vmatpush.bf16.msra.mxu1 %v5815_v53  ;;  %3285 = vmatpush.bf16.msra.mxu3 %v4539_v58  ;;  %v7240_v48 = vadd.f32 %v3032_v36, %v3020_v35  ;;  %v4443_v49 = vor.u32 %v6430_v32, %v4440_v33  ;;  %v6422_v53 = vld [vmem:[#allocation5 + $0x54] sm:$0xf] }
 0x172   :  { %v6706_v56 = vld [vmem:[#allocation5 + $0x92c] sm:$0xf0]  ;;  %v6718_v32 = vld [vmem:[#allocation5 + $0x994] sm:$0xf] }
 0x173   :  { %v5782_v57 = vld [vmem:[#allocation5 + $0xb10] sm:$0xf]  ;;  %v5527_v5 = vor.u32 %v6706_v56, %v5526_v55  ;;  %3272 = vmatpush.bf16.msra.mxu2 %v6071_v54  ;;  %v4408_v54 = vld [vmem:[#allocation5 + $0x70] sm:$0xf0]  ;;  %v3021_v6 = vpop.f32.mrf.mxu2 }
 0x174   :  { %v6770_v59 = vld [vmem:[#allocation5 + $0xb2c] sm:$0xf0]  ;;  %v4411_v0 = vor.u32 %v6422_v53, %v4408_v54  ;;  %v5592_v33 = vld [vmem:[#allocation5 + $0x9b0] sm:$0xf0] }
 0x175   :  { %v6038_v60 = vld [vmem:[#allocation5 + $0xd10] sm:$0xf]  ;;  %v5783_v7 = vor.u32 %v6770_v59, %v5782_v57  ;;  %3247 = vmatpush.bf16.msra.mxu0 %v5527_v5  ;;  %3286 = vmatpush.bf16.msra.mxu3 %v4507_v12  ;;  %v4376_v5 = vld [vmem:[#allocation5 + $0x30] sm:$0xf0] }
 0x176   :  { %v6834_v61 = vld [vmem:[#allocation5 + $0xd2c] sm:$0xf0]  ;;  %v5112_v12 = vld [vmem:[#allocation5 + $0x5f0] sm:$0xf0] }
 0x177   :  { %v6039_v8 = vor.u32 %v6834_v61, %v6038_v60  ;;  %v5494_v10 = vld [vmem:[#allocation5 + $0x8d0] sm:$0xf]  ;;  %3260 = vmatpush.bf16.msra.mxu1 %v5783_v7  ;;  %v6534_v7 = vld [vmem:[#allocation5 + $0x3d4] sm:$0xf] }
 0x178   :  { %v6698_v39 = vld [vmem:[#allocation5 + $0x8ec] sm:$0xf0]  ;;  %v6510_v54 = vld [vmem:[#allocation5 + $0x314] sm:$0xf] }
 0x179   :  { %v5750_v11 = vld [vmem:[#allocation5 + $0xad0] sm:$0xf]  ;;  %v5495_v21 = vor.u32 %v6698_v39, %v5494_v10  ;;  %3273 = vmatpush.bf16.msra.mxu2 %v6039_v8  ;;  %3287 = vmatpush.bf16.msra.mxu3 %v4475_v27  ;;  %v4856_v8 = vld [vmem:[#allocation5 + $0x3f0] sm:$0xf0]  ;;  %v3034_v39 = vpop.f32.mrf.mxu3 }
 0x17a   :  { %v6762_v16 = vld [vmem:[#allocation5 + $0xaec] sm:$0xf0]  ;;  %v6598_v10 = vld [vmem:[#allocation5 + $0x5d4] sm:$0xf]  ;;  %v3058_v39 = vpop.f32.mrf.mxu1 }
 0x17b   :  { %v6006_v17 = vld [vmem:[#allocation5 + $0xcd0] sm:$0xf]  ;;  %v5751_v22 = vor.u32 %v6762_v16, %v5750_v11  ;;  %3248 = vmatpush.bf16.msra.mxu0 %v5495_v21  ;;  %v6662_v16 = vld [vmem:[#allocation5 + $0x7d4] sm:$0xf]  ;;  %v4379_v21 = vor.u32 %v6414_v3, %v4376_v5 }
 0x17c   :  { %v6826_v18 = vld [vmem:[#allocation5 + $0xcec] sm:$0xf0]  ;;  %v6590_v27 = vld [vmem:[#allocation5 + $0x594] sm:$0xf] }
 0x17d   :  { %v6007_v23 = vor.u32 %v6826_v18, %v6006_v17  ;;  %v5462_v24 = vld [vmem:[#allocation5 + $0x890] sm:$0xf]  ;;  %3261 = vmatpush.bf16.msra.mxu1 %v5751_v22  ;;  %3288 = vmatpush.bf16.msra.mxu3 %v4443_v49  ;;  %v5368_v17 = vld [vmem:[#allocation5 + $0x7f0] sm:$0xf0]  ;;  %v4859_v22 = vor.u32 %v6534_v7, %v4856_v8 }
 0x17e   :  { %v6690_v25 = vld [vmem:[#allocation5 + $0x8ac] sm:$0xf0]  ;;  %v6710_v49 = vld [vmem:[#allocation5 + $0x954] sm:$0xf] }
 0x17f   :  { %v5718_v26 = vld [vmem:[#allocation5 + $0xa90] sm:$0xf]  ;;  %v5463_v37 = vor.u32 %v6690_v25, %v5462_v24  ;;  %3274 = vmatpush.bf16.msra.mxu2 %v6007_v23  ;;  %v5115_v23 = vor.u32 %v6598_v10, %v5112_v12  ;;  %v5371_v24 = vor.u32 %v6662_v16, %v5368_v17  ;;  %v6526_v25 = vld [vmem:[#allocation5 + $0x394] sm:$0xf] }
 0x180   :  { %v6754_v28 = vld [vmem:[#allocation5 + $0xaac] sm:$0xf0]  ;;  %v6502_v6 = vld [vmem:[#allocation5 + $0x2d4] sm:$0xf] }
 0x181   :  { %v5974_v62 = vld [vmem:[#allocation5 + $0xc90] sm:$0xf]  ;;  %v5719_v43 = vor.u32 %v6754_v28, %v5718_v26  ;;  %3249 = vmatpush.bf16.msra.mxu0 %v5463_v37  ;;  %3289 = vmatpush.bf16.msra.mxu3 %v4411_v0  ;;  %v4824_v26 = vld [vmem:[#allocation5 + $0x3b0] sm:$0xf0]  ;;  %v5627_v28 = vor.u32 %v6726_v20, %v5624_v42 }
 0x182   :  { %v6818_v29 = vld [vmem:[#allocation5 + $0xcac] sm:$0xf0]  ;;  %v4827_v35 = vor.u32 %v6526_v25, %v4824_v26  ;;  %v6518_v37 = vld [vmem:[#allocation5 + $0x354] sm:$0xf]  ;;  %v3071_v26 = vpop.f32.mrf.mxu2 }
 0x183   :  { %v5975_v44 = vor.u32 %v6818_v29, %v5974_v62  ;;  %v5430_v45 = vld [vmem:[#allocation5 + $0x850] sm:$0xf]  ;;  %3262 = vmatpush.bf16.msra.mxu1 %v5719_v43  ;;  %v5080_v62 = vld [vmem:[#allocation5 + $0x5b0] sm:$0xf0] }
 0x184   :  { %v6682_v46 = vld [vmem:[#allocation5 + $0x86c] sm:$0xf0]  ;;  %v6654_v29 = vld [vmem:[#allocation5 + $0x794] sm:$0xf]  ;;  %v5083_v36 = vor.u32 %v6590_v27, %v5080_v62 }
 0x185   :  { %v5686_v47 = vld [vmem:[#allocation5 + $0xa50] sm:$0xf]  ;;  %v5431_v55 = vor.u32 %v6682_v46, %v5430_v45  ;;  %3275 = vmatpush.bf16.msra.mxu2 %v5975_v44  ;;  %3290 = vmatpush.bf16.msra.mxu3 %v4379_v21  ;;  %v5339_v4 = vor.u32 %v6654_v29, %v5336_v30  ;;  %v6582_v43 = vld [vmem:[#allocation5 + $0x554] sm:$0xf]  ;;  %v5595_v44 = vor.u32 %v6718_v32, %v5592_v33  ;;  %v3084_v30 = vpop.f32.mrf.mxu3 }
 0x186   :  { %v6746_v50 = vld [vmem:[#allocation5 + $0xa6c] sm:$0xf0]  ;;  %v5048_v45 = vld [vmem:[#allocation5 + $0x570] sm:$0xf0] }
 0x187   :  { %v5942_v51 = vld [vmem:[#allocation5 + $0xc50] sm:$0xf]  ;;  %v5687_v58 = vor.u32 %v6746_v50, %v5686_v47  ;;  %3250 = vmatpush.bf16.msra.mxu0 %v5431_v55  ;;  %v6646_v46 = vld [vmem:[#allocation5 + $0x754] sm:$0xf] }
 0x188   :  { %v6810_v52 = vld [vmem:[#allocation5 + $0xc6c] sm:$0xf0]  ;;  %v5304_v47 = vld [vmem:[#allocation5 + $0x770] sm:$0xf0]  ;;  %3291 = vmatmul.bf16.vlgmr.msra.gmra.mxu3 %v7181_v14 }
 0x189   :  { %v5398_v56 = vld [vmem:[#allocation5 + $0x810] sm:$0xf]  ;;  %v5943_v59 = vor.u32 %v6810_v52, %v5942_v51  ;;  %3263 = vmatpush.bf16.msra.mxu1 %v5687_v58  ;;  %3335 = vmatpush.bf16.msrb.mxu3 %v5627_v28  ;;  %v5560_v50 = vld [vmem:[#allocation5 + $0x970] sm:$0xf0]  ;;  %v4795_v51 = vor.u32 %v6518_v37, %v4792_v40  ;;  %v5051_v52 = vor.u32 %v6582_v43, %v5048_v45 }
 0x18a   :  { %v6674_v57 = vld [vmem:[#allocation5 + $0x82c] sm:$0xf0]  ;;  %v5307_v53 = vor.u32 %v6646_v46, %v5304_v47  ;;  %v4760_v55 = vld [vmem:[#allocation5 + $0x330] sm:$0xf0]  ;;  %v3060_v46 = vpop.f32.mrf.mxu1 }
 0x18b   :  { %v5654_v60 = vld [vmem:[#allocation5 + $0xa10] sm:$0xf]  ;;  %v5399_v11 = vor.u32 %v6674_v57, %v5398_v56  ;;  %3276 = vmatpush.bf16.msra.mxu2 %v5943_v59  ;;  %v6574_v56 = vld [vmem:[#allocation5 + $0x514] sm:$0xf]  ;;  %v5563_v57 = vor.u32 %v6710_v49, %v5560_v50  ;;  %v4763_v0 = vor.u32 %v6510_v54, %v4760_v55  ;;  %v6459_v46 = vld [vmem:[#allocation5 + $0x174] sm:$0xf0] }
 0x18c   :  { %v6738_v61 = vld [vmem:[#allocation5 + $0xa2c] sm:$0xf0]  ;;  %v5016_v58 = vld [vmem:[#allocation5 + $0x530] sm:$0xf0] }
 0x18d   :  { %v5910_v63 = vld [vmem:[#allocation5 + $0xc10] sm:$0xf]  ;;  %v5655_v18 = vor.u32 %v6738_v61, %v5654_v60  ;;  %3251 = vmatpush.bf16.msra.mxu0 %v5399_v11  ;;  %3336 = vmatpush.bf16.msrb.mxu3 %v5595_v44  ;;  %v6638_v59 = vld [vmem:[#allocation5 + $0x714] sm:$0xf]  ;;  %v5019_v3 = vor.u32 %v6574_v56, %v5016_v58 }
 0x18e   :  { %v6802_v2 = vld [vmem:[#allocation5 + $0xc2c] sm:$0xf0]  ;;  %v5272_v60 = vld [vmem:[#allocation5 + $0x730] sm:$0xf0] }
 0x18f   :  { %v5911_v19 = vor.u32 %v6802_v2, %v5910_v63  ;;  %3264 = vmatpush.bf16.msra.mxu1 %v5655_v18  ;;  %v6702_v61 = vld [vmem:[#allocation5 + $0x914] sm:$0xf]  ;;  %v3045_v2 = vpop.f32.mrf.mxu0  ;;  %v5275_v5 = vor.u32 %v6638_v59, %v5272_v60 }
 0x190   :  { %3252 = vmatmul.bf16.vlgmr.msra.gmra.mxu0 %v7190_v38  ;;  %v5528_v63 = vld [vmem:[#allocation5 + $0x930] sm:$0xf0]  ;;  %v3046_v10 = vadd.f32 %v3045_v2, %v7240_v48 }
 0x191   :  { %3277 = vmatpush.bf16.msra.mxu2 %v5911_v19  ;;  %3296 = vmatpush.bf16.msrb.mxu0 %v4859_v22  ;;  %v4728_v7 = vld [vmem:[#allocation5 + $0x2f0] sm:$0xf0]  ;;  %v5531_v11 = vor.u32 %v6702_v61, %v5528_v63  ;;  %v3073_v63 = vpop.f32.mrf.mxu2 }
 0x192   :  { %3265 = vmatmul.bf16.vlgmr.msra.gmra.mxu1 %v7192_v41  ;;  %v6566_v8 = vld [vmem:[#allocation5 + $0x4d4] sm:$0xf]  ;;  %3337 = vmatpush.bf16.msrb.mxu3 %v5563_v57  ;;  %v3059_v20 = vadd.f32 %v3058_v39, %v3046_v10  ;;  %v4731_v42 = vor.u32 %v6502_v6, %v4728_v7  ;;  %v3086_v6 = vpop.f32.mrf.mxu3  ;;  %v6515_v63 = vld [vmem:[#allocation5 + $0x334] sm:$0xf0] }
 0x193   :  { %3309 = vmatpush.bf16.msrb.mxu1 %v5115_v23  ;;  %v4984_v12 = vld [vmem:[#allocation5 + $0x4f0] sm:$0xf0] }
 0x194   :  { %3278 = vmatmul.bf16.vlgmr.msra.gmra.mxu2 %v7188_v34  ;;  %v6630_v16 = vld [vmem:[#allocation5 + $0x6d4] sm:$0xf]  ;;  %v4987_v21 = vor.u32 %v6566_v8, %v4984_v12  ;;  %v3072_v29 = vadd.f32 %v3071_v26, %v3059_v20  ;;  %v4606_v12 = vld [vmem:[#allocation5 + $0x1d8] sm:$0xf] }
 0x195   :  { %3322 = vmatpush.bf16.msrb.mxu2 %v5371_v24  ;;  %3297 = vmatpush.bf16.msrb.mxu0 %v4827_v35  ;;  %v5240_v17 = vld [vmem:[#allocation5 + $0x6f0] sm:$0xf0]  ;;  %v6539_v20 = vld [vmem:[#allocation5 + $0x3f4] sm:$0xf0] }
 0x196   :  { %v6694_v18 = vld [vmem:[#allocation5 + $0x8d4] sm:$0xf]  ;;  %v5243_v22 = vor.u32 %v6630_v16, %v5240_v17  ;;  %3338 = vmatpush.bf16.msrb.mxu3 %v5531_v11  ;;  %v6475_v16 = vld [vmem:[#allocation5 + $0x1f4] sm:$0xf0] }
 0x197   :  { %3310 = vmatpush.bf16.msrb.mxu1 %v5083_v36  ;;  %v5496_v19 = vld [vmem:[#allocation5 + $0x8f0] sm:$0xf0]  ;;  %v7247_v36 = vadd.f32 %v3084_v30, %v3072_v29  ;;  %v4830_v29 = vld [vmem:[#allocation5 + $0x398] sm:$0xf] }
 0x198   :  { %v6494_v23 = vld [vmem:[#allocation5 + $0x294] sm:$0xf]  ;;  %v5499_v48 = vor.u32 %v6694_v18, %v5496_v19  ;;  %v4862_v19 = vld [vmem:[#allocation5 + $0x3d8] sm:$0xf] }
 0x199   :  { %3323 = vmatpush.bf16.msrb.mxu2 %v5339_v4  ;;  %3298 = vmatpush.bf16.msrb.mxu0 %v4795_v51  ;;  %v4696_v24 = vld [vmem:[#allocation5 + $0x2b0] sm:$0xf0]  ;;  %v3047_v4 = vpop.f32.mrf.mxu0  ;;  %v6531_v30 = vld [vmem:[#allocation5 + $0x3b4] sm:$0xf0] }
 0x19a   :  { %v6558_v25 = vld [vmem:[#allocation5 + $0x494] sm:$0xf]  ;;  %v4699_v35 = vor.u32 %v6494_v23, %v4696_v24  ;;  %3339 = vmatpush.bf16.msrb.mxu3 %v5499_v48  ;;  %v4607_v23 = vor.u32 %v6475_v16, %v4606_v12  ;;  %v4863_v48 = vor.u32 %v6539_v20, %v4862_v19  ;;  %v4734_v19 = vld [vmem:[#allocation5 + $0x2d8] sm:$0xf] }
 0x19b   :  { %3311 = vmatpush.bf16.msrb.mxu1 %v5051_v52  ;;  %v4952_v27 = vld [vmem:[#allocation5 + $0x4b0] sm:$0xf0]  ;;  %v6507_v20 = vld [vmem:[#allocation5 + $0x2f4] sm:$0xf0] }
 0x19c   :  { %v6622_v28 = vld [vmem:[#allocation5 + $0x694] sm:$0xf]  ;;  %v4955_v37 = vor.u32 %v6558_v25, %v4952_v27 }
 0x19d   :  { %3324 = vmatpush.bf16.msrb.mxu2 %v5307_v53  ;;  %3299 = vmatpush.bf16.msrb.mxu0 %v4763_v0  ;;  %v5208_v62 = vld [vmem:[#allocation5 + $0x6b0] sm:$0xf0] }
 0x19e   :  { %v6686_v32 = vld [vmem:[#allocation5 + $0x894] sm:$0xf]  ;;  %v5211_v40 = vor.u32 %v6622_v28, %v5208_v62  ;;  %v4574_v28 = vld [vmem:[#allocation5 + $0x198] sm:$0xf] }
 0x19f   :  { %3312 = vmatpush.bf16.msrb.mxu1 %v5019_v3  ;;  %v5464_v33 = vld [vmem:[#allocation5 + $0x8b0] sm:$0xf0]  ;;  %v6467_v62 = vld [vmem:[#allocation5 + $0x1b4] sm:$0xf0] }
 0x1a0   :  { %v6486_v43 = vld [vmem:[#allocation5 + $0x254] sm:$0xf]  ;;  %v5467_v47 = vor.u32 %v6686_v32, %v5464_v33 }
 0x1a1   :  { %3325 = vmatpush.bf16.msrb.mxu2 %v5275_v5  ;;  %3300 = vmatpush.bf16.msrb.mxu0 %v4731_v42  ;;  %v4664_v44 = vld [vmem:[#allocation5 + $0x270] sm:$0xf0] }
 0x1a2   :  { %v6550_v45 = vld [vmem:[#allocation5 + $0x454] sm:$0xf]  ;;  %v4667_v54 = vor.u32 %v6486_v43, %v4664_v44  ;;  %3340 = vmatpush.bf16.msrb.mxu3 %v5467_v47  ;;  %v4831_v43 = vor.u32 %v6531_v30, %v4830_v29  ;;  %v4798_v47 = vld [vmem:[#allocation5 + $0x358] sm:$0xf]  ;;  %v3136_v29 = vpop.f32.mrf.mxu3 }
 0x1a3   :  { %3313 = vmatpush.bf16.msrb.mxu1 %v4987_v21  ;;  %v4920_v49 = vld [vmem:[#allocation5 + $0x470] sm:$0xf0]  ;;  %v4702_v30 = vld [vmem:[#allocation5 + $0x298] sm:$0xf] }
 0x1a4   :  { %v6614_v50 = vld [vmem:[#allocation5 + $0x654] sm:$0xf]  ;;  %v4923_v57 = vor.u32 %v6550_v45, %v4920_v49  ;;  %v4542_v45 = vld [vmem:[#allocation5 + $0x158] sm:$0xf] }
 0x1a5   :  { %3326 = vmatpush.bf16.msrb.mxu2 %v5243_v22  ;;  %v5176_v51 = vld [vmem:[#allocation5 + $0x670] sm:$0xf0]  ;;  %3301 = vmatpush.bf16.msrb.mxu0 %v4699_v35  ;;  %v4575_v35 = vor.u32 %v6467_v62, %v4574_v28  ;;  %v6523_v49 = vld [vmem:[#allocation5 + $0x374] sm:$0xf0]  ;;  %v3123_v62 = vpop.f32.mrf.mxu2 }
 0x1a6   :  { %v6678_v52 = vld [vmem:[#allocation5 + $0x854] sm:$0xf]  ;;  %v5179_v58 = vor.u32 %v6614_v50, %v5176_v51  ;;  %v6435_v28 = vld [vmem:[#allocation5 + $0xb4] sm:$0xf0] }
 0x1a7   :  { %v5432_v53 = vld [vmem:[#allocation5 + $0x870] sm:$0xf0]  ;;  %3314 = vmatpush.bf16.msrb.mxu1 %v4955_v37 }
 0x1a8   :  { %v6478_v55 = vld [vmem:[#allocation5 + $0x214] sm:$0xf]  ;;  %v5435_v0 = vor.u32 %v6678_v52, %v5432_v53  ;;  %v4543_v52 = vor.u32 %v6459_v46, %v4542_v45 }
 0x1a9   :  { %v4632_v56 = vld [vmem:[#allocation5 + $0x230] sm:$0xf0]  ;;  %3327 = vmatpush.bf16.msrb.mxu2 %v5211_v40  ;;  %3302 = vmatpush.bf16.msrb.mxu0 %v4667_v54 }
 0x1aa   :  { %v6542_v59 = vld [vmem:[#allocation5 + $0x414] sm:$0xf]  ;;  %v4635_v39 = vor.u32 %v6478_v55, %v4632_v56  ;;  %3341 = vmatpush.bf16.msrb.mxu3 %v5435_v0  ;;  %v4799_v56 = vor.u32 %v6523_v49, %v4798_v47  ;;  %v7253_v0 = vld [vmem:[#allocation7] sm:$0xff] }
 0x1ab   :  { %v4888_v60 = vld [vmem:[#allocation5 + $0x430] sm:$0xf0]  ;;  %3315 = vmatpush.bf16.msrb.mxu1 %v4923_v57 }
 0x1ac   :  { %v6606_v61 = vld [vmem:[#allocation5 + $0x614] sm:$0xf]  ;;  %v4891_v17 = vor.u32 %v6542_v59, %v4888_v60  ;;  %v6451_v59 = vld [vmem:[#allocation5 + $0x134] sm:$0xf0]  ;;  %v3097_v60 = vpop.f32.mrf.mxu0 }
 0x1ad   :  { %v5144_v2 = vld [vmem:[#allocation5 + $0x630] sm:$0xf0]  ;;  %3328 = vmatpush.bf16.msrb.mxu2 %v5179_v58  ;;  %3303 = vmatpush.bf16.msrb.mxu0 %v4635_v39  ;;  %v4510_v58 = vld [vmem:[#allocation5 + $0x118] sm:$0xf] }
 0x1ae   :  { %v6670_v3 = vld [vmem:[#allocation5 + $0x814] sm:$0xf]  ;;  %v5147_v18 = vor.u32 %v6606_v61, %v5144_v2  ;;  %v4766_v61 = vld [vmem:[#allocation5 + $0x318] sm:$0xf]  ;;  %v550_v2 = vperm.slane %v7253_v0, 3 }
 0x1af   :  { %v5400_v5 = vld [vmem:[#allocation5 + $0x830] sm:$0xf0]  ;;  %3316 = vmatpush.bf16.msrb.mxu1 %v4891_v17  ;;  %v4767_v12 = vor.u32 %v6515_v63, %v4766_v61  ;;  %v4478_v17 = vld [vmem:[#allocation5 + $0xd8] sm:$0xf] }
 0x1b0   :  { %v6790_v7 = vld [vmem:[#allocation5 + $0xbd4] sm:$0xf]  ;;  %v5403_v42 = vor.u32 %v6670_v3, %v5400_v5  ;;  %3304 = vmatmul.bf16.vlgmr.msrb.gmra.mxu0 %v7183_v15  ;;  %v7257_v3 = vadd.f32 %v3097_v60, %v7247_v36  ;;  %v4382_v63 = vld [vmem:[#allocation5 + $0x18] sm:$0xf] }
 0x1b1   :  { %v5880_v8 = vld [vmem:[#allocation5 + $0xbf0] sm:$0xf0]  ;;  %3329 = vmatpush.bf16.msrb.mxu2 %v5147_v18  ;;  %v6443_v18 = vld [vmem:[#allocation5 + $0xf4] sm:$0xf0] }
 0x1b2   :  { %v6854_v10 = vld [vmem:[#allocation5 + $0xdd4] sm:$0xf]  ;;  %v5883_v21 = vor.u32 %v6790_v7, %v5880_v8  ;;  %3342 = vmatpush.bf16.msrb.mxu3 %v5403_v42  ;;  %3317 = vmatmul.bf16.vlgmr.msrb.gmra.mxu1 %v7176_v1  ;;  %v4511_v7 = vor.u32 %v6451_v59, %v4510_v58 }
 0x1b3   :  { %v6136_v11 = vld [vmem:[#allocation5 + $0xdf0] sm:$0xf0] }
 0x1b4   :  { %v6139_v22 = vor.u32 %v6854_v10, %v6136_v11  ;;  %v6782_v24 = vld [vmem:[#allocation5 + $0xb94] sm:$0xf]  ;;  %3348 = vmatpush.bf16.msra.mxu0 %v5883_v21  ;;  %3330 = vmatmul.bf16.vlgmr.msrb.gmra.mxu2 %v7179_v9  ;;  %v3110_v11 = vpop.f32.mrf.mxu1 }
 0x1b5   :  { %v5848_v25 = vld [vmem:[#allocation5 + $0xbb0] sm:$0xf0]  ;;  %3374 = vmatpush.bf16.msra.mxu2 %v4607_v23  ;;  %3343 = vmatmul.bf16.vlgmr.msrb.gmra.mxu3 %v7190_v38  ;;  %v3111_v42 = vadd.f32 %v3110_v11, %v550_v2  ;;  %v6603_v11 = vld [vmem:[#allocation5 + $0x5f4] sm:$0xf0] }
 0x1b6   :  { %v6846_v26 = vld [vmem:[#allocation5 + $0xd94] sm:$0xf]  ;;  %v5851_v32 = vor.u32 %v6782_v24, %v5848_v25  ;;  %3361 = vmatpush.bf16.msra.mxu1 %v6139_v22  ;;  %3387 = vmatpush.bf16.msra.mxu3 %v4863_v48  ;;  %v4479_v22 = vor.u32 %v6443_v18, %v4478_v17  ;;  %v6667_v17 = vld [vmem:[#allocation5 + $0x7f4] sm:$0xf0] }
 0x1b7   :  { %v6104_v27 = vld [vmem:[#allocation5 + $0xdb0] sm:$0xf0]  ;;  %v5630_v18 = vld [vmem:[#allocation5 + $0x9d8] sm:$0xf] }
 0x1b8   :  { %v6107_v33 = vor.u32 %v6846_v26, %v6104_v27  ;;  %v6774_v4 = vld [vmem:[#allocation5 + $0xb54] sm:$0xf]  ;;  %3349 = vmatpush.bf16.msra.mxu0 %v5851_v32  ;;  %v4735_v26 = vor.u32 %v6507_v20, %v4734_v19  ;;  %v4446_v27 = vld [vmem:[#allocation5 + $0x98] sm:$0xf] }
 0x1b9   :  { %v5816_v37 = vld [vmem:[#allocation5 + $0xb70] sm:$0xf0]  ;;  %3375 = vmatpush.bf16.msra.mxu2 %v4575_v35  ;;  %v6499_v32 = vld [vmem:[#allocation5 + $0x2b4] sm:$0xf0]  ;;  %v3099_v35 = vpop.f32.mrf.mxu0 }
 0x1ba   :  { %v6838_v40 = vld [vmem:[#allocation5 + $0xd54] sm:$0xf]  ;;  %v5819_v50 = vor.u32 %v6774_v4, %v5816_v37  ;;  %3362 = vmatpush.bf16.msra.mxu1 %v6107_v33  ;;  %3388 = vmatpush.bf16.msra.mxu3 %v4831_v43  ;;  %v3124_v33 = vadd.f32 %v3123_v62, %v3111_v42  ;;  %v4703_v49 = vor.u32 %v6499_v32, %v4702_v30  ;;  %v6731_v19 = vld [vmem:[#allocation5 + $0x9f4] sm:$0xf0] }
 0x1bb   :  { %v6072_v44 = vld [vmem:[#allocation5 + $0xd70] sm:$0xf0]  ;;  %v6659_v62 = vld [vmem:[#allocation5 + $0x7b4] sm:$0xf0] }
 0x1bc   :  { %v6075_v51 = vor.u32 %v6838_v40, %v6072_v44  ;;  %v6766_v53 = vld [vmem:[#allocation5 + $0xb14] sm:$0xf]  ;;  %3350 = vmatpush.bf16.msra.mxu0 %v5819_v50  ;;  %v4447_v40 = vor.u32 %v6435_v28, %v4446_v27  ;;  %v7259_v46 = vadd.f32 %v3136_v29, %v3124_v33  ;;  %v3112_v47 = vpop.f32.mrf.mxu1  ;;  %v5342_v27 = vld [vmem:[#allocation5 + $0x798] sm:$0xf] }
 0x1bd   :  { %v5784_v54 = vld [vmem:[#allocation5 + $0xb30] sm:$0xf0]  ;;  %3376 = vmatpush.bf16.msra.mxu2 %v4543_v52  ;;  %v6427_v52 = vld [vmem:[#allocation5 + $0x74] sm:$0xf0] }
 0x1be   :  { %v6830_v55 = vld [vmem:[#allocation5 + $0xd14] sm:$0xf]  ;;  %v5787_v5 = vor.u32 %v6766_v53, %v5784_v54  ;;  %3363 = vmatpush.bf16.msra.mxu1 %v6075_v51  ;;  %3389 = vmatpush.bf16.msra.mxu3 %v4799_v56  ;;  %v4414_v51 = vld [vmem:[#allocation5 + $0x58] sm:$0xf] }
 0x1bf   :  { %v6040_v57 = vld [vmem:[#allocation5 + $0xd30] sm:$0xf0]  ;;  %v4670_v53 = vld [vmem:[#allocation5 + $0x258] sm:$0xf]  ;;  %v4415_v59 = vor.u32 %v6427_v52, %v4414_v51 }
 0x1c0   :  { %v6043_v6 = vor.u32 %v6830_v55, %v6040_v57  ;;  %v6758_v8 = vld [vmem:[#allocation5 + $0xad4] sm:$0xf]  ;;  %3351 = vmatpush.bf16.msra.mxu0 %v5787_v5  ;;  %v6491_v54 = vld [vmem:[#allocation5 + $0x274] sm:$0xf0] }
 0x1c1   :  { %v5752_v10 = vld [vmem:[#allocation5 + $0xaf0] sm:$0xf0]  ;;  %3377 = vmatpush.bf16.msra.mxu2 %v4511_v7  ;;  %v4671_v2 = vor.u32 %v6491_v54, %v4670_v53  ;;  %v6419_v5 = vld [vmem:[#allocation5 + $0x34] sm:$0xf0] }
 0x1c2   :  { %v6822_v39 = vld [vmem:[#allocation5 + $0xcd4] sm:$0xf]  ;;  %v5755_v36 = vor.u32 %v6758_v8, %v5752_v10  ;;  %3364 = vmatpush.bf16.msra.mxu1 %v6043_v6  ;;  %3390 = vmatpush.bf16.msra.mxu3 %v4767_v12  ;;  %v4638_v6 = vld [vmem:[#allocation5 + $0x218] sm:$0xf]  ;;  %v3125_v8 = vpop.f32.mrf.mxu2  ;;  %v3138_v10 = vpop.f32.mrf.mxu3  ;;  %v4383_v42 = vor.u32 %v6419_v5, %v4382_v63 }
 0x1c3   :  { %v6008_v16 = vld [vmem:[#allocation5 + $0xcf0] sm:$0xf0]  ;;  %v6483_v7 = vld [vmem:[#allocation5 + $0x234] sm:$0xf0] }
 0x1c4   :  { %v6011_v21 = vor.u32 %v6822_v39, %v6008_v16  ;;  %v6750_v23 = vld [vmem:[#allocation5 + $0xa94] sm:$0xf]  ;;  %3352 = vmatpush.bf16.msra.mxu0 %v5755_v36  ;;  %v5118_v39 = vld [vmem:[#allocation5 + $0x5d8] sm:$0xf] }
 0x1c5   :  { %v5720_v24 = vld [vmem:[#allocation5 + $0xab0] sm:$0xf0]  ;;  %3378 = vmatpush.bf16.msra.mxu2 %v4479_v22  ;;  %v5374_v12 = vld [vmem:[#allocation5 + $0x7d8] sm:$0xf]  ;;  %v4639_v22 = vor.u32 %v6483_v7, %v4638_v6  ;;  %v3149_v7 = vpop.f32.mrf.mxu0 }
 0x1c6   :  { %v6814_v25 = vld [vmem:[#allocation5 + $0xc94] sm:$0xf]  ;;  %v5723_v4 = vor.u32 %v6750_v23, %v5720_v24  ;;  %3365 = vmatpush.bf16.msra.mxu1 %v6011_v21  ;;  %3391 = vmatpush.bf16.msra.mxu3 %v4735_v26  ;;  %v5886_v36 = vld [vmem:[#allocation5 + $0xbd8] sm:$0xf]  ;;  %v5119_v23 = vor.u32 %v6603_v11, %v5118_v39  ;;  %v5375_v24 = vor.u32 %v6667_v17, %v5374_v12  ;;  %v3162_v11 = vpop.f32.mrf.mxu1 }
 0x1c7   :  { %v5976_v48 = vld [vmem:[#allocation5 + $0xcb0] sm:$0xf0]  ;;  %v6795_v21 = vld [vmem:[#allocation5 + $0xbf4] sm:$0xf0]  ;;  %v3150_v39 = vadd.f32 %v3149_v7, %v7259_v46 }
 0x1c8   :  { %v5979_v37 = vor.u32 %v6814_v25, %v5976_v48  ;;  %v6742_v43 = vld [vmem:[#allocation5 + $0xa54] sm:$0xf]  ;;  %3353 = vmatpush.bf16.msra.mxu0 %v5723_v4  ;;  %v5631_v25 = vor.u32 %v6731_v19, %v5630_v18  ;;  %v5086_v26 = vld [vmem:[#allocation5 + $0x598] sm:$0xf]  ;;  %v5887_v28 = vor.u32 %v6795_v21, %v5886_v36  ;;  %v5343_v4 = vor.u32 %v6659_v62, %v5342_v27 }
 0x1c9   :  { %v5688_v44 = vld [vmem:[#allocation5 + $0xa70] sm:$0xf0]  ;;  %3379 = vmatpush.bf16.msra.mxu2 %v4447_v40  ;;  %v6595_v48 = vld [vmem:[#allocation5 + $0x5b4] sm:$0xf0]  ;;  %v3163_v36 = vadd.f32 %v3162_v11, %v3150_v39 }
 0x1ca   :  { %v6806_v45 = vld [vmem:[#allocation5 + $0xc54] sm:$0xf]  ;;  %v5691_v55 = vor.u32 %v6742_v43, %v5688_v44  ;;  %3366 = vmatpush.bf16.msra.mxu1 %v5979_v37  ;;  %3392 = vmatpush.bf16.msra.mxu3 %v4703_v49  ;;  %v5598_v29 = vld [vmem:[#allocation5 + $0x998] sm:$0xf]  ;;  %v5087_v35 = vor.u32 %v6595_v48, %v5086_v26  ;;  %v3175_v26 = vpop.f32.mrf.mxu2 }
 0x1cb   :  { %v5944_v50 = vld [vmem:[#allocation5 + $0xc70] sm:$0xf0]  ;;  %v6723_v30 = vld [vmem:[#allocation5 + $0x9b4] sm:$0xf0]  ;;  %v3176_v62 = vadd.f32 %v3175_v26, %v3163_v36  ;;  %v4864_v36 = vld [vmem:[#allocation5 + $0x3f8] sm:$0xf0] }
 0x1cc   :  { %v6734_v56 = vld [vmem:[#allocation5 + $0xa14] sm:$0xf]  ;;  %v5947_v58 = vor.u32 %v6806_v45, %v5944_v50  ;;  %3354 = vmatpush.bf16.msra.mxu0 %v5691_v55  ;;  %v5854_v32 = vld [vmem:[#allocation5 + $0xb98] sm:$0xf]  ;;  %v5599_v37 = vor.u32 %v6723_v30, %v5598_v29  ;;  %v3188_v29 = vpop.f32.mrf.mxu3 }
 0x1cd   :  { %v5656_v57 = vld [vmem:[#allocation5 + $0xa30] sm:$0xf0]  ;;  %3380 = vmatpush.bf16.msra.mxu2 %v4415_v59  ;;  %v6787_v33 = vld [vmem:[#allocation5 + $0xbb4] sm:$0xf0] }
 0x1ce   :  { %v6798_v60 = vld [vmem:[#allocation5 + $0xc14] sm:$0xf]  ;;  %v5659_v16 = vor.u32 %v6734_v56, %v5656_v57  ;;  %3367 = vmatpush.bf16.msra.mxu1 %v5947_v58  ;;  %3393 = vmatpush.bf16.msra.mxu3 %v4671_v2  ;;  %v5054_v40 = vld [vmem:[#allocation5 + $0x558] sm:$0xf]  ;;  %v5855_v45 = vor.u32 %v6787_v33, %v5854_v32 }
 0x1cf   :  { %v5912_v61 = vld [vmem:[#allocation5 + $0xc30] sm:$0xf0]  ;;  %v6587_v43 = vld [vmem:[#allocation5 + $0x574] sm:$0xf0] }
 0x1d0   :  { %v5915_v20 = vor.u32 %v6798_v60, %v5912_v61  ;;  %3355 = vmatpush.bf16.msra.mxu0 %v5659_v16  ;;  %v5310_v44 = vld [vmem:[#allocation5 + $0x758] sm:$0xf]  ;;  %v5055_v53 = vor.u32 %v6587_v43, %v5054_v40  ;;  %v3151_v43 = vpop.f32.mrf.mxu0 }
 0x1d1   :  { %3381 = vmatpush.bf16.msra.mxu2 %v4383_v42  ;;  %v6651_v47 = vld [vmem:[#allocation5 + $0x774] sm:$0xf0] }
 0x1d2   :  { %3368 = vmatpush.bf16.msra.mxu1 %v5915_v20  ;;  %3394 = vmatpush.bf16.msra.mxu3 %v4639_v22  ;;  %v5566_v49 = vld [vmem:[#allocation5 + $0x958] sm:$0xf]  ;;  %v5311_v54 = vor.u32 %v6651_v47, %v5310_v44  ;;  %v3177_v7 = vpop.f32.mrf.mxu2 }
 0x1d3   :  { %3356 = vmatmul.bf16.vlgmr.msra.gmra.mxu0 %v7192_v41  ;;  %v6715_v50 = vld [vmem:[#allocation5 + $0x974] sm:$0xf0]  ;;  %v4768_v7 = vld [vmem:[#allocation5 + $0x338] sm:$0xf0] }
 0x1d4   :  { %3400 = vmatpush.bf16.msrb.mxu0 %v5119_v23  ;;  %v5822_v51 = vld [vmem:[#allocation5 + $0xb58] sm:$0xf]  ;;  %3382 = vmatmul.bf16.vlgmr.msra.gmra.mxu2 %v7181_v14  ;;  %v5567_v55 = vor.u32 %v6715_v50, %v5566_v49 }
 0x1d5   :  { %3426 = vmatpush.bf16.msrb.mxu2 %v5631_v25  ;;  %3369 = vmatmul.bf16.vlgmr.msra.gmra.mxu1 %v7188_v34  ;;  %v6779_v52 = vld [vmem:[#allocation5 + $0xb74] sm:$0xf0] }
 0x1d6   :  { %3413 = vmatpush.bf16.msrb.mxu1 %v5375_v24  ;;  %3439 = vmatpush.bf16.msrb.mxu3 %v5887_v28  ;;  %v5022_v56 = vld [vmem:[#allocation5 + $0x518] sm:$0xf]  ;;  %v5823_v59 = vor.u32 %v6779_v52, %v5822_v51  ;;  %v3164_v51 = vpop.f32.mrf.mxu1 }
 0x1d7   :  { %3395 = vmatmul.bf16.vlgmr.msra.gmra.mxu3 %v7183_v15  ;;  %v6579_v57 = vld [vmem:[#allocation5 + $0x534] sm:$0xf0]  ;;  %v4544_v51 = vld [vmem:[#allocation5 + $0x178] sm:$0xf0] }
 0x1d8   :  { %3401 = vmatpush.bf16.msrb.mxu0 %v5087_v35  ;;  %v5278_v58 = vld [vmem:[#allocation5 + $0x718] sm:$0xf]  ;;  %v5023_v6 = vor.u32 %v6579_v57, %v5022_v56 }
 0x1d9   :  { %3427 = vmatpush.bf16.msrb.mxu2 %v5599_v37  ;;  %v6643_v60 = vld [vmem:[#allocation5 + $0x734] sm:$0xf0]  ;;  %v7266_v37 = vadd.f32 %v3188_v29, %v3176_v62  ;;  %v6463_v62 = vld [vmem:[#allocation5 + $0x19c] sm:$0xf] }
 0x1da   :  { %3414 = vmatpush.bf16.msrb.mxu1 %v5343_v4  ;;  %3440 = vmatpush.bf16.msrb.mxu3 %v5855_v45  ;;  %v5534_v61 = vld [vmem:[#allocation5 + $0x918] sm:$0xf]  ;;  %v5279_v8 = vor.u32 %v6643_v60, %v5278_v58 }
 0x1db   :  { %v6707_v63 = vld [vmem:[#allocation5 + $0x934] sm:$0xf0] }
 0x1dc   :  { %v5790_v2 = vld [vmem:[#allocation5 + $0xb18] sm:$0xf]  ;;  %3402 = vmatpush.bf16.msrb.mxu0 %v5055_v53  ;;  %v5535_v10 = vor.u32 %v6707_v63, %v5534_v61 }
 0x1dd   :  { %v6771_v5 = vld [vmem:[#allocation5 + $0xb34] sm:$0xf0]  ;;  %3428 = vmatpush.bf16.msrb.mxu2 %v5567_v55 }
 0x1de   :  { %3415 = vmatpush.bf16.msrb.mxu1 %v5311_v54  ;;  %v4990_v12 = vld [vmem:[#allocation5 + $0x4d8] sm:$0xf]  ;;  %3441 = vmatpush.bf16.msrb.mxu3 %v5823_v59  ;;  %v5791_v18 = vor.u32 %v6771_v5, %v5790_v2 }
 0x1df   :  { %v6571_v16 = vld [vmem:[#allocation5 + $0x4f4] sm:$0xf0] }
 0x1e0   :  { %v5246_v17 = vld [vmem:[#allocation5 + $0x6d8] sm:$0xf]  ;;  %3403 = vmatpush.bf16.msrb.mxu0 %v5023_v6  ;;  %v4991_v23 = vor.u32 %v6571_v16, %v4990_v12  ;;  %v3190_v12 = vpop.f32.mrf.mxu3 }
 0x1e1   :  { %v6635_v19 = vld [vmem:[#allocation5 + $0x6f4] sm:$0xf0]  ;;  %3429 = vmatpush.bf16.msrb.mxu2 %v5535_v10  ;;  %v3214_v12 = vpop.f32.mrf.mxu1 }
 0x1e2   :  { %v5502_v20 = vld [vmem:[#allocation5 + $0x8d8] sm:$0xf]  ;;  %3416 = vmatpush.bf16.msrb.mxu1 %v5279_v8  ;;  %v5247_v24 = vor.u32 %v6635_v19, %v5246_v17  ;;  %3442 = vmatpush.bf16.msrb.mxu3 %v5791_v18  ;;  %v6471_v18 = vld [vmem:[#allocation5 + $0x1dc] sm:$0xf] }
 0x1e3   :  { %v6699_v42 = vld [vmem:[#allocation5 + $0x8f4] sm:$0xf0] }
 0x1e4   :  { %v5758_v21 = vld [vmem:[#allocation5 + $0xad8] sm:$0xf]  ;;  %v5503_v25 = vor.u32 %v6699_v42, %v5502_v20  ;;  %3404 = vmatpush.bf16.msrb.mxu0 %v4991_v23  ;;  %v4608_v20 = vld [vmem:[#allocation5 + $0x1f8] sm:$0xf0] }
 0x1e5   :  { %v6763_v22 = vld [vmem:[#allocation5 + $0xaf4] sm:$0xf0]  ;;  %v6535_v42 = vld [vmem:[#allocation5 + $0x3dc] sm:$0xf] }
 0x1e6   :  { %v4958_v46 = vld [vmem:[#allocation5 + $0x498] sm:$0xf]  ;;  %v5759_v28 = vor.u32 %v6763_v22, %v5758_v21  ;;  %3417 = vmatpush.bf16.msrb.mxu1 %v5247_v24  ;;  %3430 = vmatpush.bf16.msrb.mxu2 %v5503_v25  ;;  %v6599_v23 = vld [vmem:[#allocation5 + $0x5dc] sm:$0xf] }
 0x1e7   :  { %v6563_v48 = vld [vmem:[#allocation5 + $0x4b4] sm:$0xf0]  ;;  %v5120_v24 = vld [vmem:[#allocation5 + $0x5f8] sm:$0xf0] }
 0x1e8   :  { %v5214_v27 = vld [vmem:[#allocation5 + $0x698] sm:$0xf]  ;;  %v4959_v40 = vor.u32 %v6563_v48, %v4958_v46  ;;  %3443 = vmatpush.bf16.msrb.mxu3 %v5759_v28  ;;  %v4611_v46 = vor.u32 %v6471_v18, %v4608_v20  ;;  %v4867_v48 = vor.u32 %v6535_v42, %v4864_v36  ;;  %v5123_v29 = vor.u32 %v6599_v23, %v5120_v24  ;;  %v6439_v20 = vld [vmem:[#allocation5 + $0xdc] sm:$0xf] }
 0x1e9   :  { %v6627_v30 = vld [vmem:[#allocation5 + $0x6b4] sm:$0xf0]  ;;  %v4480_v36 = vld [vmem:[#allocation5 + $0xf8] sm:$0xf0] }
 0x1ea   :  { %v5470_v32 = vld [vmem:[#allocation5 + $0x898] sm:$0xf]  ;;  %v5215_v44 = vor.u32 %v6627_v30, %v5214_v27  ;;  %3405 = vmatpush.bf16.msrb.mxu0 %v4959_v40  ;;  %v4576_v30 = vld [vmem:[#allocation5 + $0x1b8] sm:$0xf0] }
 0x1eb   :  { %v6691_v33 = vld [vmem:[#allocation5 + $0x8b4] sm:$0xf0]  ;;  %v4579_v43 = vor.u32 %v6463_v62, %v4576_v30  ;;  %v6567_v23 = vld [vmem:[#allocation5 + $0x4dc] sm:$0xf] }
 0x1ec   :  { %v5726_v35 = vld [vmem:[#allocation5 + $0xa98] sm:$0xf]  ;;  %v5471_v45 = vor.u32 %v6691_v33, %v5470_v32  ;;  %3418 = vmatpush.bf16.msrb.mxu1 %v5215_v44  ;;  %v6527_v32 = vld [vmem:[#allocation5 + $0x39c] sm:$0xf] }
 0x1ed   :  { %v6755_v4 = vld [vmem:[#allocation5 + $0xab4] sm:$0xf0]  ;;  %v4832_v33 = vld [vmem:[#allocation5 + $0x3b8] sm:$0xf0] }
 0x1ee   :  { %v4926_v47 = vld [vmem:[#allocation5 + $0x458] sm:$0xf]  ;;  %v5727_v52 = vor.u32 %v6755_v4, %v5726_v35  ;;  %3431 = vmatpush.bf16.msrb.mxu2 %v5471_v45  ;;  %v6591_v35 = vld [vmem:[#allocation5 + $0x59c] sm:$0xf]  ;;  %v4835_v44 = vor.u32 %v6527_v32, %v4832_v33 }
 0x1ef   :  { %v6555_v49 = vld [vmem:[#allocation5 + $0x474] sm:$0xf0]  ;;  %v5088_v4 = vld [vmem:[#allocation5 + $0x5b8] sm:$0xf0] }
 0x1f0   :  { %v5182_v50 = vld [vmem:[#allocation5 + $0x658] sm:$0xf]  ;;  %v4927_v58 = vor.u32 %v6555_v49, %v4926_v47  ;;  %3444 = vmatpush.bf16.msrb.mxu3 %v5727_v52  ;;  %v6455_v49 = vld [vmem:[#allocation5 + $0x15c] sm:$0xf] }
 0x1f1   :  { %v6619_v53 = vld [vmem:[#allocation5 + $0x674] sm:$0xf0]  ;;  %v6519_v52 = vld [vmem:[#allocation5 + $0x35c] sm:$0xf] }
 0x1f2   :  { %v5438_v54 = vld [vmem:[#allocation5 + $0x858] sm:$0xf]  ;;  %v5183_v61 = vor.u32 %v6619_v53, %v5182_v50  ;;  %3406 = vmatpush.bf16.msrb.mxu0 %v4927_v58  ;;  %v5091_v50 = vor.u32 %v6591_v35, %v5088_v4  ;;  %v4800_v53 = vld [vmem:[#allocation5 + $0x378] sm:$0xf0]  ;;  %v4547_v58 = vor.u32 %v6455_v49, %v4544_v51  ;;  %v3216_v49 = vpop.f32.mrf.mxu1 }
 0x1f3   :  { %v6683_v55 = vld [vmem:[#allocation5 + $0x874] sm:$0xf0]  ;;  %v4992_v24 = vld [vmem:[#allocation5 + $0x4f8] sm:$0xf0] }
 0x1f4   :  { %v5694_v56 = vld [vmem:[#allocation5 + $0xa58] sm:$0xf]  ;;  %v5439_v63 = vor.u32 %v6683_v55, %v5438_v54  ;;  %3419 = vmatpush.bf16.msrb.mxu1 %v5183_v61  ;;  %v6583_v54 = vld [vmem:[#allocation5 + $0x55c] sm:$0xf]  ;;  %v4995_v30 = vor.u32 %v6567_v23, %v4992_v24 }
 0x1f5   :  { %v6747_v57 = vld [vmem:[#allocation5 + $0xa74] sm:$0xf0]  ;;  %v5056_v55 = vld [vmem:[#allocation5 + $0x578] sm:$0xf0] }
 0x1f6   :  { %v4894_v59 = vld [vmem:[#allocation5 + $0x418] sm:$0xf]  ;;  %v5695_v8 = vor.u32 %v6747_v57, %v5694_v56  ;;  %3432 = vmatpush.bf16.msrb.mxu2 %v5439_v63  ;;  %v6447_v61 = vld [vmem:[#allocation5 + $0x11c] sm:$0xf]  ;;  %v551_v63 = vperm.slane %v7253_v0, 4 }
 0x1f7   :  { %v6547_v60 = vld [vmem:[#allocation5 + $0x434] sm:$0xf0]  ;;  %v6431_v62 = vld [vmem:[#allocation5 + $0x9c] sm:$0xf] }
 0x1f8   :  { %v5150_v2 = vld [vmem:[#allocation5 + $0x618] sm:$0xf]  ;;  %v4895_v19 = vor.u32 %v6547_v60, %v4894_v59  ;;  %3445 = vmatpush.bf16.msrb.mxu3 %v5695_v8  ;;  %v4803_v59 = vor.u32 %v6519_v52, %v4800_v53  ;;  %v6575_v8 = vld [vmem:[#allocation5 + $0x51c] sm:$0xf] }
 0x1f9   :  { %v6611_v5 = vld [vmem:[#allocation5 + $0x634] sm:$0xf0]  ;;  %v4448_v32 = vld [vmem:[#allocation5 + $0xb8] sm:$0xf0] }
 0x1fa   :  { %v5406_v6 = vld [vmem:[#allocation5 + $0x818] sm:$0xf]  ;;  %v5151_v21 = vor.u32 %v6611_v5, %v5150_v2  ;;  %3407 = vmatpush.bf16.msrb.mxu0 %v4895_v19  ;;  %v5059_v2 = vor.u32 %v6583_v54, %v5056_v55  ;;  %v4512_v5 = vld [vmem:[#allocation5 + $0x138] sm:$0xf0]  ;;  %v4451_v51 = vor.u32 %v6431_v62, %v4448_v32 }
 0x1fb   :  { %v6675_v10 = vld [vmem:[#allocation5 + $0x834] sm:$0xf0]  ;;  %v6495_v33 = vld [vmem:[#allocation5 + $0x29c] sm:$0xf] }
 0x1fc   :  { %v5662_v39 = vld [vmem:[#allocation5 + $0xa18] sm:$0xf]  ;;  %v5407_v22 = vor.u32 %v6675_v10, %v5406_v6  ;;  %3420 = vmatpush.bf16.msrb.mxu1 %v5151_v21  ;;  %v6511_v6 = vld [vmem:[#allocation5 + $0x31c] sm:$0xf] }
 0x1fd   :  { %v6739_v11 = vld [vmem:[#allocation5 + $0xa34] sm:$0xf0]  ;;  %3408 = vmatmul.bf16.vlgmr.msrb.gmra.mxu0 %v7176_v1  ;;  %v5024_v10 = vld [vmem:[#allocation5 + $0x538] sm:$0xf0] }
 0x1fe   :  { %v6142_v16 = vld [vmem:[#allocation5 + $0xdd8] sm:$0xf]  ;;  %v5663_v25 = vor.u32 %v6739_v11, %v5662_v39  ;;  %3433 = vmatpush.bf16.msrb.mxu2 %v5407_v22  ;;  %v3201_v11 = vpop.f32.mrf.mxu0  ;;  %v5027_v0 = vor.u32 %v6575_v8, %v5024_v10  ;;  %v6503_v21 = vld [vmem:[#allocation5 + $0x2dc] sm:$0xf] }
 0x1ff   :  { %v6859_v17 = vld [vmem:[#allocation5 + $0xdf4] sm:$0xf0]  ;;  %3421 = vmatmul.bf16.vlgmr.msrb.gmra.mxu1 %v7179_v9  ;;  %v3202_v42 = vadd.f32 %v3201_v11, %v551_v63  ;;  %v4736_v22 = vld [vmem:[#allocation5 + $0x2f8] sm:$0xf0] }
 0x200   :  { %v6143_v26 = vor.u32 %v6859_v17, %v6142_v16  ;;  %v6110_v27 = vld [vmem:[#allocation5 + $0xd98] sm:$0xf]  ;;  %3446 = vmatpush.bf16.msrb.mxu3 %v5663_v25  ;;  %3465 = vmatpush.bf16.msra.mxu1 %v4611_v46  ;;  %v4515_v16 = vor.u32 %v6447_v61, %v4512_v5  ;;  %v4771_v17 = vor.u32 %v6511_v6, %v4768_v7  ;;  %v4704_v35 = vld [vmem:[#allocation5 + $0x2b8] sm:$0xf0] }
 0x201   :  { %v6851_v28 = vld [vmem:[#allocation5 + $0xdb4] sm:$0xf0]  ;;  %3434 = vmatmul.bf16.vlgmr.msrb.gmra.mxu2 %v7190_v38  ;;  %v3215_v25 = vadd.f32 %v3214_v12, %v3202_v42  ;;  %v4483_v46 = vor.u32 %v6439_v20, %v4480_v36  ;;  %v4707_v52 = vor.u32 %v6495_v33, %v4704_v35  ;;  %v6423_v55 = vld [vmem:[#allocation5 + $0x5c] sm:$0xf] }
 0x202   :  { %3452 = vmatpush.bf16.msra.mxu0 %v6143_v26  ;;  %v6111_v40 = vor.u32 %v6851_v28, %v6110_v27  ;;  %3478 = vmatpush.bf16.msra.mxu2 %v4867_v48  ;;  %v6078_v45 = vld [vmem:[#allocation5 + $0xd58] sm:$0xf]  ;;  %v4739_v48 = vor.u32 %v6503_v21, %v4736_v22  ;;  %v4928_v61 = vld [vmem:[#allocation5 + $0x478] sm:$0xf0] }
 0x203   :  { %v6843_v47 = vld [vmem:[#allocation5 + $0xd74] sm:$0xf0]  ;;  %3447 = vmatmul.bf16.vlgmr.msrb.gmra.mxu3 %v7192_v41  ;;  %v6415_v8 = vld [vmem:[#allocation5 + $0x1c] sm:$0xf] }
 0x204   :  { %3491 = vmatpush.bf16.msra.mxu3 %v5123_v29  ;;  %v6079_v56 = vor.u32 %v6843_v47, %v6078_v45  ;;  %v6046_v57 = vld [vmem:[#allocation5 + $0xd18] sm:$0xf]  ;;  %3466 = vmatpush.bf16.msra.mxu1 %v4579_v43  ;;  %v3227_v29 = vpop.f32.mrf.mxu2  ;;  %v4960_v43 = vld [vmem:[#allocation5 + $0x4b8] sm:$0xf0] }
 0x205   :  { %v6835_v60 = vld [vmem:[#allocation5 + $0xd34] sm:$0xf0]  ;;  %v3228_v4 = vadd.f32 %v3227_v29, %v3215_v25  ;;  %v4384_v10 = vld [vmem:[#allocation5 + $0x38] sm:$0xf0] }
 0x206   :  { %3453 = vmatpush.bf16.msra.mxu0 %v6111_v40  ;;  %3479 = vmatpush.bf16.msra.mxu2 %v4835_v44  ;;  %v6047_v39 = vor.u32 %v6835_v60, %v6046_v57  ;;  %v6014_v18 = vld [vmem:[#allocation5 + $0xcd8] sm:$0xf]  ;;  %v6559_v40 = vld [vmem:[#allocation5 + $0x49c] sm:$0xf]  ;;  %v3240_v44 = vpop.f32.mrf.mxu3  ;;  %v3203_v47 = vpop.f32.mrf.mxu0  ;;  %v4387_v24 = vor.u32 %v6415_v8, %v4384_v10 }
 0x207   :  { %v6827_v19 = vld [vmem:[#allocation5 + $0xcf4] sm:$0xf0]  ;;  %v4416_v57 = vld [vmem:[#allocation5 + $0x78] sm:$0xf0] }
 0x208   :  { %3492 = vmatpush.bf16.msra.mxu3 %v5091_v50  ;;  %3467 = vmatpush.bf16.msra.mxu1 %v4547_v58  ;;  %v6015_v26 = vor.u32 %v6827_v19, %v6014_v18  ;;  %v5982_v27 = vld [vmem:[#allocation5 + $0xc98] sm:$0xf]  ;;  %v7273_v50 = vadd.f32 %v3240_v44, %v3228_v4  ;;  %v6487_v58 = vld [vmem:[#allocation5 + $0x25c] sm:$0xf]  ;;  %v4419_v6 = vor.u32 %v6423_v55, %v4416_v57 }
 0x209   :  { %v6819_v28 = vld [vmem:[#allocation5 + $0xcb4] sm:$0xf0]  ;;  %v6551_v60 = vld [vmem:[#allocation5 + $0x45c] sm:$0xf] }
 0x20a   :  { %3454 = vmatpush.bf16.msra.mxu0 %v6079_v56  ;;  %3480 = vmatpush.bf16.msra.mxu2 %v4803_v59  ;;  %v5983_v45 = vor.u32 %v6819_v28, %v5982_v27  ;;  %v5950_v53 = vld [vmem:[#allocation5 + $0xc58] sm:$0xf]  ;;  %v4963_v56 = vor.u32 %v6559_v40, %v4960_v43  ;;  %v4672_v59 = vld [vmem:[#allocation5 + $0x278] sm:$0xf0]  ;;  %v4931_v12 = vor.u32 %v6551_v60, %v4928_v61 }
 0x20b   :  { %v6811_v54 = vld [vmem:[#allocation5 + $0xc74] sm:$0xf0]  ;;  %v4675_v7 = vor.u32 %v6487_v58, %v4672_v59  ;;  %v4896_v18 = vld [vmem:[#allocation5 + $0x438] sm:$0xf0] }
 0x20c   :  { %3493 = vmatpush.bf16.msra.mxu3 %v5059_v2  ;;  %3468 = vmatpush.bf16.msra.mxu1 %v4515_v16  ;;  %v5951_v63 = vor.u32 %v6811_v54, %v5950_v53  ;;  %v5918_v2 = vld [vmem:[#allocation5 + $0xc18] sm:$0xf]  ;;  %v3229_v11 = vpop.f32.mrf.mxu2  ;;  %v4640_v16 = vld [vmem:[#allocation5 + $0x238] sm:$0xf0] }
 0x20d   :  { %v6803_v5 = vld [vmem:[#allocation5 + $0xc34] sm:$0xf0]  ;;  %v6663_v19 = vld [vmem:[#allocation5 + $0x7dc] sm:$0xf] }
 0x20e   :  { %3455 = vmatpush.bf16.msra.mxu0 %v6047_v39  ;;  %3481 = vmatpush.bf16.msra.mxu2 %v4771_v17  ;;  %v6479_v39 = vld [vmem:[#allocation5 + $0x21c] sm:$0xf]  ;;  %v5919_v36 = vor.u32 %v6803_v5, %v5918_v2 }
 0x20f   :  { %v6543_v17 = vld [vmem:[#allocation5 + $0x41c] sm:$0xf]  ;;  %v4643_v25 = vor.u32 %v6479_v39, %v4640_v16  ;;  %v7280_v16 = vpop.f32.mrf.mxu0 }
 0x210   :  { %3494 = vmatpush.bf16.msra.mxu3 %v5027_v0  ;;  %3469 = vmatpush.bf16.msra.mxu1 %v4483_v46  ;;  %v5376_v20 = vld [vmem:[#allocation5 + $0x7f8] sm:$0xf0]  ;;  %v3242_v0 = vpop.f32.mrf.mxu3 }
 0x211   :  { %v6727_v42 = vld [vmem:[#allocation5 + $0x9dc] sm:$0xf]  ;;  %v5379_v27 = vor.u32 %v6663_v19, %v5376_v20 }
 0x212   :  { %3456 = vmatpush.bf16.msra.mxu0 %v6015_v26  ;;  %3482 = vmatpush.bf16.msra.mxu2 %v4739_v48  ;;  %v5632_v21 = vld [vmem:[#allocation5 + $0x9f8] sm:$0xf0]  ;;  %v4899_v48 = vor.u32 %v6543_v17, %v4896_v18 }
 0x213   :  { %v6791_v22 = vld [vmem:[#allocation5 + $0xbdc] sm:$0xf]  ;;  %v5635_v28 = vor.u32 %v6727_v42, %v5632_v21 }
 0x214   :  { %3495 = vmatpush.bf16.msra.mxu3 %v4995_v30  ;;  %3470 = vmatpush.bf16.msra.mxu1 %v4451_v51  ;;  %v5888_v23 = vld [vmem:[#allocation5 + $0xbf8] sm:$0xf0] }
 0x215   :  { %v6855_v26 = vld [vmem:[#allocation5 + $0xddc] sm:$0xf]  ;;  %v5891_v62 = vor.u32 %v6791_v22, %v5888_v23 }
 0x216   :  { %3457 = vmatpush.bf16.msra.mxu0 %v5983_v45  ;;  %3483 = vmatpush.bf16.msra.mxu2 %v4707_v52  ;;  %v6144_v46 = vld [vmem:[#allocation5 + $0xdf8] sm:$0xf0] }
 0x217   :  { %v6655_v29 = vld [vmem:[#allocation5 + $0x79c] sm:$0xf]  ;;  %v6147_v33 = vor.u32 %v6855_v26, %v6144_v46  ;;  %v6151_v26 = vmul.f32 -1.442695, %v7266_v37 }
 0x218   :  { %3496 = vmatpush.bf16.msra.mxu3 %v4963_v56  ;;  %3471 = vmatpush.bf16.msra.mxu1 %v4419_v6  ;;  %v5344_v30 = vld [vmem:[#allocation5 + $0x7b8] sm:$0xf0] }
 0x219   :  { %v6719_v32 = vld [vmem:[#allocation5 + $0x99c] sm:$0xf]  ;;  %v5347_v45 = vor.u32 %v6655_v29, %v5344_v30 }
 0x21a   :  { %3458 = vmatpush.bf16.msra.mxu0 %v5951_v63  ;;  %3484 = vmatpush.bf16.msra.mxu2 %v4675_v7  ;;  %v5600_v35 = vld [vmem:[#allocation5 + $0x9b8] sm:$0xf0] }
 0x21b   :  { %v6783_v4 = vld [vmem:[#allocation5 + $0xb9c] sm:$0xf]  ;;  %v5603_v47 = vor.u32 %v6719_v32, %v5600_v35 }
 0x21c   :  { %3497 = vmatpush.bf16.msra.mxu3 %v4931_v12  ;;  %v5856_v40 = vld [vmem:[#allocation5 + $0xbb8] sm:$0xf0]  ;;  %3472 = vmatpush.bf16.msra.mxu1 %v4387_v24 }
 0x21d   :  { %v6847_v43 = vld [vmem:[#allocation5 + $0xd9c] sm:$0xf]  ;;  %v5859_v49 = vor.u32 %v6783_v4, %v5856_v40  ;;  %v7289_v4 = vpop.f32.mrf.mxu3 }
 0x21e   :  { %3459 = vmatpush.bf16.msra.mxu0 %v5919_v36  ;;  %3485 = vmatpush.bf16.msra.mxu2 %v4643_v25  ;;  %v6112_v44 = vld [vmem:[#allocation5 + $0xdb8] sm:$0xf0]  ;;  %v6150_v25 = vmul.f32 -1.442695, %v7257_v3 }
 0x21f   :  { %v6647_v51 = vld [vmem:[#allocation5 + $0x75c] sm:$0xf]  ;;  %v6115_v54 = vor.u32 %v6847_v43, %v6112_v44  ;;  %3473 = vmatmul.bf16.vlgmr.msra.gmra.mxu1 %v7181_v14  ;;  %v7282_v14 = vpop.f32.mrf.mxu1  ;;  %v3255_v43 = vpop.f32.mrf.mxu0 }
 0x220   :  { %3498 = vmatpush.bf16.msra.mxu3 %v4899_v48  ;;  %3517 = vmatpush.bf16.msrb.mxu1 %v5635_v28  ;;  %v5312_v52 = vld [vmem:[#allocation5 + $0x778] sm:$0xf0]  ;;  %v7287_v28 = vpop.f32.mrf.mxu2 }
 0x221   :  { %v6711_v53 = vld [vmem:[#allocation5 + $0x95c] sm:$0xf]  ;;  %3460 = vmatmul.bf16.vlgmr.msra.gmra.mxu0 %v7188_v34  ;;  %3486 = vmatmul.bf16.vlgmr.msra.gmra.mxu2 %v7183_v15  ;;  %v5315_v60 = vor.u32 %v6647_v51, %v5312_v52 }
 0x222   :  { %3504 = vmatpush.bf16.msrb.mxu0 %v5379_v27  ;;  %3530 = vmatpush.bf16.msrb.mxu2 %v5891_v62  ;;  %v5568_v55 = vld [vmem:[#allocation5 + $0x978] sm:$0xf0] }
 0x223   :  { %v6775_v56 = vld [vmem:[#allocation5 + $0xb5c] sm:$0xf]  ;;  %3499 = vmatmul.bf16.vlgmr.msra.gmra.mxu3 %v7176_v1  ;;  %v5571_v61 = vor.u32 %v6711_v53, %v5568_v55  ;;  %v6148_v1 = vmul.f32 -1.442695, %v7220_v31  ;;  %v6149_v31 = vmul.f32 -1.442695, %v7237_v13 }
 0x224   :  { %3543 = vmatpush.bf16.msrb.mxu3 %v6147_v33  ;;  %v5824_v57 = vld [vmem:[#allocation5 + $0xb78] sm:$0xf0]  ;;  %3518 = vmatpush.bf16.msrb.mxu1 %v5603_v47 }
 0x225   :  { %v6839_v58 = vld [vmem:[#allocation5 + $0xd5c] sm:$0xf]  ;;  %v5827_v63 = vor.u32 %v6775_v56, %v5824_v57  ;;  %6935 = vpow2.f32 %v6148_v1 }
 0x226   :  { %v6080_v59 = vld [vmem:[#allocation5 + $0xd78] sm:$0xf0]  ;;  %3505 = vmatpush.bf16.msrb.mxu0 %v5347_v45  ;;  %3531 = vmatpush.bf16.msrb.mxu2 %v5859_v49  ;;  %6937 = vpow2.f32 %v6149_v31 }
 0x227   :  { %v6639_v2 = vld [vmem:[#allocation5 + $0x71c] sm:$0xf]  ;;  %v6083_v7 = vor.u32 %v6839_v58, %v6080_v59  ;;  %6939 = vpow2.f32 %v6150_v25  ;;  %v3268_v44 = vpop.f32.mrf.mxu1  ;;  %v6875_v25 = vld [vmem:[#allocation8 + $0x78] sm:$0xff] }
 0x228   :  { %v5280_v5 = vld [vmem:[#allocation5 + $0x738] sm:$0xf0]  ;;  %3544 = vmatpush.bf16.msrb.mxu3 %v6115_v54  ;;  %3519 = vmatpush.bf16.msrb.mxu1 %v5571_v61  ;;  %6941 = vpow2.f32 %v6151_v26  ;;  %v6883_v26 = vld [vmem:[#allocation8 + $0xb8] sm:$0xff] }
 0x229   :  { %v6703_v6 = vld [vmem:[#allocation5 + $0x91c] sm:$0xf]  ;;  %v5283_v12 = vor.u32 %v6639_v2, %v5280_v5 }
 0x22a   :  { %v5536_v8 = vld [vmem:[#allocation5 + $0x938] sm:$0xf0]  ;;  %3506 = vmatpush.bf16.msrb.mxu0 %v5315_v60  ;;  %3532 = vmatpush.bf16.msrb.mxu2 %v5827_v63 }
 0x22b   :  { %v6767_v10 = vld [vmem:[#allocation5 + $0xb1c] sm:$0xf]  ;;  %v5539_v17 = vor.u32 %v6703_v6, %v5536_v8  ;;  %v6936_v59 = vpop.eup %6935  ;;  %v3281_v8 = vpop.f32.mrf.mxu2 }
 0x22c   :  { %v5792_v15 = vld [vmem:[#allocation5 + $0xb38] sm:$0xf0]  ;;  %3545 = vmatpush.bf16.msrb.mxu3 %v6083_v7  ;;  %v6938_v61 = vpop.eup %6937 }
 0x22d   :  { %v6831_v39 = vld [vmem:[#allocation5 + $0xd1c] sm:$0xf]  ;;  %v5795_v18 = vor.u32 %v6767_v10, %v5792_v15  ;;  %3520 = vmatpush.bf16.msrb.mxu1 %v5539_v17  ;;  %v6940_v10 = vpop.eup %6939  ;;  %v7291_v17 = vadd.f32 1.0, %v6936_v59  ;;  %v7325_v43 = vpop.f32.mrf.mxu0 }
 0x22e   :  { %v6048_v11 = vld [vmem:[#allocation5 + $0xd38] sm:$0xf0]  ;;  %3507 = vmatpush.bf16.msrb.mxu0 %v5283_v12  ;;  %v6942_v12 = vpop.eup %6941 }
 0x22f   :  { %v6631_v19 = vld [vmem:[#allocation5 + $0x6dc] sm:$0xf]  ;;  %v6051_v0 = vor.u32 %v6831_v39, %v6048_v11  ;;  %3533 = vmatpush.bf16.msrb.mxu2 %v5795_v18  ;;  %v7297_v31 = vadd.f32 1.0, %v6942_v12  ;;  %6943 = vrcp.f32 %v7291_v17  ;;  %vm3593_vm0 = vweird.f32 %v7291_v17 }
 0x230   :  { %v5248_v20 = vld [vmem:[#allocation5 + $0x6f8] sm:$0xf0]  ;;  %v3599_v12 = vand.u32 2147483648, %v7291_v17 }
 0x231   :  { %v6695_v42 = vld [vmem:[#allocation5 + $0x8dc] sm:$0xf]  ;;  %v5251_v46 = vor.u32 %v6631_v19, %v5248_v20  ;;  %3546 = vmatpush.bf16.msrb.mxu3 %v6051_v0  ;;  %v3294_v20 = vpop.f32.mrf.mxu3  ;;  %vm3638_vm5 = vweird.f32 %v7297_v31 }
 0x232   :  { %v5504_v36 = vld [vmem:[#allocation5 + $0x8f8] sm:$0xf0] }
 0x233   :  { %v6759_v21 = vld [vmem:[#allocation5 + $0xadc] sm:$0xf]  ;;  %v5507_v48 = vor.u32 %v6695_v42, %v5504_v36  ;;  %3508 = vmatpush.bf16.msrb.mxu0 %v5251_v46  ;;  %v7293_v42 = vadd.f32 1.0, %v6938_v61  ;;  %v7295_v36 = vadd.f32 1.0, %v6940_v10  ;;  %v6891_v46 = vld [vmem:[#allocation8 + $0xf8] sm:$0xff] }
 0x234   :  { %v5760_v22 = vld [vmem:[#allocation5 + $0xaf8] sm:$0xf0] }
 0x235   :  { %v6823_v23 = vld [vmem:[#allocation5 + $0xcdc] sm:$0xf]  ;;  %v5763_v27 = vor.u32 %v6759_v21, %v5760_v22  ;;  %3521 = vmatpush.bf16.msrb.mxu1 %v5507_v48  ;;  %6945 = vrcp.f32 %v7293_v42  ;;  %v3254_v48 = vadd.f32 %v7280_v16, %v7273_v50  ;;  %v6865_v16 = vld [vmem:[#allocation8 + $0x28] sm:$0xff]  ;;  %v3307_v10 = vpop.f32.mrf.mxu0  ;;  %vm3608_vm2 = vweird.f32 %v7293_v42 }
 0x236   :  { %v6016_v24 = vld [vmem:[#allocation5 + $0xcf8] sm:$0xf0]  ;;  %6947 = vrcp.f32 %v7295_v36  ;;  %v3614_v20 = vand.u32 2147483648, %v7293_v42  ;;  %vm3623_vm8 = vweird.f32 %v7295_v36 }
 0x237   :  { %v6623_v62 = vld [vmem:[#allocation5 + $0x69c] sm:$0xf]  ;;  %v6019_v13 = vor.u32 %v6823_v23, %v6016_v24  ;;  %3534 = vmatpush.bf16.msrb.mxu2 %v5763_v27  ;;  %v6867_v24 = vld [vmem:[#allocation8 + $0x38] sm:$0xff]  ;;  %6949 = vrcp.f32 %v7297_v31  ;;  %v7331_v59 = vpop.f32.mrf.mxu2 }
 0x238   :  { %v5216_v29 = vld [vmem:[#allocation5 + $0x6b8] sm:$0xf0] }
 0x239   :  { %v6687_v30 = vld [vmem:[#allocation5 + $0x89c] sm:$0xf]  ;;  %v5219_v40 = vor.u32 %v6623_v62, %v5216_v29  ;;  %3547 = vmatpush.bf16.msrb.mxu3 %v6019_v13  ;;  %v7306_v13 = vpop.eup %6943  ;;  %v7333_v61 = vpop.f32.mrf.mxu3 }
 0x23a   :  { %v5472_v32 = vld [vmem:[#allocation5 + $0x8b8] sm:$0xf0]  ;;  %vm3594_vm1 = vweird.f32 %v7306_v13 }
 0x23b   :  { %v6751_v33 = vld [vmem:[#allocation5 + $0xa9c] sm:$0xf]  ;;  %v5475_v45 = vor.u32 %v6687_v30, %v5472_v32  ;;  %3509 = vmatpush.bf16.msrb.mxu0 %v5219_v40  ;;  %v3267_v32 = vadd.f32 %v7282_v14, %v3254_v48  ;;  %v7311_v50 = vpop.eup %6945  ;;  %v6889_v14 = vld [vmem:[#allocation8 + $0xe8] sm:$0xff]  ;;  %v6864_v40 = vld [vmem:[#allocation8 + $0x20] sm:$0xff] }
 0x23c   :  { %v5728_v35 = vld [vmem:[#allocation5 + $0xab8] sm:$0xf0]  ;;  %vm3609_vm3 = vweird.f32 %v7311_v50  ;;  %v6877_v48 = vld [vmem:[#allocation8 + $0x88] sm:$0xff]  ;;  %vm7360_vm6 = vmor %vm3593_vm0, %vm3594_vm1 }
 0x23d   :  { %v6815_v3 = vld [vmem:[#allocation5 + $0xc9c] sm:$0xf]  ;;  %v5731_v47 = vor.u32 %v6751_v33, %v5728_v35  ;;  %3522 = vmatpush.bf16.msrb.mxu1 %v5475_v45  ;;  %v7314_v33 = vpop.eup %6947  ;;  %v6881_v35 = vld [vmem:[#allocation8 + $0xa8] sm:$0xff]  ;;  %v6872_v45 = vld [vmem:[#allocation8 + $0x60] sm:$0xff] }
 0x23e   :  { %v5984_v37 = vld [vmem:[#allocation5 + $0xcb8] sm:$0xf0]  ;;  %vm3624_vm4 = vweird.f32 %v7314_v33  ;;  %vm7372_vm9 = vmor %vm3608_vm2, %vm3609_vm3 }
 0x23f   :  { %v6615_v49 = vld [vmem:[#allocation5 + $0x65c] sm:$0xf]  ;;  %v5987_v53 = vor.u32 %v6815_v3, %v5984_v37  ;;  %3535 = vmatpush.bf16.msrb.mxu2 %v5731_v47  ;;  %v7316_v3 = vpop.eup %6949  ;;  %v3619_v37 = vmul.f32 %v7314_v33, %v7295_v36  ;;  %v6880_v47 = vld [vmem:[#allocation8 + $0xa0] sm:$0xff]  ;;  %vm7383_vm10 = vmor %vm3623_vm8, %vm3624_vm4 }
 0x240   :  { %v5184_v51 = vld [vmem:[#allocation5 + $0x678] sm:$0xf0]  ;;  %v3634_v44 = vmul.f32 %v7316_v3, %v7297_v31  ;;  %vm3639_vm7 = vweird.f32 %v7316_v3 }
 0x241   :  { %v6679_v52 = vld [vmem:[#allocation5 + $0x85c] sm:$0xf]  ;;  %v5187_v60 = vor.u32 %v6615_v49, %v5184_v51  ;;  %3548 = vmatpush.bf16.msrb.mxu3 %v5987_v53  ;;  %v7329_v49 = vpop.f32.mrf.mxu1  ;;  %vm7401_vm11 = vmor %vm3638_vm5, %vm3639_vm7 }
 0x242   :  { %v5440_v54 = vld [vmem:[#allocation5 + $0x878] sm:$0xf0] }
 0x243   :  { %v6743_v55 = vld [vmem:[#allocation5 + $0xa5c] sm:$0xf]  ;;  %v5443_v63 = vor.u32 %v6679_v52, %v5440_v54  ;;  %3510 = vmatpush.bf16.msrb.mxu0 %v5187_v60  ;;  %v3620_v54 = vsub.f32 1.0, %v3619_v37  ;;  %v6887_v60 = vld [vmem:[#allocation8 + $0xd8] sm:$0xff] }
 0x244   :  { %v5696_v56 = vld [vmem:[#allocation5 + $0xa78] sm:$0xf0] }
 0x245   :  { %v6807_v57 = vld [vmem:[#allocation5 + $0xc5c] sm:$0xf]  ;;  %v5699_v2 = vor.u32 %v6743_v55, %v5696_v56  ;;  %3523 = vmatpush.bf16.msrb.mxu1 %v5443_v63  ;;  %v6863_v55 = vld [vmem:[#allocation8 + $0x18] sm:$0xff]  ;;  %v3635_v56 = vsub.f32 1.0, %v3634_v44  ;;  %v3615_v44 = vor.u32 1.1754944e-38, %v3614_v20 }
 0x246   :  { %v5952_v58 = vld [vmem:[#allocation5 + $0xc78] sm:$0xf0] }
 0x247   :  { %v6607_v5 = vld [vmem:[#allocation5 + $0x61c] sm:$0xf]  ;;  %v5955_v15 = vor.u32 %v6807_v57, %v5952_v58  ;;  %3536 = vmatpush.bf16.msrb.mxu2 %v5699_v2  ;;  %v6871_v57 = vld [vmem:[#allocation8 + $0x58] sm:$0xff] }
 0x248   :  { %v5152_v6 = vld [vmem:[#allocation5 + $0x638] sm:$0xf0]  ;;  %v6879_v58 = vld [vmem:[#allocation8 + $0x98] sm:$0xff] }
 0x249   :  { %v6671_v7 = vld [vmem:[#allocation5 + $0x81c] sm:$0xf]  ;;  %v5155_v0 = vor.u32 %v6607_v5, %v5152_v6  ;;  %3549 = vmatpush.bf16.msrb.mxu3 %v5955_v15  ;;  %v3621_v5 = vmul.f32 %v7314_v33, %v3620_v54  ;;  %v7338_v6 = vld [vmem:[#allocation7] sm:$0xff]  ;;  %v3636_v15 = vmul.f32 %v7316_v3, %v3635_v56 }
 0x24a   :  { %v5408_v39 = vld [vmem:[#allocation5 + $0x838] sm:$0xf0]  ;;  %v6907_v54 = vld [vmem:[#allocation8 + $0x178] sm:$0xff] }
 0x24b   :  { %v6735_v11 = vld [vmem:[#allocation5 + $0xa1c] sm:$0xf]  ;;  %v5411_v21 = vor.u32 %v6671_v7, %v5408_v39  ;;  %3511 = vmatpush.bf16.msrb.mxu0 %v5155_v0  ;;  %v552_v7 = vperm.slane %v7338_v6, 5 }
 0x24c   :  { %v5664_v1 = vld [vmem:[#allocation5 + $0xa38] sm:$0xf0] }
 0x24d   :  { %v6799_v18 = vld [vmem:[#allocation5 + $0xc1c] sm:$0xf]  ;;  %v5667_v22 = vor.u32 %v6735_v11, %v5664_v1  ;;  %3524 = vmatpush.bf16.msrb.mxu1 %v5411_v21  ;;  %v3320_v1 = vpop.f32.mrf.mxu1  ;;  %v3293_v21 = vadd.f32 %v7289_v4, %v552_v7  ;;  %v6897_v7 = vld [vmem:[#allocation8 + $0x128] sm:$0xff] }
 0x24e   :  { %v5920_v19 = vld [vmem:[#allocation5 + $0xc38] sm:$0xf0]  ;;  %3512 = vmatmul.bf16.vlgmr.msrb.gmra.mxu0 %v7179_v9  ;;  %v6873_v9 = vld [vmem:[#allocation8 + $0x68] sm:$0xff]  ;;  %v6896_v1 = vld [vmem:[#allocation8 + $0x120] sm:$0xff] }
 0x24f   :  { %v5923_v23 = vor.u32 %v6799_v18, %v5920_v19  ;;  %3537 = vmatpush.bf16.msrb.mxu2 %v5667_v22  ;;  %4232 = vmatpush.bf16.msra.mxu0 %v6867_v24  ;;  %v6866_v27 = vld [vmem:[#allocation8 + $0x30] sm:$0xff]  ;;  %v3597_v19 = vand.u32 2147483647, %v7291_v17  ;;  %v6861_v22 = vld [vmem:[#allocation8 + $0x8] sm:$0xff]  ;;  %v3622_v24 = vadd.f32 %v7314_v33, %v3621_v5 }
 0x250   :  { %v6874_v62 = vld [vmem:[#allocation8 + $0x70] sm:$0xff]  ;;  %3525 = vmatmul.bf16.vlgmr.msrb.gmra.mxu1 %v7190_v38  ;;  %v3589_v38 = vmul.f32 %v7306_v13, %v7291_v17  ;;  %v6901_v17 = vld [vmem:[#allocation8 + $0x148] sm:$0xff] }
 0x251   :  { %3550 = vmatpush.bf16.msrb.mxu3 %v5923_v23  ;;  %4245 = vmatpush.bf16.msra.mxu1 %v6875_v25  ;;  %v6882_v29 = vld [vmem:[#allocation8 + $0xb0] sm:$0xff]  ;;  %vm3598_vm12 = vcmp.eq.f32.partialorder %v3597_v19, 8.507059e+37 }
 0x252   :  { %v6890_v30 = vld [vmem:[#allocation8 + $0xf0] sm:$0xff]  ;;  %3538 = vmatmul.bf16.vlgmr.msrb.gmra.mxu2 %v7192_v41  ;;  %v3280_v41 = vadd.f32 %v7287_v28, %v3267_v32  ;;  %v6888_v28 = vld [vmem:[#allocation8 + $0xe0] sm:$0xff]  ;;  %v3590_v51 = vsub.f32 1.0, %v3589_v38  ;;  %v3612_v32 = vand.u32 2147483647, %v7293_v42 }
 0x253   :  { %4258 = vmatpush.bf16.msra.mxu2 %v6883_v26  ;;  %4233 = vmatpush.bf16.msra.mxu0 %v6866_v27  ;;  %v6862_v8 = vld [vmem:[#allocation8 + $0x10] sm:$0xff]  ;;  %v3629_v26 = vand.u32 2147483648, %v7295_v36  ;;  %v3637_v27 = vadd.f32 %v7316_v3, %v3636_v15  ;;  %v6900_v38 = vld [vmem:[#allocation8 + $0x140] sm:$0xff] }
 0x254   :  { %3551 = vmatmul.bf16.vlgmr.msrb.gmra.mxu3 %v7188_v34  ;;  %v3604_v34 = vmul.f32 %v7311_v50, %v7293_v42  ;;  %v6152_v52 = vmul.f32 -1.442695, %v3280_v41  ;;  %v3591_v63 = vmul.f32 %v7306_v13, %v3590_v51  ;;  %v6870_v39 = vld [vmem:[#allocation8 + $0x50] sm:$0xff]  ;;  %v3642_v41 = vand.u32 2147483647, %v7297_v31  ;;  %v6899_v51 = vld [vmem:[#allocation8 + $0x138] sm:$0xff] }
 0x255   :  { %4271 = vmatpush.bf16.msra.mxu3 %v6891_v46  ;;  %4246 = vmatpush.bf16.msra.mxu1 %v6874_v62  ;;  %v6878_v11 = vld [vmem:[#allocation8 + $0x90] sm:$0xff]  ;;  %v6869_v46 = vld [vmem:[#allocation8 + $0x48] sm:$0xff]  ;;  %v3333_v62 = vpop.f32.mrf.mxu2  ;;  %v3306_v42 = vadd.f32 %v7325_v43, %v3293_v21  ;;  %v3630_v43 = vor.u32 1.1754944e-38, %v3629_v26  ;;  %vm3613_vm13 = vcmp.eq.f32.partialorder %v3612_v32, 8.507059e+37  ;;  %v6903_v21 = vld [vmem:[#allocation8 + $0x158] sm:$0xff] }
 0x256   :  { %v3605_v53 = vsub.f32 1.0, %v3604_v34  ;;  %6951 = vpow2.f32 %v6152_v52  ;;  %v6886_v18 = vld [vmem:[#allocation8 + $0xd0] sm:$0xff]  ;;  %v3592_v0 = vadd.f32 %v7306_v13, %v3591_v63  ;;  %vm3643_vm15 = vcmp.eq.f32.partialorder %v3642_v41, 8.507059e+37  ;;  %v6893_v62 = vld [vmem:[#allocation8 + $0x108] sm:$0xff] }
 0x257   :  { %4259 = vmatpush.bf16.msra.mxu2 %v6882_v29  ;;  %4234 = vmatpush.bf16.msra.mxu0 %v6865_v16  ;;  %v3644_v29 = vand.u32 2147483648, %v7297_v31  ;;  %v3627_v16 = vand.u32 2147483647, %v7295_v36  ;;  %v6860_v36 = vld [vmem:[#allocation8] sm:$0xff] }
 0x258   :  { %v3606_v2 = vmul.f32 %v7311_v50, %v3605_v53 }
 0x259   :  { %4272 = vmatpush.bf16.msra.mxu3 %v6890_v30  ;;  %4247 = vmatpush.bf16.msra.mxu1 %v6873_v9  ;;  %v6885_v30 = vld [vmem:[#allocation8 + $0xc8] sm:$0xff]  ;;  %v3346_v9 = vpop.f32.mrf.mxu3  ;;  %vm3628_vm14 = vcmp.eq.f32.partialorder %v3627_v16, 8.507059e+37 }
 0x25a   :  { %v3607_v23 = vadd.f32 %v7311_v50, %v3606_v2  ;;  %v6906_v2 = vld [vmem:[#allocation8 + $0x170] sm:$0xff] }
 0x25b   :  { %4260 = vmatpush.bf16.msra.mxu2 %v6881_v35  ;;  %4235 = vmatpush.bf16.msra.mxu0 %v6864_v40  ;;  %v3600_v35 = vor.u32 1.1754944e-38, %v3599_v12  ;;  %v3370_v12 = vpop.f32.mrf.mxu1 }
 0x25c   :  { %v6952_v25 = vpop.eup %6951  ;;  %v3611_v37 = vsel %vm7372_vm9, %v7311_v50, %v3607_v23  ;;  %v3641_v50 = vsel %vm7401_vm11, %v7316_v3, %v3637_v27 }
 0x25d   :  { %4273 = vmatpush.bf16.msra.mxu3 %v6889_v14  ;;  %4248 = vmatpush.bf16.msra.mxu1 %v6872_v45  ;;  %v3596_v14 = vsel %vm7360_vm6, %v7306_v13, %v3592_v0  ;;  %v7388_v34 = vadd.f32 1.0, %v6952_v25  ;;  %v3626_v13 = vsel %vm7383_vm10, %v7314_v33, %v3622_v24  ;;  %v6868_v45 = vld [vmem:[#allocation8 + $0x40] sm:$0xff]  ;;  %v3645_v33 = vor.u32 1.1754944e-38, %v3644_v29  ;;  %v6895_v0 = vld [vmem:[#allocation8 + $0x118] sm:$0xff]  ;;  %v6894_v25 = vld [vmem:[#allocation8 + $0x110] sm:$0xff] }
 0x25e   :  { %v3601_v31 = vsel %vm3598_vm12, %v3600_v35, %v3596_v14  ;;  %v3616_v52 = vsel %vm3613_vm13, %v3615_v44, %v3611_v37  ;;  %v3631_v53 = vsel %vm3628_vm14, %v3630_v43, %v3626_v13  ;;  %v6892_v14 = vld [vmem:[#allocation8 + $0x100] sm:$0xff] }
 0x25f   :  { %4261 = vmatpush.bf16.msra.mxu2 %v6880_v47  ;;  %4236 = vmatpush.bf16.msra.mxu0 %v6863_v55  ;;  %v6876_v47 = vld [vmem:[#allocation8 + $0x80] sm:$0xff]  ;;  %6953 = vrcp.f32 %v7388_v34  ;;  %v3319_v55 = vadd.f32 %v7329_v49, %v3306_v42  ;;  %v3646_v56 = vsel %vm3643_vm15, %v3645_v33, %v3641_v50  ;;  %v3708_v3 = vpack.c.bf16 %v3601_v31, %v3601_v31  ;;  %v6915_v33 = vld [vmem:[#allocation8 + $0x1b8] sm:$0xff] }
 0x260   :  { %v3711_v63 = vpack.c.bf16 %v3646_v56, %v3646_v56  ;;  %vm3653_vm0 = vweird.f32 %v7388_v34  ;;  %v3659_v27 = vand.u32 2147483648, %v7388_v34 }
 0x261   :  { %4274 = vmatpush.bf16.msra.mxu3 %v6888_v28  ;;  %4249 = vmatpush.bf16.msra.mxu1 %v6871_v57  ;;  %v6884_v28 = vld [vmem:[#allocation8 + $0xc0] sm:$0xff]  ;;  %v3709_v57 = vpack.c.bf16 %v3616_v52, %v3616_v52  ;;  %v3332_v5 = vadd.f32 %v7331_v59, %v3319_v55  ;;  %v553_v52 = vperm.slane %v7338_v6, 6 }
 0x262   :  { %v3660_v35 = vor.u32 1.1754944e-38, %v3659_v27 }
 0x263   :  { %4262 = vmatpush.bf16.msra.mxu2 %v6879_v58  ;;  %4237 = vmatpush.bf16.msra.mxu0 %v6862_v8  ;;  %v3710_v58 = vpack.c.bf16 %v3631_v53, %v3631_v53  ;;  %v6905_v8 = vld [vmem:[#allocation8 + $0x168] sm:$0xff]  ;;  %v3345_v10 = vadd.f32 %v7333_v61, %v3332_v5  ;;  %v7413_v61 = vpop.f32.mrf.mxu3  ;;  %v3372_v26 = vpop.f32.mrf.mxu1  ;;  %v6914_v53 = vld [vmem:[#allocation8 + $0x1b0] sm:$0xff] }
 0x265   :  { %4275 = vmatpush.bf16.msra.mxu3 %v6887_v60  ;;  %4250 = vmatpush.bf16.msra.mxu1 %v6870_v39  ;;  %v6898_v60 = vld [vmem:[#allocation8 + $0x130] sm:$0xff]  ;;  %v6954_v49 = vpop.eup %6953  ;;  %v3357_v39 = vpop.f32.mrf.mxu0 }
 0x266   :  { %v3649_v15 = vmul.f32 %v6954_v49, %v7388_v34  ;;  %vm3654_vm1 = vweird.f32 %v6954_v49 }
 0x267   :  { %4263 = vmatpush.bf16.msra.mxu2 %v6878_v11  ;;  %4238 = vmatpush.bf16.msra.mxu0 %v6861_v22  ;;  %v3358_v11 = vadd.f32 %v3357_v39, %v3345_v10  ;;  %v3383_v22 = vpop.f32.mrf.mxu2  ;;  %vm3655_vm2 = vmor %vm3653_vm0, %vm3654_vm1  ;;  %v6910_v10 = vld [vmem:[#allocation8 + $0x190] sm:$0xff] }
 0x268   :  { %v3650_v19 = vsub.f32 1.0, %v3649_v15  ;;  %v3384_v56 = vadd.f32 %v3383_v22, %v553_v52  ;;  %v6909_v15 = vld [vmem:[#allocation8 + $0x188] sm:$0xff]  ;;  %v6923_v22 = vld [vmem:[#allocation8 + $0x1f8] sm:$0xff] }
 0x269   :  { %4276 = vmatpush.bf16.msra.mxu3 %v6886_v18  ;;  %4251 = vmatpush.bf16.msra.mxu1 %v6869_v46  ;;  %v6904_v18 = vld [vmem:[#allocation8 + $0x160] sm:$0xff]  ;;  %v3371_v59 = vadd.f32 %v3370_v12, %v3358_v11  ;;  %v6902_v46 = vld [vmem:[#allocation8 + $0x150] sm:$0xff] }
 0x26a   :  { %v3651_v23 = vmul.f32 %v6954_v49, %v3650_v19 }
 0x26b   :  { %4264 = vmatpush.bf16.msra.mxu2 %v6877_v48  ;;  %4239 = vmatpush.bf16.msra.mxu0 %v6860_v36  ;;  %v6153_v20 = vmul.f32 -1.442695, %v3371_v59  ;;  %v3398_v9 = vpop.f32.mrf.mxu3 }
 0x26c   :  { %v3652_v48 = vadd.f32 %v6954_v49, %v3651_v23 }
 0x26d   :  { %4277 = vmatpush.bf16.msra.mxu3 %v6885_v30  ;;  %4252 = vmatpush.bf16.msra.mxu1 %v6868_v45  ;;  %6955 = vpow2.f32 %v6153_v20  ;;  %v3359_v24 = vpop.f32.mrf.mxu0  ;;  %v3657_v30 = vand.u32 2147483647, %v7388_v34 }
 0x26e   :  { %4240 = vmatmul.bf16.vlgmr.msra.gmra.mxu0 %v3708_v3  ;;  %v3656_v16 = vsel %vm3655_vm2, %v6954_v49, %v3652_v48  ;;  %v6921_v48 = vld [vmem:[#allocation8 + $0x1e8] sm:$0xff] }
 0x26f   :  { %4265 = vmatpush.bf16.msra.mxu2 %v6876_v47  ;;  %4284 = vmatpush.bf16.msrb.mxu0 %v6899_v51  ;;  %v3385_v32 = vpop.f32.mrf.mxu2  ;;  %vm3658_vm3 = vcmp.eq.f32.partialorder %v3657_v30, 8.507059e+37 }
 0x270   :  { %4253 = vmatmul.bf16.vlgmr.msra.gmra.mxu1 %v3709_v57  ;;  %v3661_v41 = vsel %vm3658_vm3, %v3660_v35, %v3656_v16  ;;  %v6913_v57 = vld [vmem:[#allocation8 + $0x1a8] sm:$0xff]  ;;  %v6919_v16 = vld [vmem:[#allocation8 + $0x1d8] sm:$0xff] }
 0x271   :  { %4278 = vmatpush.bf16.msra.mxu3 %v6884_v28  ;;  %4297 = vmatpush.bf16.msrb.mxu1 %v6907_v54  ;;  %v3712_v36 = vpack.c.bf16 %v3661_v41, %v3661_v41 }
 0x272   :  { %4266 = vmatmul.bf16.vlgmr.msra.gmra.mxu2 %v3710_v58 }
 0x273   :  { %4285 = vmatpush.bf16.msrb.mxu0 %v6898_v60  ;;  %v6956_v4 = vpop.eup %6955  ;;  %4310 = vmatpush.bf16.msrb.mxu2 %v6915_v33  ;;  %v3397_v60 = vadd.f32 %v7413_v61, %v3384_v56 }
 0x274   :  { %4279 = vmatmul.bf16.vlgmr.msra.gmra.mxu3 %v3711_v63  ;;  %v3585_v29 = vadd.f32 1.0, %v6956_v4  ;;  %v6912_v63 = vld [vmem:[#allocation8 + $0x1a0] sm:$0xff]  ;;  %v554_v4 = vperm.slane %v7338_v6, 7 }
 0x275   :  { %4298 = vmatpush.bf16.msrb.mxu1 %v6906_v2  ;;  %4323 = vmatpush.bf16.msrb.mxu3 %v6923_v22 }
 0x276   :  { %6957 = vrcp.f32 %v3585_v29  ;;  %v3674_v13 = vand.u32 2147483648, %v3585_v29  ;;  %v3672_v44 = vand.u32 2147483647, %v3585_v29  ;;  %vm3668_vm5 = vweird.f32 %v3585_v29 }
 0x277   :  { %4286 = vmatpush.bf16.msrb.mxu0 %v6897_v7  ;;  %4311 = vmatpush.bf16.msrb.mxu2 %v6914_v53  ;;  %v6911_v7 = vld [vmem:[#allocation8 + $0x198] sm:$0xff] }
 0x278   :  { %v3675_v45 = vor.u32 1.1754944e-38, %v3674_v13  ;;  %vm3673_vm7 = vcmp.eq.f32.partialorder %v3672_v44, 8.507059e+37 }
 0x279   :  { %4299 = vmatpush.bf16.msrb.mxu1 %v6905_v8 }
 0x27a   :  { %v3409_v50 = vpop.f32.mrf.mxu0 }
 0x27b   :  { %4287 = vmatpush.bf16.msrb.mxu0 %v6896_v1  ;;  %4312 = vmatpush.bf16.msrb.mxu2 %v6913_v57  ;;  %v3410_v49 = vadd.f32 %v3409_v50, %v3397_v60  ;;  %v6908_v1 = vld [vmem:[#allocation8 + $0x180] sm:$0xff] }
 0x27c   :  { %v6958_v42 = vpop.eup %6957  ;;  %v3422_v51 = vpop.f32.mrf.mxu1  ;;  %v6934_v57 = vld [vmem:[#allocation10] ss:$0 sm:$0xff] }
 0x27d   :  { %4300 = vmatpush.bf16.msrb.mxu1 %v6904_v18  ;;  %v3664_v37 = vmul.f32 %v6958_v42, %v3585_v29  ;;  %vm3669_vm4 = vweird.f32 %v6958_v42  ;;  %v3423_v8 = vadd.f32 %v3422_v51, %v3410_v49 }
 0x27e   :  { %vm3670_vm6 = vmor %vm3668_vm5, %vm3669_vm4 }
 0x27f   :  { %4288 = vmatpush.bf16.msrb.mxu0 %v6895_v0  ;;  %v3665_v34 = vsub.f32 1.0, %v3664_v37  ;;  %4313 = vmatpush.bf16.msrb.mxu2 %v6912_v63 }
 0x281   :  { %4301 = vmatpush.bf16.msrb.mxu1 %v6903_v21  ;;  %v3666_v40 = vmul.f32 %v6958_v42, %v3665_v34 }
 0x282   :  { %v3411_v3 = vpop.f32.mrf.mxu0 }
 0x283   :  { %4289 = vmatpush.bf16.msrb.mxu0 %v6894_v25  ;;  %v3667_v43 = vadd.f32 %v6958_v42, %v3666_v40  ;;  %4314 = vmatpush.bf16.msrb.mxu2 %v6911_v7  ;;  %v6922_v25 = vld [vmem:[#allocation8 + $0x1f0] sm:$0xff] }
 0x284   :  { %v3435_v54 = vpop.f32.mrf.mxu2  ;;  %v3424_v58 = vpop.f32.mrf.mxu1  ;;  %4324 = vmatpush.bf16.msrb.mxu3 %v6922_v25 }
 0x285   :  { %4302 = vmatpush.bf16.msrb.mxu1 %v6902_v46  ;;  %v3671_v47 = vsel %vm3670_vm6, %v6958_v42, %v3667_v43  ;;  %v3436_v39 = vadd.f32 %v3435_v54, %v3423_v8  ;;  %v6918_v42 = vld [vmem:[#allocation8 + $0x1d0] sm:$0xff]  ;;  %v6917_v43 = vld [vmem:[#allocation8 + $0x1c8] sm:$0xff] }
 0x286   :  { %v3676_v28 = vsel %vm3673_vm7, %v3675_v45, %v3671_v47  ;;  %v3448_v55 = vpop.f32.mrf.mxu3  ;;  %v6916_v47 = vld [vmem:[#allocation8 + $0x1c0] sm:$0xff] }
 0x287   :  { %4290 = vmatpush.bf16.msrb.mxu0 %v6893_v62  ;;  %v3713_v31 = vpack.c.bf16 %v3676_v28, %v3676_v28  ;;  %4315 = vmatpush.bf16.msrb.mxu2 %v6910_v10  ;;  %v3449_v11 = vadd.f32 %v3448_v55, %v3436_v39  ;;  %v6920_v62 = vld [vmem:[#allocation8 + $0x1e0] sm:$0xff] }
 0x288   :  { %4325 = vmatpush.bf16.msrb.mxu3 %v6921_v48 }
 0x289   :  { %4303 = vmatpush.bf16.msrb.mxu1 %v6901_v17 }
 0x28b   :  { %4291 = vmatpush.bf16.msrb.mxu0 %v6892_v14  ;;  %4316 = vmatpush.bf16.msrb.mxu2 %v6909_v15 }
 0x28c   :  { %v3437_v2 = vpop.f32.mrf.mxu2  ;;  %4326 = vmatpush.bf16.msrb.mxu3 %v6920_v62 }
 0x28d   :  { %4304 = vmatpush.bf16.msrb.mxu1 %v6900_v38 }
 0x28e   :  { %4292 = vmatmul.bf16.vlgmr.msrb.gmra.mxu0 %v3712_v36  ;;  %v3450_v5 = vpop.f32.mrf.mxu3 }
 0x28f   :  { %4317 = vmatpush.bf16.msrb.mxu2 %v6908_v1 }
 0x290   :  { %4305 = vmatmul.bf16.vlgmr.msrb.gmra.mxu1 %v3713_v31  ;;  %4327 = vmatpush.bf16.msrb.mxu3 %v6919_v16 }
 0x294   :  { %4328 = vmatpush.bf16.msrb.mxu3 %v6918_v42 }
 0x298   :  { %4329 = vmatpush.bf16.msrb.mxu3 %v6917_v43 }
 0x29c   :  { %v3474_v59 = vpop.f32.mrf.mxu1  ;;  %4330 = vmatpush.bf16.msrb.mxu3 %v6916_v47 }
 0x29d   :  { %v3475_v30 = vadd.f32 %v3474_v59, %v554_v4 }
 0x29e   :  { %v3461_v12 = vpop.f32.mrf.mxu0 }
 0x29f   :  { %v3462_v18 = vadd.f32 %v3461_v12, %v3449_v11 }
 0x2a1   :  { %v6154_v19 = vmul.f32 -1.442695, %v3462_v18 }
 0x2a3   :  { %6959 = vpow2.f32 %v6154_v19 }
 0x2a4   :  { %v3487_v20 = vpop.f32.mrf.mxu2  ;;  %v3476_v23 = vpop.f32.mrf.mxu1 }
 0x2a5   :  { %v3488_v14 = vadd.f32 %v3487_v20, %v3475_v30 }
 0x2a6   :  { %v3500_v0 = vpop.f32.mrf.mxu3  ;;  %v3463_v21 = vpop.f32.mrf.mxu0 }
 0x2a7   :  { %v3501_v36 = vadd.f32 %v3500_v0, %v3488_v14 }
 0x2a9   :  { %v6960_v61 = vpop.eup %6959 }
 0x2aa   :  { %v3586_v24 = vadd.f32 1.0, %v6960_v61 }
 0x2ac   :  { %6961 = vrcp.f32 %v3586_v24  ;;  %v3489_v26 = vpop.f32.mrf.mxu2  ;;  %v3689_v32 = vand.u32 2147483648, %v3586_v24  ;;  %v3687_v35 = vand.u32 2147483647, %v3586_v24  ;;  %vm3683_vm9 = vweird.f32 %v3586_v24 }
 0x2ae   :  { %v3502_v46 = vpop.f32.mrf.mxu3  ;;  %v3690_v41 = vor.u32 1.1754944e-38, %v3689_v32  ;;  %vm3688_vm11 = vcmp.eq.f32.partialorder %v3687_v35, 8.507059e+37 }
 0x2b2   :  { %v6962_v27 = vpop.eup %6961 }
 0x2b3   :  { %v3679_v29 = vmul.f32 %v6962_v27, %v3586_v24  ;;  %vm3684_vm8 = vweird.f32 %v6962_v27 }
 0x2b4   :  { %vm3685_vm10 = vmor %vm3683_vm9, %vm3684_vm8 }
 0x2b5   :  { %v3680_v17 = vsub.f32 1.0, %v3679_v29 }
 0x2b7   :  { %v3681_v9 = vmul.f32 %v6962_v27, %v3680_v17 }
 0x2b9   :  { %v3682_v38 = vadd.f32 %v6962_v27, %v3681_v9 }
 0x2bb   :  { %v3686_v6 = vsel %vm3685_vm10, %v6962_v27, %v3682_v38 }
 0x2bc   :  { %v3691_v34 = vsel %vm3688_vm11, %v3690_v41, %v3686_v6 }
 0x2bd   :  { %v3714_v40 = vpack.c.bf16 %v3691_v34, %v3691_v34 }
 0x2bf   :  { %4318 = vmatmul.bf16.vlgmr.msrb.gmra.mxu2 %v3714_v40 }
 0x2cb   :  { %v3513_v37 = vpop.f32.mrf.mxu0 }
 0x2cc   :  { %v3514_v44 = vadd.f32 %v3513_v37, %v3501_v36 }
 0x2cd   :  { %v3526_v13 = vpop.f32.mrf.mxu1 }
 0x2ce   :  { %v3527_v45 = vadd.f32 %v3526_v13, %v3514_v44 }
 0x2d3   :  { %v3515_v51 = vpop.f32.mrf.mxu0 }
 0x2d5   :  { %v3539_v50 = vpop.f32.mrf.mxu2  ;;  %v3528_v31 = vpop.f32.mrf.mxu1 }
 0x2d6   :  { %v3540_v33 = vadd.f32 %v3539_v50, %v3527_v45 }
 0x2d7   :  { %v3552_v28 = vpop.f32.mrf.mxu3 }
 0x2d8   :  { %v3553_v52 = vadd.f32 %v3552_v28, %v3540_v33 }
 0x2da   :  { %v6155_v53 = vmul.f32 -1.442695, %v3553_v52 }
 0x2dc   :  { %6963 = vpow2.f32 %v6155_v53 }
 0x2dd   :  { %v3541_v54 = vpop.f32.mrf.mxu2 }
 0x2df   :  { %v3554_v55 = vpop.f32.mrf.mxu3 }
 0x2e2   :  { %v6964_v56 = vpop.eup %6963 }
 0x2e3   :  { %v3587_v3 = vadd.f32 1.0, %v6964_v56 }
 0x2e5   :  { %6965 = vrcp.f32 %v3587_v3  ;;  %v3704_v8 = vand.u32 2147483648, %v3587_v3  ;;  %v3702_v15 = vand.u32 2147483647, %v3587_v3  ;;  %vm3698_vm13 = vweird.f32 %v3587_v3 }
 0x2e7   :  { %v3705_v1 = vor.u32 1.1754944e-38, %v3704_v8  ;;  %vm3703_vm15 = vcmp.eq.f32.partialorder %v3702_v15, 8.507059e+37 }
 0x2eb   :  { %v6966_v58 = vpop.eup %6965  ;;  %v4241_v60 = vpop.f32.mrf.mxu0 }
 0x2ec   :  { %v3694_v63 = vmul.f32 %v6966_v58, %v3587_v3  ;;  %v4242_v2 = vadd.f32 %v6934_v57, %v4241_v60  ;;  %vm3699_vm12 = vweird.f32 %v6966_v58 }
 0x2ed   :  { %v4254_v5 = vpop.f32.mrf.mxu1  ;;  %vm3700_vm14 = vmor %vm3698_vm13, %vm3699_vm12 }
 0x2ee   :  { %v3695_v49 = vsub.f32 1.0, %v3694_v63  ;;  %v4255_v7 = vadd.f32 %v4254_v5, %v4242_v2 }
 0x2f0   :  { %v3696_v10 = vmul.f32 %v6966_v58, %v3695_v49 }
 0x2f2   :  { %v3697_v11 = vadd.f32 %v6966_v58, %v3696_v10 }
 0x2f3   :  { %v4243_v59 = vpop.f32.mrf.mxu0 }
 0x2f4   :  { %v3701_v20 = vsel %vm3700_vm14, %v6966_v58, %v3697_v11 }
 0x2f5   :  { %v4267_v39 = vpop.f32.mrf.mxu2  ;;  %v4256_v19 = vpop.f32.mrf.mxu1  ;;  %v3706_v21 = vsel %vm3703_vm15, %v3705_v1, %v3701_v20 }
 0x2f6   :  { %v4268_v12 = vadd.f32 %v4267_v39, %v4255_v7  ;;  %v3715_v22 = vpack.c.bf16 %v3706_v21, %v3706_v21 }
 0x2f7   :  { %v4280_v18 = vpop.f32.mrf.mxu3 }
 0x2f8   :  { %v4281_v0 = vadd.f32 %v4280_v18, %v4268_v12  ;;  %4331 = vmatmul.bf16.vlgmr.msrb.gmra.mxu3 %v3715_v22 }
 0x2fd   :  { %v4269_v23 = vpop.f32.mrf.mxu2 }
 0x2ff   :  { %v4282_v61 = vpop.f32.mrf.mxu3 }
 0x30b   :  { %v4293_v24 = vpop.f32.mrf.mxu0 }
 0x30c   :  { %v4294_v25 = vadd.f32 %v4293_v24, %v4281_v0 }
 0x30d   :  { %v4306_v46 = vpop.f32.mrf.mxu1 }
 0x30e   :  { %v4307_v48 = vadd.f32 %v4306_v46, %v4294_v25 }
 0x313   :  { %v4295_v26 = vpop.f32.mrf.mxu0 }
 0x315   :  { %v4308_v4 = vpop.f32.mrf.mxu1 }
 0x342   :  { %v4319_v27 = vpop.f32.mrf.mxu2 }
 0x343   :  { %v4320_v29 = vadd.f32 %v4319_v27, %v4307_v48 }
 0x34a   :  { %v4321_v62 = vpop.f32.mrf.mxu2 }
 0x37b   :  { %v4332_v30 = vpop.f32.mrf.mxu3 }
 0x37c   :  { %v4333_v17 = vadd.f32 %v4332_v30, %v4320_v29 }
 0x37e   :  { %4336 = vst [vmem:[#allocation11] sm:$0xff] %v4333_v17 }
 0x37f   :  { %4347 = dma.vmem_to_hbm [thread:$0]  %s4343_s4, 128, %s4345_s21, [#allocation4]  }
 0x383   :  { %v4334_v32 = vpop.f32.mrf.mxu3 }
 0x384   :  { %7119 = dma.done.wait [#allocation4], 128  }
 0x385   :  { %7120 = vsyncadd [#allocation4], 4294967168 }
 0x386   :  { %4352 = vsyncpa [#allocation3], 1 }
 0x387   :  { %4353 = vsyncpa [#allocation6], 1 }
 0x388   :  { %4354 = vsyncpa [#allocation9], 1 }
 0x389   :  { %4355 = vsyncpa [#allocation4], 1 }

</bundles_post_ra>
